<compile_context>
chip_gen: v5e
topology: v5e:2x2
jax: 0.10.0
libtpu: 0.0.40
codegen_flags: <defaults>
</compile_context>

<pallas_src>
import functools

import numpy as np
import jax
import jax.numpy as jnp
from jax import lax
from jax.experimental import pallas as pl
from jax.experimental.pallas import tpu as pltpu


def _round_up(x, m):
    return ((x + m - 1) // m) * m


def _vmem_limit_bytes():
    # Leave >=16 MiB headroom (v7x has only 64 MiB physical); cap at 100 MiB on
    # 128 MiB parts (v5e/v6e).
    try:
        cap = int(pltpu.get_tpu_info().vmem_capacity_bytes)
    except Exception:
        return 48 * 1024 * 1024
    return int(max(32 * 1024 * 1024,
                   min(cap - 16 * 1024 * 1024, 100 * 1024 * 1024)))


# ----------------------------------------------------------------------------
# Pallas kernel: one (term, column-block) grid step of NormSoftmaxLoss
# ----------------------------------------------------------------------------
def _fused_norm_softmax_kernel(s1_ref, s2_ref,              # scalar-prefetch (unused in body)
                               e1_ref, e2_ref, mrow_ref, mcol_ref,
                               out_ref, a_scr, rowsum_scr, *, inv_temp):
    f32 = jnp.float32
    kb = pl.program_id(1)
    nb = pl.num_programs(1)
    shift = f32(inv_temp)          # constant LSE shift: |logit| <= 1/T for unit rows
    tiny = f32(1e-30)
    eps2 = f32(1e-16)              # == torch's max(||x||, 1e-8) squared

    @pl.when(kb == 0)
    def _init():
        # Normalize e1 once per term, fold 1/T into its scale, stash as bf16.
        e1 = e1_ref[0].astype(f32)                                   # (Np, Dp)
        inv1 = lax.rsqrt(jnp.maximum(jnp.sum(e1 * e1, axis=-1, keepdims=True), eps2))
        a_scr[...] = (e1 * (inv1 * f32(inv_temp))).astype(jnp.bfloat16)
        rowsum_scr[...] = jnp.zeros_like(rowsum_scr)
        out_ref[...] = jnp.zeros_like(out_ref)

    m_col = mcol_ref[0]                                              # (1, Nc)
    m_row = mrow_ref[0]                                              # (Np, 1)

    # Normalize this e2 column block (small: Nc x Dp).
    e2 = e2_ref[0].astype(f32)                                       # (Nc, Dp)
    inv2 = lax.rsqrt(jnp.maximum(jnp.sum(e2 * e2, axis=-1, keepdims=True), eps2))
    b32 = e2 * inv2                                                  # f32 normalized
    b = b32.astype(jnp.bfloat16)

    # sim block = (1/T) * cos-sim, bf16 MXU with f32 accumulation.   (Np, Nc)
    sim = lax.dot_general(a_scr[...], b, (((1,), (1,)), ((), ())),
                          preferred_element_type=f32)

    # Single exp; masks by multiplication (no where / -1e30 sentinels).
    e_cm = jnp.exp(sim - shift) * m_col                              # col-masked
    rowsum_scr[...] += jnp.sum(e_cm, axis=1, keepdims=True)          # accumulate rows

    # Column LSE contribution of this block (over valid rows only).
    colsum = jnp.sum(e_cm * m_row, axis=0, keepdims=True)            # (1, Nc)
    col_lse_part = jnp.sum((shift + jnp.log(colsum + tiny)) * m_col)

    # Diagonal contribution of this block via row-wise dots (no N^2 iota).
    nc = e2_ref.shape[1]
    off = pl.multiple_of(kb * nc, nc)
    a_blk = a_scr[pl.ds(off, nc), :].astype(f32)                     # (Nc, Dp)
    m_row_blk = mrow_ref[0, pl.ds(off, nc), :]                       # (Nc, 1)
    diag_part = jnp.sum(jnp.sum(a_blk * b32, axis=-1, keepdims=True) * m_row_blk)

    out_ref[...] += col_lse_part - f32(2.0) * diag_part

    @pl.when(kb == nb - 1)
    def _finalize():
        lse_row = shift + jnp.log(rowsum_scr[...] + tiny)            # (Np, 1)
        row_lse_sum = jnp.sum(lse_row * m_row)
        n = jnp.maximum(jnp.sum(m_row), f32(1.0))
        # loss = (sum lse_row + sum lse_col - 2 * sum diag) / n
        out_ref[...] = (out_ref[...] + row_lse_sum) / n


def fused_norm_softmax_losses(embeds, slot1, slot2, mask_row, mask_col,
                              temperature, col_block=256):
    """Per-term NormSoftmaxLoss(sim_matrix(e1, e2)) for T terms.

    embeds : (U, Np, Dp) bf16 stack of UNIQUE embeddings.
    slot1/slot2 : (T,) int32 term -> embedding slot (scalar-prefetched).
    mask_row : (T, Np, 1) f32 {0,1};  mask_col : (T, 1, Np) f32 {0,1}.
    """
    t_terms = int(slot1.shape[0])
    _, n_pad, d_pad = embeds.shape
    col_block = int(min(col_block, n_pad))
    assert col_block % 128 == 0 and n_pad % col_block == 0
    n_blocks = n_pad // col_block

    kernel = functools.partial(_fused_norm_softmax_kernel,
                               inv_temp=float(1.0 / temperature))
    out = pl.pallas_call(
        kernel,
        out_shape=jax.ShapeDtypeStruct((t_terms, 1, 128), jnp.float32),
        grid_spec=pltpu.PrefetchScalarGridSpec(
            num_scalar_prefetch=2,
            grid=(t_terms, n_blocks),
            in_specs=[
                # e1: full row block, slot chosen by prefetch table (dedup).
                pl.BlockSpec((1, n_pad, d_pad), lambda t, k, s1, s2: (s1[t], 0, 0)),
                # e2: one column block per inner grid step.
                pl.BlockSpec((1, col_block, d_pad), lambda t, k, s1, s2: (s2[t], k, 0)),
                pl.BlockSpec((1, n_pad, 1), lambda t, k, s1, s2: (t, 0, 0)),
                pl.BlockSpec((1, 1, col_block), lambda t, k, s1, s2: (t, 0, k)),
            ],
            out_specs=pl.BlockSpec((1, 1, 128), lambda t, k, s1, s2: (t, 0, 0)),
            scratch_shapes=[
                pltpu.VMEM((n_pad, d_pad), jnp.bfloat16),   # normalized e1 (1/T folded)
                pltpu.VMEM((n_pad, 1), jnp.float32),        # row-sum accumulator
            ]),
        compiler_params=pltpu.CompilerParams(
            dimension_semantics=("parallel", "arbitrary"),
            vmem_limit_bytes=_vmem_limit_bytes()),
    )(slot1, slot2, embeds, embeds, mask_row, mask_col)
    return out[:, 0, 0]


# ----------------------------------------------------------------------------
# CombinatorialLoss — host-side glue + one fused Pallas call
# ----------------------------------------------------------------------------
class CombinatorialLossPallas:
    def __init__(self, contrastive_loss='NormSoftmax', temperature=0.05,
                 tv_weight=0, ta_weight=0, va_weight=0,
                 t_va_weight=0, v_ta_weight=0, a_tv_weight=0, col_block=256):
        if contrastive_loss != 'NormSoftmax':
            # TODO(synk): MMS_Loss variant not implemented.
            raise NotImplementedError()
        # Constant-shift single-exp LSE needs exp(+-2/T) inside f32 range.
        assert 2.0 / temperature <= 80.0, \
            "TODO(synk): running-max LSE path for very small temperatures"
        self.temperature = temperature
        self.col_block = col_block
        self.tv_weight = tv_weight
        self.ta_weight = ta_weight
        self.va_weight = va_weight
        self.t_va_weight = t_va_weight
        self.v_ta_weight = v_ta_weight
        self.a_tv_weight = a_tv_weight

    def forward(self, input_data):
        t = np.asarray(input_data['text_nonempty_input_mask']).astype(bool)
        v = np.asarray(input_data['video_nonempty_input_mask']).astype(bool)
        a = np.asarray(input_data['audio_nonempty_input_mask']).astype(bool)

        nonempty = {
            'ttv': t & (t & v),
            'tta': t & (t & a),
            'tv': t & v,
            'ta': t & a,
            'va': v & a,
            't_va': t & (v & a),
            't_v+a': t & (v & a),
            'v_ta': v & (t & a),
            'a_tv': a & (t & v),
            'tv_a': t & v & a,
        }

        term_table = [
            ('t_va', 'text_embed', 'va_embed', self.t_va_weight),
            ('t_v+a', 'text_embed', 'v+a_embed', 1),
            ('ttv', 'text_embed', 'tv_embed', 1),
            ('tta', 'text_embed', 'ta_embed', 1),
        ]
        active = [(n, e1, e2, w) for (n, e1, e2, w) in term_table
                  if e1 in input_data and e2 in input_data and w != 0]
        assert active, "no active loss terms"
        # Group terms sharing e1 so consecutive grid steps reuse the resident
        # e1 block (the pipeline skips the re-fetch on an unchanged block idx).
        active.sort(key=lambda item: (item[1], item[2]))

        batch, dim = np.shape(input_data[active[0][1]])
        n_pad = max(128, _round_up(batch, 128))   # static, data-independent pad
        d_pad = max(128, _round_up(dim, 128))

        # Deduplicated bf16 embedding stack (halves HBM<->VMEM bytes, T x less
        # traffic for the shared text_embed).
        uniq = []
        for _, e1n, e2n, _ in active:
            for nm in (e1n, e2n):
                if nm not in uniq:
                    uniq.append(nm)

        def pad_bf16(name):
            x = jnp.asarray(input_data[name], jnp.float32).astype(jnp.bfloat16)
            return jnp.pad(x, ((0, n_pad - x.shape[0]), (0, d_pad - x.shape[1])))

        embeds = jnp.stack([pad_bf16(nm) for nm in uniq])            # (U, Np, Dp)
        slot1 = jnp.asarray([uniq.index(e1n) for _, e1n, _, _ in active], jnp.int32)
        slot2 = jnp.asarray([uniq.index(e2n) for _, _, e2n, _ in active], jnp.int32)

        masks_np = np.zeros((len(active), n_pad), np.float32)
        for i, (name, _, _, _) in enumerate(active):
            masks_np[i, :batch] = nonempty[name].astype(np.float32)
        masks = jnp.asarray(masks_np)
        mask_col = masks[:, None, :]             # (T, 1, Np)
        mask_row = masks[:, :, None]             # (T, Np, 1)

        losses = fused_norm_softmax_losses(
            embeds, slot1, slot2, mask_row, mask_col,
            temperature=self.temperature, col_block=self.col_block)   # (T,)

        weights = jnp.asarray([float(w) for (_, _, _, w) in active], jnp.float32)
        weight_sum = float(sum(w for (_, _, _, w) in active))
        final_loss = jnp.sum(weights * losses) / weight_sum

        # Single host sync after everything is dispatched (no per-term float()).
        losses_np, final_np = jax.device_get((losses, final_loss))
        loss_info = {name: float(losses_np[i])
                     for i, (name, _, _, _) in enumerate(active)}
        loss_info['Retrieval'] = float(final_np)
        return final_loss, loss_info


# ----------------------------------------------------------------------------
# Pure-JAX reference (mirrors the torch module, f32 end to end)
# ----------------------------------------------------------------------------
def _ref_norm_softmax(e1, e2, temperature=0.05):
    e1 = e1.astype(jnp.float32)
    e2 = e2.astype(jnp.float32)
    n1 = jnp.linalg.norm(e1, axis=1, keepdims=True)
    n2 = jnp.linalg.norm(e2, axis=1, keepdims=True)
    e1n = e1 / jnp.maximum(n1, 1e-8)
    e2n = e2 / jnp.maximum(n2, 1e-8)
    sim = (e1n @ e2n.T) / temperature
    i_logsm = jax.nn.log_softmax(sim, axis=1)
    j_logsm = jax.nn.log_softmax(sim.T, axis=1)
    return -jnp.mean(jnp.diag(i_logsm)) - jnp.mean(jnp.diag(j_logsm))


def _ref_combinatorial(input_data, temperature=0.05):
    t = np.asarray(input_data['text_nonempty_input_mask']).astype(bool)
    v = np.asarray(input_data['video_nonempty_input_mask']).astype(bool)
    a = np.asarray(input_data['audio_nonempty_input_mask']).astype(bool)
    masks = {'t_v+a': t & (v & a), 'ttv': t & v, 'tta': t & a}
    losses = []
    for name, e2_name in [('t_v+a', 'v+a_embed'), ('ttv', 'tv_embed'),
                          ('tta', 'ta_embed')]:
        idx = jnp.asarray(np.nonzero(masks[name])[0], dtype=jnp.int32)
        e1 = jnp.take(input_data['text_embed'], idx, axis=0)
        e2 = jnp.take(input_data[e2_name], idx, axis=0)
        losses.append(_ref_norm_softmax(e1, e2, temperature))
    return sum(losses) / 3.0


if __name__ == "__main__":
    # batch=192 -> n_pad=256, col_block=128 -> 2 column blocks, so the
    # flash-style accumulation path across blocks is actually exercised.
    B, D = 192, 48
    key = jax.random.PRNGKey(0)
    k_t, k_va, k_tv, k_ta = jax.random.split(key, 4)

    input_data = {
        'text_embed': jax.random.normal(k_t, (B, D), jnp.float32),
        'v+a_embed': jax.random.normal(k_va, (B, D), jnp.float32),
        'tv_embed': jax.random.normal(k_tv, (B, D), jnp.float32),
        'ta_embed': jax.random.normal(k_ta, (B, D), jnp.float32),
        'text_nonempty_input_mask': (np.arange(B) % 7 != 3),
        'video_nonempty_input_mask': (np.arange(B) % 5 != 2),
        'audio_nonempty_input_mask': (np.arange(B) % 11 != 6),
    }

    loss_module = CombinatorialLossPallas(temperature=0.05, col_block=128)
    final_loss, loss_info = loss_module.forward(input_data)
    final_loss = jax.block_until_ready(final_loss)

    ref = jax.block_until_ready(_ref_combinatorial(input_data, temperature=0.05))
    # Tolerance accounts for the bf16 input cast + bf16 MXU path (f32 accumulate).
    np.testing.assert_allclose(np.asarray(final_loss), np.asarray(ref),
                               rtol=2e-2, atol=2e-2)

    print("KERNEL_OK")
</pallas_src>

<mosaic_0001>
module attributes {stable_mosaic.version = 11 : i64} {
  func.func @_fused_norm_softmax_kernel(%arg0: i32, %arg1: i32, %arg2: memref<3xi32, #tpu.memory_space<smem>>, %arg3: memref<3xi32, #tpu.memory_space<smem>>, %arg4: memref<1x256x128xbf16, #tpu.memory_space<vmem>>, %arg5: memref<1x128x128xbf16, #tpu.memory_space<vmem>>, %arg6: memref<1x256x1xf32, #tpu.memory_space<vmem>>, %arg7: memref<1x1x128xf32, #tpu.memory_space<vmem>>, %arg8: memref<1x1x128xf32, #tpu.memory_space<vmem>>, %arg9: memref<256x128xbf16, #tpu.memory_space<vmem>>, %arg10: memref<256x1xf32, #tpu.memory_space<vmem>>) attributes {dimension_semantics = [#tpu.dimension_semantics<parallel>, #tpu.dimension_semantics<arbitrary>], iteration_bounds = array<i64: 3, 2>, scalar_prefetch = 2 : i64, scratch_operands = 2 : i64, tpu.core_type = #tpu.core_type<tc>, window_params = [{transform_indices = @transform_0, window_bounds = array<i64: 1, 256, 128>}, {transform_indices = @transform_1, window_bounds = array<i64: 1, 128, 128>}, {transform_indices = @transform_2, window_bounds = array<i64: 1, 256, 1>}, {transform_indices = @transform_3, window_bounds = array<i64: 1, 1, 128>}, {transform_indices = @transform_4, window_bounds = array<i64: 1, 1, 128>}]} {
    %c0_i32 = arith.constant 0 : i32
    %0 = arith.cmpi eq, %arg1, %c0_i32 : i32
    %1 = arith.extui %0 : i1 to i32
    %cst = arith.constant 1.000000e-16 : f32
    %c0_i32_0 = arith.constant 0 : i32
    %2 = arith.cmpi ne, %1, %c0_i32_0 : i32
    scf.if %2 {
      %c0_39 = arith.constant 0 : index
      %c0_40 = arith.constant 0 : index
      %c0_41 = arith.constant 0 : index
      %70 = vector.load %arg4[%c0_39, %c0_40, %c0_41] : memref<1x256x128xbf16, #tpu.memory_space<vmem>>, vector<1x256x128xbf16>
      %71 = vector.shape_cast %70 : vector<1x256x128xbf16> to vector<256x128xbf16>
      %72 = arith.extf %71 : vector<256x128xbf16> to vector<256x128xf32>
      %73 = arith.mulf %72, %72 : vector<256x128xf32>
      %cst_42 = arith.constant dense<0.000000e+00> : vector<256xf32>
      %74 = vector.multi_reduction <add>, %73, %cst_42 [1] : vector<256x128xf32> to vector<256xf32>
      %75 = vector.shape_cast %74 : vector<256xf32> to vector<256x1xf32>
      %76 = vector.broadcast %cst : f32 to vector<256x1xf32>
      %77 = arith.maximumf %75, %76 : vector<256x1xf32>
      %78 = math.rsqrt %77 : vector<256x1xf32>
      %cst_43 = arith.constant 2.000000e+01 : f32
      %79 = vector.broadcast %cst_43 : f32 to vector<256x1xf32>
      %80 = arith.mulf %78, %79 : vector<256x1xf32>
      %81 = vector.broadcast %80 : vector<256x1xf32> to vector<256x128xf32>
      %82 = arith.mulf %72, %81 : vector<256x128xf32>
      %83 = arith.truncf %82 : vector<256x128xf32> to vector<256x128xbf16>
      %c0_44 = arith.constant 0 : index
      %c0_45 = arith.constant 0 : index
      %84 = vector.load %arg9[%c0_44, %c0_45] : memref<256x128xbf16, #tpu.memory_space<vmem>>, vector<256x128xbf16>
      tpu.vector_store %arg9[%c0_44, %c0_45], %83 {strides = array<i32>} : memref<256x128xbf16, #tpu.memory_space<vmem>>, vector<256x128xbf16>,
      %cst_46 = arith.constant 0.000000e+00 : f32
      %85 = vector.broadcast %cst_46 : f32 to vector<256x1xf32>
      %c0_47 = arith.constant 0 : index
      %c0_48 = arith.constant 0 : index
      %86 = vector.load %arg10[%c0_47, %c0_48] : memref<256x1xf32, #tpu.memory_space<vmem>>, vector<256x1xf32>
      tpu.vector_store %arg10[%c0_47, %c0_48], %85 {strides = array<i32>} : memref<256x1xf32, #tpu.memory_space<vmem>>, vector<256x1xf32>,
      %cst_49 = arith.constant 0.000000e+00 : f32
      %87 = vector.broadcast %cst_49 : f32 to vector<1x1x128xf32>
      %c0_50 = arith.constant 0 : index
      %c0_51 = arith.constant 0 : index
      %c0_52 = arith.constant 0 : index
      %88 = vector.load %arg8[%c0_50, %c0_51, %c0_52] : memref<1x1x128xf32, #tpu.memory_space<vmem>>, vector<1x1x128xf32>
      tpu.vector_store %arg8[%c0_50, %c0_51, %c0_52], %87 {strides = array<i32>} : memref<1x1x128xf32, #tpu.memory_space<vmem>>, vector<1x1x128xf32>,
    } else {
    }
    %c0 = arith.constant 0 : index
    %c0_1 = arith.constant 0 : index
    %c0_2 = arith.constant 0 : index
    %3 = vector.load %arg7[%c0, %c0_1, %c0_2] : memref<1x1x128xf32, #tpu.memory_space<vmem>>, vector<1x1x128xf32>
    %4 = vector.shape_cast %3 : vector<1x1x128xf32> to vector<1x128xf32>
    %c0_3 = arith.constant 0 : index
    %c0_4 = arith.constant 0 : index
    %c0_5 = arith.constant 0 : index
    %5 = vector.load %arg6[%c0_3, %c0_4, %c0_5] : memref<1x256x1xf32, #tpu.memory_space<vmem>>, vector<1x256x1xf32>
    %6 = vector.shape_cast %5 : vector<1x256x1xf32> to vector<256x1xf32>
    %c0_6 = arith.constant 0 : index
    %c0_7 = arith.constant 0 : index
    %c0_8 = arith.constant 0 : index
    %7 = vector.load %arg5[%c0_6, %c0_7, %c0_8] : memref<1x128x128xbf16, #tpu.memory_space<vmem>>, vector<1x128x128xbf16>
    %8 = vector.shape_cast %7 : vector<1x128x128xbf16> to vector<128x128xbf16>
    %9 = arith.extf %8 : vector<128x128xbf16> to vector<128x128xf32>
    %10 = arith.mulf %9, %9 : vector<128x128xf32>
    %cst_9 = arith.constant dense<0.000000e+00> : vector<128xf32>
    %11 = vector.multi_reduction <add>, %10, %cst_9 [1] : vector<128x128xf32> to vector<128xf32>
    %12 = vector.shape_cast %11 : vector<128xf32> to vector<128x1xf32>
    %cst_10 = arith.constant 1.000000e-16 : f32
    %13 = vector.broadcast %cst_10 : f32 to vector<128x1xf32>
    %14 = arith.maximumf %12, %13 : vector<128x1xf32>
    %15 = math.rsqrt %14 : vector<128x1xf32>
    %16 = vector.broadcast %15 : vector<128x1xf32> to vector<128x128xf32>
    %17 = arith.mulf %9, %16 : vector<128x128xf32>
    %18 = arith.truncf %17 : vector<128x128xf32> to vector<128x128xbf16>
    %c0_11 = arith.constant 0 : index
    %c0_12 = arith.constant 0 : index
    %19 = vector.load %arg9[%c0_11, %c0_12] : memref<256x128xbf16, #tpu.memory_space<vmem>>, vector<256x128xbf16>
    %cst_13 = arith.constant dense<0.000000e+00> : vector<256x128xf32>
    %20 = tpu.matmul %19, %18, %cst_13 {dimension_numbers = #tpu.dot_dimension_numbers<[1], [1], [0], [0], [0, 0, 1, 0], [], []>} : vector<256x128xbf16>, vector<128x128xbf16>, vector<256x128xf32> -> vector<256x128xf32>
    %cst_14 = arith.constant 2.000000e+01 : f32
    %21 = vector.broadcast %cst_14 : f32 to vector<256x128xf32>
    %22 = arith.subf %20, %21 : vector<256x128xf32>
    %23 = math.exp %22 : vector<256x128xf32>
    %24 = vector.broadcast %4 : vector<1x128xf32> to vector<256x128xf32>
    %25 = arith.mulf %23, %24 : vector<256x128xf32>
    %c0_15 = arith.constant 0 : index
    %c0_16 = arith.constant 0 : index
    %26 = vector.load %arg10[%c0_15, %c0_16] : memref<256x1xf32, #tpu.memory_space<vmem>>, vector<256x1xf32>
    %cst_17 = arith.constant dense<0.000000e+00> : vector<256xf32>
    %27 = vector.multi_reduction <add>, %25, %cst_17 [1] : vector<256x128xf32> to vector<256xf32>
    %28 = vector.shape_cast %27 : vector<256xf32> to vector<256x1xf32>
    %29 = arith.addf %26, %28 : vector<256x1xf32>
    %c0_18 = arith.constant 0 : index
    %c0_19 = arith.constant 0 : index
    %30 = vector.load %arg10[%c0_18, %c0_19] : memref<256x1xf32, #tpu.memory_space<vmem>>, vector<256x1xf32>
    tpu.vector_store %arg10[%c0_18, %c0_19], %29 {strides = array<i32>} : memref<256x1xf32, #tpu.memory_space<vmem>>, vector<256x1xf32>,
    %31 = vector.broadcast %6 : vector<256x1xf32> to vector<256x128xf32>
    %32 = arith.mulf %25, %31 : vector<256x128xf32>
    %cst_20 = arith.constant dense<0.000000e+00> : vector<128xf32>
    %33 = vector.multi_reduction <add>, %32, %cst_20 [0] : vector<256x128xf32> to vector<128xf32>
    %34 = vector.shape_cast %33 : vector<128xf32> to vector<1x128xf32>
    %cst_21 = arith.constant 1.000000e-30 : f32
    %35 = vector.broadcast %cst_21 : f32 to vector<1x128xf32>
    %36 = arith.addf %34, %35 : vector<1x128xf32>
    %37 = math.log %36 : vector<1x128xf32>
    %cst_22 = arith.constant 2.000000e+01 : f32
    %38 = vector.broadcast %cst_22 : f32 to vector<1x128xf32>
    %39 = arith.addf %38, %37 : vector<1x128xf32>
    %40 = arith.mulf %39, %4 : vector<1x128xf32>
    %41 = vector.shape_cast %40 : vector<1x128xf32> to vector<1x1x128xf32>
    %cst_23 = arith.constant dense<0.000000e+00> : vector<1xf32>
    %42 = vector.multi_reduction <add>, %41, %cst_23 [1, 2] : vector<1x1x128xf32> to vector<1xf32>
    %43 = vector.shape_cast %42 : vector<1xf32> to vector<1x1x1xf32>
    %44 = vector.extract %43[0, 0, 0] : f32 from vector<1x1x1xf32>
    %c128_i32 = arith.constant 128 : i32
    %45 = arith.muli %arg1, %c128_i32 : i32
    %46 = tpu.assume_multiple %45, 128 : i32
    %47 = arith.index_cast %46 : i32 to index
    %c0_24 = arith.constant 0 : index
    %48 = vector.load %arg9[%47, %c0_24] : memref<256x128xbf16, #tpu.memory_space<vmem>>, vector<128x128xbf16>
    %49 = arith.extf %48 : vector<128x128xbf16> to vector<128x128xf32>
    %c0_25 = arith.constant 0 : index
    %50 = arith.index_cast %46 : i32 to index
    %c0_26 = arith.constant 0 : index
    %51 = vector.load %arg6[%c0_25, %50, %c0_26] : memref<1x256x1xf32, #tpu.memory_space<vmem>>, vector<1x128x1xf32>
    %52 = vector.shape_cast %51 : vector<1x128x1xf32> to vector<128x1xf32>
    %53 = arith.mulf %49, %17 : vector<128x128xf32>
    %cst_27 = arith.constant dense<0.000000e+00> : vector<128xf32>
    %54 = vector.multi_reduction <add>, %53, %cst_27 [1] : vector<128x128xf32> to vector<128xf32>
    %55 = vector.shape_cast %54 : vector<128xf32> to vector<128x1xf32>
    %56 = arith.mulf %55, %52 : vector<128x1xf32>
    %57 = vector.shape_cast %56 : vector<128x1xf32> to vector<1x128x1xf32>
    %cst_28 = arith.constant dense<0.000000e+00> : vector<1xf32>
    %58 = vector.multi_reduction <add>, %57, %cst_28 [1, 2] : vector<1x128x1xf32> to vector<1xf32>
    %59 = vector.shape_cast %58 : vector<1xf32> to vector<1x1x1xf32>
    %60 = vector.extract %59[0, 0, 0] : f32 from vector<1x1x1xf32>
    %c0_29 = arith.constant 0 : index
    %c0_30 = arith.constant 0 : index
    %c0_31 = arith.constant 0 : index
    %61 = vector.load %arg8[%c0_29, %c0_30, %c0_31] : memref<1x1x128xf32, #tpu.memory_space<vmem>>, vector<1x1x128xf32>
    %cst_32 = arith.constant 2.000000e+00 : f32
    %62 = arith.mulf %cst_32, %60 : f32
    %63 = arith.subf %44, %62 : f32
    %64 = vector.broadcast %63 : f32 to vector<1x1x128xf32>
    %65 = arith.addf %61, %64 : vector<1x1x128xf32>
    %c0_33 = arith.constant 0 : index
    %c0_34 = arith.constant 0 : index
    %c0_35 = arith.constant 0 : index
    %66 = vector.load %arg8[%c0_33, %c0_34, %c0_35] : memref<1x1x128xf32, #tpu.memory_space<vmem>>, vector<1x1x128xf32>
    tpu.vector_store %arg8[%c0_33, %c0_34, %c0_35], %65 {strides = array<i32>} : memref<1x1x128xf32, #tpu.memory_space<vmem>>, vector<1x1x128xf32>,
    %c1_i32 = arith.constant 1 : i32
    %67 = arith.cmpi eq, %arg1, %c1_i32 : i32
    %68 = arith.extui %67 : i1 to i32
    %cst_36 = arith.constant 1.000000e-30 : f32
    %cst_37 = arith.constant 2.000000e+01 : f32
    %c0_i32_38 = arith.constant 0 : i32
    %69 = arith.cmpi ne, %68, %c0_i32_38 : i32
    scf.if %69 {
      %c0_39 = arith.constant 0 : index
      %c0_40 = arith.constant 0 : index
      %70 = vector.load %arg10[%c0_39, %c0_40] : memref<256x1xf32, #tpu.memory_space<vmem>>, vector<256x1xf32>
      %71 = vector.broadcast %cst_36 : f32 to vector<256x1xf32>
      %72 = arith.addf %70, %71 : vector<256x1xf32>
      %73 = math.log %72 : vector<256x1xf32>
      %74 = vector.broadcast %cst_37 : f32 to vector<256x1xf32>
      %75 = arith.addf %74, %73 : vector<256x1xf32>
      %76 = arith.mulf %75, %6 : vector<256x1xf32>
      %77 = vector.shape_cast %76 : vector<256x1xf32> to vector<1x256x1xf32>
      %cst_41 = arith.constant dense<0.000000e+00> : vector<1xf32>
      %78 = vector.multi_reduction <add>, %77, %cst_41 [1, 2] : vector<1x256x1xf32> to vector<1xf32>
      %79 = vector.shape_cast %78 : vector<1xf32> to vector<1x1x1xf32>
      %80 = vector.extract %79[0, 0, 0] : f32 from vector<1x1x1xf32>
      %81 = vector.shape_cast %6 : vector<256x1xf32> to vector<1x256x1xf32>
      %cst_42 = arith.constant dense<0.000000e+00> : vector<1xf32>
      %82 = vector.multi_reduction <add>, %81, %cst_42 [1, 2] : vector<1x256x1xf32> to vector<1xf32>
      %83 = vector.shape_cast %82 : vector<1xf32> to vector<1x1x1xf32>
      %84 = vector.extract %83[0, 0, 0] : f32 from vector<1x1x1xf32>
      %cst_43 = arith.constant 1.000000e+00 : f32
      %85 = arith.maximumf %84, %cst_43 : f32
      %c0_44 = arith.constant 0 : index
      %c0_45 = arith.constant 0 : index
      %c0_46 = arith.constant 0 : index
      %86 = vector.load %arg8[%c0_44, %c0_45, %c0_46] : memref<1x1x128xf32, #tpu.memory_space<vmem>>, vector<1x1x128xf32>
      %87 = vector.broadcast %80 : f32 to vector<1x1x128xf32>
      %88 = arith.addf %86, %87 : vector<1x1x128xf32>
      %89 = vector.broadcast %85 : f32 to vector<1x1x128xf32>
      %90 = arith.divf %88, %89 : vector<1x1x128xf32>
      %c0_47 = arith.constant 0 : index
      %c0_48 = arith.constant 0 : index
      %c0_49 = arith.constant 0 : index
      %91 = vector.load %arg8[%c0_47, %c0_48, %c0_49] : memref<1x1x128xf32, #tpu.memory_space<vmem>>, vector<1x1x128xf32>
      tpu.vector_store %arg8[%c0_47, %c0_48, %c0_49], %90 {strides = array<i32>} : memref<1x1x128xf32, #tpu.memory_space<vmem>>, vector<1x1x128xf32>,
    } else {
    }
    return
  }
  func.func @transform_0(%arg0: i32, %arg1: i32, %arg2: memref<3xi32, #tpu.memory_space<smem>>, %arg3: memref<3xi32, #tpu.memory_space<smem>>) -> (i32, i32, i32) {
    %0 = arith.index_cast %arg0 : i32 to index
    %1 = memref.load %arg2[%0] : memref<3xi32, #tpu.memory_space<smem>>
    %c0_i32 = arith.constant 0 : i32
    %c0_i32_0 = arith.constant 0 : i32
    %c0_i32_1 = arith.constant 0 : i32
    return %1, %c0_i32, %c0_i32_0 : i32, i32, i32
  }
  func.func @transform_1(%arg0: i32, %arg1: i32, %arg2: memref<3xi32, #tpu.memory_space<smem>>, %arg3: memref<3xi32, #tpu.memory_space<smem>>) -> (i32, i32, i32) {
    %0 = arith.index_cast %arg0 : i32 to index
    %1 = memref.load %arg3[%0] : memref<3xi32, #tpu.memory_space<smem>>
    %c0_i32 = arith.constant 0 : i32
    %c0_i32_0 = arith.constant 0 : i32
    return %1, %arg1, %c0_i32 : i32, i32, i32
  }
  func.func @transform_2(%arg0: i32, %arg1: i32, %arg2: memref<3xi32, #tpu.memory_space<smem>>, %arg3: memref<3xi32, #tpu.memory_space<smem>>) -> (i32, i32, i32) {
    %c0_i32 = arith.constant 0 : i32
    %c0_i32_0 = arith.constant 0 : i32
    %c0_i32_1 = arith.constant 0 : i32
    return %arg0, %c0_i32, %c0_i32_0 : i32, i32, i32
  }
  func.func @transform_3(%arg0: i32, %arg1: i32, %arg2: memref<3xi32, #tpu.memory_space<smem>>, %arg3: memref<3xi32, #tpu.memory_space<smem>>) -> (i32, i32, i32) {
    %c0_i32 = arith.constant 0 : i32
    %c0_i32_0 = arith.constant 0 : i32
    return %arg0, %c0_i32, %arg1 : i32, i32, i32
  }
  func.func @transform_4(%arg0: i32, %arg1: i32, %arg2: memref<3xi32, #tpu.memory_space<smem>>, %arg3: memref<3xi32, #tpu.memory_space<smem>>) -> (i32, i32, i32) {
    %c0_i32 = arith.constant 0 : i32
    %c0_i32_0 = arith.constant 0 : i32
    %c0_i32_1 = arith.constant 0 : i32
    return %arg0, %c0_i32, %c0_i32_0 : i32, i32, i32
  }
}

</mosaic_0001>

<bundles_post_ra>
// kernel: tpu_custom_call.1
= control target key start
LH: loop header
LB: loop body
LE: loop exit
PB: predicated region body
PF: predicated region fallthrough
CT: control target
= control target key end

     0   :  { %s3678_s27 = smov [#allocation5]   ;;  %s3679_s28 = smov [#allocation6]   ;;  %s5689_s0 = inlined_call_operand.vmem [shape: s32[3], index: 0, kind: input, shape index: {}]   ;;  %s5690_s2 = inlined_call_operand.vmem [shape: bf16[4,256,128], index: 2, kind: input, shape index: {}]   ;;  %s5691_s3 = inlined_call_operand.hbm [shape: bf16[4,256,128], index: 3, kind: input, shape index: {}]   ;;  %s5692_s4 = inlined_call_operand.vmem [shape: f32[3,256,1], index: 4, kind: input, shape index: {}]   ;;  %s5693_s5 = inlined_call_operand.vmem [shape: f32[3,1,256], index: 5, kind: input, shape index: {}]   ;;  %s5694_s6 = inlined_call_operand.hbm [shape: f32[3,1,128], index: 6, kind: output, shape index: {}]   ;;  %s5695_s1 = inlined_call_operand.vmem [shape: s32[3], index: 1, kind: input, shape index: {}]  }
   0x1   :  { %s12_s23 = sshll.u32 %s5689_s0, 4  ;;  %s17_s26 = sshll.u32 %s5695_s1, 4  ;;  %s13_s23 = int_to_ptr.vmem [resolvable:$true] %s12_s23  ;;  %s18_s26 = int_to_ptr.vmem [resolvable:$true] %s17_s26 }
   0x2   :  { %15 = dma.vmem_to_smem %s13_s23, 16, %s3678_s27, [#allocation4] }
   0x3   :  { %20 = dma.vmem_to_smem %s18_s26, 16, %s3679_s28, [#allocation4] }
   0x4   :  { %3624 = dma.done.wait [#allocation4], 32 }
   0x5   :  { %3625 = vsyncadd [#allocation4], 4294967264 }
   0x6   :  { %23 = sfence }
   0x7   :  { %24 = vsyncpa [#allocation8], 0 }
   0x8   :  { %26 = vsyncpa [#allocation8 + $0x1], 0 }
   0x9   :  { %27 = vsyncpa [#allocation9], 0 }
   0xa   :  { %29 = vsyncpa [#allocation9 + $0x1], 0  ;;  %s3726_s29 = smov 0   ;;  %s3728_s0 = smov 0  }
   0xb   :  { %s3730_s30 = smov 0   ;;  %s3732_s1 = smov 0  }
   0xc   :  { %s3734_s7 = smov 0   ;;  %s3736_s8 = smov 0  }
   0xd   :  { %s3738_s9 = smov 0   ;;  %s3740_s10 = smov 0  }
   0xe   :  { %s3742_s11 = smov 0   ;;  %s3744_s12 = smov 0  }
   0xf   :  { %s3746_s13 = smov 0  }
  0x10 LB: > { %5767 = sst [smem:[#allocation16_spill]] %s3644_s30  ;;  %s2734_s14 = sadd.s32 4294967295, %s3676_s13   ;;  %s3676_s13 = sphi %s3746_s13, %s35_s13   ;;  %s3672_s12 = sphi %s3744_s12, %s5909_s12   ;;  %s3668_s11 = sphi %s3742_s11, %s5908_s11   ;;  %s3664_s10 = sphi %s3740_s10, %s5907_s10   ;;  %s3660_s9 = sphi %s3738_s9, %s5906_s9   ;;  %s3656_s8 = sphi %s3736_s8, %s5905_s8   ;;  %s3652_s7 = sphi %s3734_s7, %s5913_s7   ;;  %s3648_s1 = sphi %s3732_s1, %s5912_s1   ;;  %s3644_s30 = sphi %s3730_s30, %s5903_s30   ;;  %s3640_s0 = sphi %s3728_s0, %s5911_s0   ;;  %s3636_s29 = sphi %s3726_s29, %s5910_s29  }
  0x11   : > { %5768 = sst [smem:[#allocation17_spill]] %s3656_s8  ;;  %s44_s15 = sadd.s32 1, %s3668_s11 }
  0x12   : > { %5769 = sst [smem:[#allocation18_spill]] %s3668_s11  ;;  %p45_p0 = scmp.ge.s32.totalorder %s44_s15, 2 }
  0x13   : > { %5770 = sst [smem:[#allocation19_spill]] %s3672_s12  ;;  %s47_s16 = sadd.s32 1, %s3672_s12 }
  0x14   : > { %s2735_s17 = sadd.s32 4294967294, %s3676_s13   ;;  %s79_s18 = sld [smem:[#allocation6 + %s3672_s12]] }
  0x15   : > { %s5915_s15 = smov (%p45_p0, %s44_s15), 0  ;;  %s5917_s16 = smov (!%p45_p0, %s47_s16), %s3672_s12 }
  0x16   : > { %5771 = sst [smem:[#allocation20_spill]] %s5915_s15  ;;  %s82_s19 = ssub.s32 %s3668_s11, %s5915_s15 }
  0x17   : > { %p93_p1 = scmp.ne.s32.totalorder %s3656_s8, %s3652_s7  ;;  %p49_p2 = scmp.ge.s32.totalorder %s5917_s16, 3 }
  0x18   : > { %p99_p3 = scmp.ne.s32.totalorder %s3652_s7, %s3648_s1  ;;  %p94_p4 = scmp.eq.s32.totalorder %s3676_s13, 0 }
  0x19   : > { %p100_p5 = scmp.eq.s32.totalorder %s2734_s14, 0  ;;  %s5919_s16 = smov (%p49_p2, %s5917_s16), 0 }
  0x1a   : > { %5772 = sst [smem:[#allocation21_spill]] %s5919_s16  ;;  %s166_s21 = sadd.s32 1, %s3644_s30 }
  0x1b   : > { %p3795_p6 = por %p100_p5, %p99_p3  ;;  %s80_s22 = sld [smem:[#allocation6 + %s5919_s16]] }
  0x1c   : > { %s163_s23 = ssub.s32 %s3672_s12, %s5919_s16  ;;  %p176_p8 = scmp.ne.s32.totalorder %s3644_s30, %s3640_s0 }
  0x1d   : > { %p164_p7 = scmp.eq.s32.totalorder %s163_s23, 0  ;;  %p177_p9 = scmp.eq.s32.totalorder %s2734_s14, 5 }
  0x1e   : > { %p182_p10 = scmp.ne.s32.totalorder %s3640_s0, %s3636_s29  ;;  %p183_p12 = scmp.eq.s32.totalorder %s2735_s17, 5 }
  0x1f   : > { %s3808_s24 = scalar_select %p164_p7, %s3644_s30, %s166_s21  }
  0x20   : > { %p3810_p11 = por %p177_p9, %p176_p8  ;;  %s86_s26 = sadd.s32 1, %s3656_s8 }
  0x21   : > { %5774 = sst [smem:[#allocation22_spill]] %s3808_s24  ;;  %s81_s27 = ssub.s32 %s79_s18, %s80_s22 }
  0x22   : > { %p3815_p13 = por %p183_p12, %p182_p10  ;;  %s83_s1 = sor.u32 %s82_s19, %s81_s27 }
  0x23   : > { %p95_p0 = por %p94_p4, %p93_p1  ;;  %p84_p2 = scmp.eq.s32.totalorder %s83_s1, 0 }
  0x24   : > { %s213_s14 = sand.u32 1, %s3656_s8   ;;  %p3169_p3 = scmp.lt.s32.totalorder %s3676_s13, 6 }
  0x25   : > { %s3827_s21 = scalar_select %p84_p2, %s3656_s8, %s86_s26  }
  0x26   : > { %s2738_s23 = sshll.u32 %s213_s14, 6  ;;  %p3829_p5 = pnand %p3169_p3, %p95_p0 }
  0x27   : > { %5777 = sst [smem:[#allocation23_spill]] %s3827_s21  ;;  %p2742_p7 = scmp.ge.s32.totalorder %s3676_s13, 1 }
  0x28   : > { %s3153_s18 = scalar_select %p95_p0, [#allocation6], [#allocation11] }
  0x29   : > { %s3154_s22 = scalar_select %p95_p0, %s3672_s12, 0 }
  0x2a   : > { %s5921_s18 = smov (!%p3169_p3, %s3153_s18), [#allocation12]  ;;  %p254_p8 = scmp.lt.s32.totalorder %s3676_s13, 7 }
  0x2b   : > { %s5923_s22 = smov (!%p3169_p3, %s3154_s22), 0  ;;  %s2739_s19 = sshll.u32 %s3668_s11, 4 }
  0x2c   : > { %s218_s16 = sld [smem:[%s5921_s18 + %s5923_s22]]  ;;  %s217_s27 = scalar_lea.vmem [#allocation7], %s2738_s23 }
  0x2d   : > { %s3837_s1 = sshll.u32 %s217_s27, 4  ;;  %p3839_p1 = pnand %p2742_p7, %p254_p8  ;;  %s229_s1 = int_to_ptr.vmem [resolvable:$true] %s3837_s1 }
  0x2e   : > { %s214_s11 = scalar_lea.sflag [#allocation8], %s213_s14  ;;  %p3526_p9 = pneg %p3829_p5 }
  0x32   : > { %s2740_s15 = sshll.u32 %s218_s16, 5 }
  0x33   : > { %s223_s21 = sadd.s32 %s2740_s15, %s2739_s19  ;;  %s3529_s15 = scalar_lea.hbm %s5691_s3, 512 }
  0x34   : > { %s2741_s8 = sshll.u32 %s223_s21, 2 }
  0x35   : > { %s225_s18 = scalar_lea.hbm %s5691_s3, %s2741_s8 }
  0x36   : > { %s226_s22 = sshll.u32 %s225_s18, 4  ;;  %s227_s22 = int_to_ptr.hbm [resolvable:$true] %s226_s22 }
  0x37   : > { %s3522_s30 = sshra.s32 %s227_s22, 4  ;;  %s3523_s30 = int_to_ptr.hbm [resolvable:$true] %s3522_s30 }
  0x38   : > { %s3524_s23 = scalar_lea.hbm %s3523_s30, 64  ;;  %p3530_p0 = scmp.lt.s32.totalorder %s3523_s30, %s5691_s3 }
  0x39   : > { %p3525_p4 = scmp.ne.s32.totalorder %s3523_s30, %s3524_s23  ;;  %p3531_p2 = scmp.lt.s32.totalorder %s3529_s15, %s3524_s23 }
  0x3b   : > { %p3527_p10 = pnand %p3526_p9, %p3525_p4  ;;  %p3532_p3 = por %p3531_p2, %p3530_p0 }
  0x3d   : > { %p3528_p12 = pneg %p3527_p10 }
  0x3f   : > { %p3533_p7 = pnand %p3532_p3, %p3528_p12 }
  0x41   : > { %3536 = shalt.err (!%p3533_p7)
}
  0x42   : > { %s3680_s8 = smov 64   ;;  %s3681_s12 = smov 4  }
  0x43   : > { %3164 = dma.hbm_to_vmem [thread:$0]  (!%p3829_p5), %s227_s22, 1024, %s229_s1, %s214_s11, %s3680_s8, %s3680_s8, %s3681_s12  }
  0x44   : > { %258 = sbr.rel (%p3839_p1) target bundleno = 1397 (0x575), region = 36 }
  0x49   : > { %s260_s24 = sand.u32 1, %s3652_s7  }
  0x4a   : > { %s2743_s14 = sshll.u32 %s260_s24, 6  ;;  %s261_s18 = scalar_lea.sflag [#allocation8], %s260_s24 }
  0x4b   : > { %s3860_s27 = scalar_lea.vmem [#allocation7], %s2743_s14 }
  0x4c   : > { %3627 = dma.done.wait (%p3795_p6), %s261_s18, 1024  }
  0x4d   : > { %3629 = vsyncadd (%p3795_p6), %s261_s18, 4294966272  ;;  %s305_s30 = sand.u32 1, %s3640_s0   ;;  %p316_p5 = scmp.lt.s32.totalorder %s3664_s10, 2 }
  0x4e   : > { %s307_s11 = sld [smem:[#allocation5 + %s3664_s10]]  ;;  %p323_p8 = scmp.lt.s32.totalorder %s3660_s9, 1 }
  0x4f   : > { %s317_s17 = scalar_select %p316_p5, %s3664_s10, 2 }
  0x50   : > { %s324_s16 = scalar_select %p323_p8, %s3660_s9, 1 }
  0x51   : > { %s2852_s1 = sshll.u32 %s317_s17, 8  ;;  %s2748_s20 = sshll.u32 %s317_s17, 1 }
  0x52   : > { %s3874_s23 = scalar_lea.vmem %s5692_s4, %s2852_s1  ;;  %s326_s15 = sadd.s32 %s2748_s20, %s324_s16 }
  0x53   : > { %s3880_s8 = scalar_lea.vmem %s5693_s5, %s326_s15  ;;  %s3889_s26 = scalar_lea.vmem [#allocation10], %s305_s30 }
  0x54   : > { %p308_p6 = scmp.lt.s32.totalorder %s307_s11, 3  ;;  %p2749_p1 = scmp.ne.s32.totalorder %s3660_s9, 0 }
  0x56   : > { %s5925_s11 = smov (!%p308_p6, %s307_s11), 3  ;;  %331 = sbr.rel (%p2749_p1) target bundleno = 342 (0x156), region = 44 }
  0x57   : > { %s2851_s12 = sshll.u32 %s5925_s11, 7 }
  0x58   : > { %s3885_s18 = scalar_lea.vmem %s5690_s2, %s2851_s12 }
  0x5b   : > { %v3078_v0 = vld [vmem:[%s3885_s18 + $0x10] sm:$0xff]   ;;  %v3077_v1 = vld [vmem:[%s3885_s18 + $0x8] sm:$0xff]   ;;  %v2870_v2 = vld [vmem:[%s3885_s18] sm:$0xff]  }
  0x5c   : > { %v3895_v3 = vunpack.c.l.bf16 %v3078_v0  ;;  %v3897_v4 = vunpack.c.l.bf16 %v3077_v1  ;;  %v3899_v5 = vunpack.c.l.bf16 %v2870_v2  ;;  %v3907_v9 = vunpack.c.h.bf16 %v3078_v0  ;;  %v3080_v15 = vld [vmem:[%s3885_s18 + $0x20] sm:$0xff]   ;;  %v3079_v16 = vld [vmem:[%s3885_s18 + $0x18] sm:$0xff]   ;;  %v3081_v23 = vld [vmem:[%s3885_s18 + $0x28] sm:$0xff]  }
  0x5d   : > { %v3909_v10 = vunpack.c.h.bf16 %v3077_v1  ;;  %v3911_v11 = vunpack.c.h.bf16 %v2870_v2  ;;  %v3921_v17 = vunpack.c.l.bf16 %v3080_v15  ;;  %v3923_v18 = vunpack.c.h.bf16 %v3079_v16  ;;  %v3083_v30 = vld [vmem:[%s3885_s18 + $0x38] sm:$0xff]   ;;  %v3082_v31 = vld [vmem:[%s3885_s18 + $0x30] sm:$0xff]   ;;  %v3084_v38 = vld [vmem:[%s3885_s18 + $0x40] sm:$0xff]  }
  0x5e   : > { %v400_v6 = vmul.f32 %v3895_v3, %v3895_v3  ;;  %v398_v7 = vmul.f32 %v3897_v4, %v3897_v4  ;;  %v396_v8 = vmul.f32 %v3899_v5, %v3899_v5  ;;  %v401_v12 = vmul.f32 %v3907_v9, %v3907_v9  ;;  %v3086_v45 = vld [vmem:[%s3885_s18 + $0x50] sm:$0xff]   ;;  %v3085_v46 = vld [vmem:[%s3885_s18 + $0x48] sm:$0xff]   ;;  %v3087_v53 = vld [vmem:[%s3885_s18 + $0x58] sm:$0xff]  }
  0x5f   : > { %v399_v13 = vmul.f32 %v3909_v10, %v3909_v10  ;;  %v397_v14 = vmul.f32 %v3911_v11, %v3911_v11  ;;  %v3925_v19 = vunpack.c.l.bf16 %v3079_v16  ;;  %v404_v20 = vmul.f32 %v3921_v17, %v3921_v17  ;;  %v3089_v60 = vld [vmem:[%s3885_s18 + $0x68] sm:$0xff]   ;;  %v3088_v61 = vld [vmem:[%s3885_s18 + $0x60] sm:$0xff]  }
  0x60   : > { %436 = vadd.xlane.f32.xlu2 %v400_v6  ;;  %432 = vadd.xlane.f32.xlu1 %v398_v7  ;;  %v403_v21 = vmul.f32 %v3923_v18, %v3923_v18  ;;  %v3934_v24 = vunpack.c.h.bf16 %v3081_v23  ;;  %v3936_v25 = vunpack.c.l.bf16 %v3081_v23  ;;  %v3938_v26 = vunpack.c.h.bf16 %v3080_v15  ;;  %v3090_v7 = vld [vmem:[%s3885_s18 + $0x70] sm:$0xff]  }
  0x61   : > { %428 = vadd.xlane.f32.xlu0 %v396_v8  ;;  %v402_v22 = vmul.f32 %v3925_v19, %v3925_v19  ;;  %v3948_v32 = vunpack.c.l.bf16 %v3083_v30  ;;  %v3950_v33 = vunpack.c.h.bf16 %v3082_v31  ;;  %v3952_v34 = vunpack.c.l.bf16 %v3082_v31 }
  0x62   : > { %v407_v27 = vmul.f32 %v3934_v24, %v3934_v24  ;;  %v406_v28 = vmul.f32 %v3936_v25, %v3936_v25  ;;  %v405_v29 = vmul.f32 %v3938_v26, %v3938_v26  ;;  %v3961_v39 = vunpack.c.h.bf16 %v3084_v38 }
  0x63   : > { %v410_v35 = vmul.f32 %v3948_v32, %v3948_v32  ;;  %v409_v36 = vmul.f32 %v3950_v33, %v3950_v33  ;;  %v408_v37 = vmul.f32 %v3952_v34, %v3952_v34  ;;  %v3963_v40 = vunpack.c.l.bf16 %v3084_v38 }
  0x64   : > { %v3965_v41 = vunpack.c.h.bf16 %v3083_v30  ;;  %v413_v42 = vmul.f32 %v3961_v39, %v3961_v39  ;;  %v3975_v47 = vunpack.c.l.bf16 %v3086_v45  ;;  %v3977_v48 = vunpack.c.h.bf16 %v3085_v46 }
  0x65   : > { %v412_v43 = vmul.f32 %v3963_v40, %v3963_v40  ;;  %v3979_v49 = vunpack.c.l.bf16 %v3085_v46  ;;  %v3988_v54 = vunpack.c.h.bf16 %v3087_v53  ;;  %v3990_v55 = vunpack.c.l.bf16 %v3087_v53 }
  0x66   : > { %v411_v44 = vmul.f32 %v3965_v41, %v3965_v41  ;;  %v416_v50 = vmul.f32 %v3975_v47, %v3975_v47  ;;  %v415_v51 = vmul.f32 %v3977_v48, %v3977_v48  ;;  %v3992_v56 = vunpack.c.h.bf16 %v3086_v45 }
  0x67   : > { %v414_v52 = vmul.f32 %v3979_v49, %v3979_v49  ;;  %v419_v57 = vmul.f32 %v3988_v54, %v3988_v54  ;;  %v418_v58 = vmul.f32 %v3990_v55, %v3990_v55  ;;  %v4002_v62 = vunpack.c.l.bf16 %v3089_v60 }
  0x68   : > { %438 = vadd.xlane.f32.xlu2 %v401_v12  ;;  %434 = vadd.xlane.f32.xlu1 %v399_v13  ;;  %v417_v59 = vmul.f32 %v3992_v56, %v3992_v56  ;;  %v4004_v63 = vunpack.c.h.bf16 %v3088_v61  ;;  %v4006_v0 = vunpack.c.l.bf16 %v3088_v61  ;;  %v4015_v8 = vunpack.c.h.bf16 %v3090_v7 }
  0x69   : > { %430 = vadd.xlane.f32.xlu0 %v397_v14  ;;  %v422_v1 = vmul.f32 %v4002_v62, %v4002_v62  ;;  %v4017_v12 = vunpack.c.l.bf16 %v3090_v7  ;;  %v4019_v13 = vunpack.c.h.bf16 %v3089_v60 }
  0x6a   : > { %v421_v2 = vmul.f32 %v4004_v63, %v4004_v63  ;;  %v420_v6 = vmul.f32 %v4006_v0, %v4006_v0  ;;  %v425_v14 = vmul.f32 %v4015_v8, %v4015_v8 }
  0x6b   : > { %v424_v15 = vmul.f32 %v4017_v12, %v4017_v12  ;;  %v423_v16 = vmul.f32 %v4019_v13, %v4019_v13 }
  0x70   : > { %444 = vadd.xlane.f32.xlu2 %v404_v20  ;;  %442 = vadd.xlane.f32.xlu1 %v403_v21  ;;  %v3091_v20 = vld [vmem:[%s3885_s18 + $0x78] sm:$0xff]  }
  0x71   : > { %440 = vadd.xlane.f32.xlu0 %v402_v22  ;;  %v4028_v21 = vunpack.c.h.bf16 %v3091_v20  ;;  %v4030_v22 = vunpack.c.l.bf16 %v3091_v20 }
  0x73   : > { %v427_v23 = vmul.f32 %v4028_v21, %v4028_v21 }
  0x78   : > { %450 = vadd.xlane.f32.xlu2 %v407_v27  ;;  %448 = vadd.xlane.f32.xlu1 %v406_v28  ;;  %v426_v27 = vmul.f32 %v4030_v22, %v4030_v22 }
  0x79   : > { %446 = vadd.xlane.f32.xlu0 %v405_v29 }
  0x80   : > { %456 = vadd.xlane.f32.xlu2 %v410_v35  ;;  %454 = vadd.xlane.f32.xlu1 %v409_v36 }
  0x81   : > { %452 = vadd.xlane.f32.xlu0 %v408_v37 }
  0x88   : > { %462 = vadd.xlane.f32.xlu2 %v413_v42  ;;  %460 = vadd.xlane.f32.xlu1 %v412_v43 }
  0x89   : > { %458 = vadd.xlane.f32.xlu0 %v411_v44 }
  0x90   : > { %468 = vadd.xlane.f32.xlu2 %v416_v50  ;;  %466 = vadd.xlane.f32.xlu1 %v415_v51 }
  0x91   : > { %464 = vadd.xlane.f32.xlu0 %v414_v52 }
  0x98   : > { %474 = vadd.xlane.f32.xlu2 %v419_v57  ;;  %472 = vadd.xlane.f32.xlu1 %v418_v58 }
  0x99   : > { %470 = vadd.xlane.f32.xlu0 %v417_v59 }
  0xa0   : > { %480 = vadd.xlane.f32.xlu2 %v422_v1  ;;  %478 = vadd.xlane.f32.xlu1 %v421_v2 }
  0xa1   : > { %476 = vadd.xlane.f32.xlu0 %v420_v6 }
  0xa8   : > { %486 = vadd.xlane.f32.xlu2 %v425_v14  ;;  %484 = vadd.xlane.f32.xlu1 %v424_v15 }
  0xa9   : > { %482 = vadd.xlane.f32.xlu0 %v423_v16 }
  0xb0   : > { %490 = vadd.xlane.f32.xlu1 %v427_v23 }
  0xb1   : > { %488 = vadd.xlane.f32.xlu0 %v426_v27 }
  0xd3   : > { %v437_v28 = vpop.xlane.xlu2 %436  ;;  %v433_v29 = vpop.xlane.xlu1 %432 }
  0xd4   : > { %v496_v30 = vmax.f32 %v437_v28, 1e-16  ;;  %v494_v31 = vmax.f32 %v433_v29, 1e-16  ;;  %v429_v35 = vpop.xlane.xlu0 %428 }
  0xd5   : > { %v4036_v36 = vmax.f32 %v429_v35, 1e-16 }
  0xd6   : > { %3266 = vrsqrt.f32 %v496_v30  ;;  %vm570_vm0 = vweird.f32 %v496_v30  ;;  %vm550_vm2 = vweird.f32 %v494_v31 }
  0xd7   : > { %3268 = vrsqrt.f32 %v494_v31  ;;  %vm530_vm5 = vweird.f32 %v4036_v36 }
  0xd8   : > { %3270 = vrsqrt.f32 %v4036_v36 }
  0xdb   : > { %v439_v37 = vpop.xlane.xlu2 %438  ;;  %v435_v38 = vpop.xlane.xlu1 %434 }
  0xdc   : > { %v3267_v42 = vpop.eup %3266  ;;  %v4039_v43 = vmax.f32 %v439_v37, 1e-16  ;;  %v4041_v44 = vmax.f32 %v435_v38, 1e-16  ;;  %v431_v45 = vpop.xlane.xlu0 %430 }
  0xdd   : > { %v3269_v46 = vpop.eup %3268  ;;  %v565_v50 = vmul.f32 %v3267_v42, %v496_v30  ;;  %v4043_v51 = vmax.f32 %v431_v45, 1e-16  ;;  %vm571_vm1 = vweird.f32 %v3267_v42 }
  0xde   : > { %v4045_v52 = vpop.eup %3270  ;;  %v545_v53 = vmul.f32 %v3269_v46, %v494_v31  ;;  %3272 = vrsqrt.f32 %v4039_v43  ;;  %vm551_vm3 = vweird.f32 %v3269_v46  ;;  %vm4058_vm4 = vmor %vm570_vm0, %vm571_vm1  ;;  %vm580_vm8 = vweird.f32 %v4039_v43 }
  0xdf   : > { %v566_v57 = vmul.f32 %v3267_v42, %v565_v50  ;;  %v525_v58 = vmul.f32 %v4045_v52, %v4036_v36  ;;  %3274 = vrsqrt.f32 %v4041_v44  ;;  %vm4071_vm6 = vmor %vm550_vm2, %vm551_vm3  ;;  %vm531_vm7 = vweird.f32 %v4045_v52 }
  0xe0   : > { %v546_v59 = vmul.f32 %v3269_v46, %v545_v53  ;;  %3276 = vrsqrt.f32 %v4043_v51  ;;  %vm560_vm9 = vweird.f32 %v4041_v44  ;;  %vm540_vm11 = vweird.f32 %v4043_v51  ;;  %vm4089_vm13 = vmor %vm530_vm5, %vm531_vm7 }
  0xe1   : > { %v567_v60 = vmul.f32 0.5, %v566_v57  ;;  %v526_v61 = vmul.f32 %v4045_v52, %v525_v58 }
  0xe2   : > { %v547_v1 = vmul.f32 0.5, %v546_v59 }
  0xe3   : > { %v568_v2 = vsub.f32 1.5, %v567_v60  ;;  %v527_v6 = vmul.f32 0.5, %v526_v61  ;;  %v445_v7 = vpop.xlane.xlu2 %444  ;;  %v443_v14 = vpop.xlane.xlu1 %442 }
  0xe4   : > { %v3273_v15 = vpop.eup %3272  ;;  %v548_v16 = vsub.f32 1.5, %v547_v1  ;;  %v4053_v20 = vmax.f32 %v445_v7, 1e-16  ;;  %v441_v23 = vpop.xlane.xlu0 %440  ;;  %v4068_v59 = vmax.f32 %v443_v14, 1e-16 }
  0xe5   : > { %v3275_v27 = vpop.eup %3274  ;;  %v569_v28 = vmul.f32 %v3267_v42, %v568_v2  ;;  %v528_v29 = vsub.f32 1.5, %v527_v6  ;;  %v575_v35 = vmul.f32 %v3273_v15, %v4039_v43  ;;  %vm581_vm10 = vweird.f32 %v3273_v15 }
  0xe6   : > { %v3277_v37 = vpop.eup %3276  ;;  %v549_v45 = vmul.f32 %v3269_v46, %v548_v16  ;;  %v555_v50 = vmul.f32 %v3275_v27, %v4041_v44  ;;  %3278 = vrsqrt.f32 %v4053_v20  ;;  %vm561_vm12 = vweird.f32 %v3275_v27  ;;  %vm582_vm15 = vmor %vm580_vm8, %vm581_vm10 }
  0xe7   : > { %v573_v53 = vsel %vm4058_vm4, %v3267_v42, %v569_v28  ;;  %v576_v57 = vmul.f32 %v3273_v15, %v575_v35  ;;  %v535_v58 = vmul.f32 %v3277_v37, %v4043_v51  ;;  %v529_v61 = vmul.f32 %v4045_v52, %v528_v29  ;;  %vm562_vm0 = vmor %vm560_vm9, %vm561_vm12 }
  0xe8   : > { %v556_v60 = vmul.f32 %v3275_v27, %v555_v50  ;;  %v553_v42 = vsel %vm4071_vm6, %v3269_v46, %v549_v45  ;;  %v848_v6 = vmul.f32 20.0, %v573_v53  ;;  %3280 = vrsqrt.f32 %v4068_v59 }
  0xe9   : > { %v577_v1 = vmul.f32 0.5, %v576_v57  ;;  %v536_v2 = vmul.f32 %v3277_v37, %v535_v58  ;;  %v846_v38 = vmul.f32 20.0, %v553_v42  ;;  %vm541_vm14 = vweird.f32 %v3277_v37 }
  0xea   : > { %v557_v31 = vmul.f32 0.5, %v556_v60  ;;  %v4093_v45 = vmax.f32 %v441_v23, 1e-16  ;;  %v533_v53 = vsel %vm4089_vm13, %v4045_v52, %v529_v61  ;;  %v880_v36 = vmul.f32 %v3895_v3, %v848_v6  ;;  %vm542_vm1 = vmor %vm540_vm11, %vm541_vm14 }
  0xeb   : > { %v578_v7 = vsub.f32 1.5, %v577_v1  ;;  %v537_v14 = vmul.f32 0.5, %v536_v2  ;;  %v451_v16 = vpop.xlane.xlu2 %450  ;;  %v449_v28 = vpop.xlane.xlu1 %448  ;;  %v844_v3 = vmul.f32 20.0, %v533_v53  ;;  %vm610_vm2 = vweird.f32 %v4053_v20 }
  0xec   : > { %v4083_v35 = vpop.eup %3278  ;;  %v558_v29 = vsub.f32 1.5, %v557_v31  ;;  %v447_v50 = vpop.xlane.xlu0 %446  ;;  %3282 = vrsqrt.f32 %v4093_v45  ;;  %v4105_v23 = vmax.f32 %v451_v16, 1e-16  ;;  %v4111_v1 = vmax.f32 %v449_v28, 1e-16 }
  0xed   : > { %v579_v57 = vmul.f32 %v3273_v15, %v578_v7  ;;  %v538_v58 = vsub.f32 1.5, %v537_v14  ;;  %v605_v30 = vmul.f32 %v4083_v35, %v4053_v20  ;;  %v878_v51 = vmul.f32 %v3897_v4, %v846_v38 }
  0xee   : > { %v559_v60 = vmul.f32 %v3275_v27, %v558_v29  ;;  %3284 = vrsqrt.f32 %v4105_v23  ;;  %v4117_v43 = vpop.eup %3280  ;;  %v4126_v46 = vmax.f32 %v447_v50, 1e-16  ;;  %vm600_vm3 = vweird.f32 %v4068_v59 }
  0xef   : > { %v583_v42 = vsel %vm582_vm15, %v3273_v15, %v579_v57  ;;  %v539_v52 = vmul.f32 %v3277_v37, %v538_v58  ;;  %v606_v61 = vmul.f32 %v4083_v35, %v605_v30  ;;  %3286 = vrsqrt.f32 %v4111_v1 }
  0xf0   : > { %v849_v2 = vmul.f32 20.0, %v583_v42  ;;  %v563_v6 = vsel %vm562_vm0, %v3275_v27, %v559_v60  ;;  %v595_v27 = vmul.f32 %v4117_v43, %v4068_v59  ;;  %v876_v57 = vmul.f32 %v3899_v5, %v844_v3 }
  0xf1   : > { %v847_v15 = vmul.f32 20.0, %v563_v6  ;;  %v543_v31 = vsel %vm542_vm1, %v3277_v37, %v539_v52  ;;  %v607_v44 = vmul.f32 0.5, %v606_v61  ;;  %vm611_vm4 = vweird.f32 %v4083_v35 }
  0xf2   : > { %v881_v7 = vmul.f32 %v3907_v9, %v849_v2  ;;  %v845_v14 = vmul.f32 20.0, %v543_v31  ;;  %v4128_v53 = vpop.eup %3282  ;;  %v596_v30 = vmul.f32 %v4117_v43, %v595_v27  ;;  %3288 = vrsqrt.f32 %v4126_v46  ;;  %vm4157_vm9 = vmor %vm610_vm2, %vm611_vm4 }
  0xf3   : > { %v879_v16 = vmul.f32 %v3909_v10, %v847_v15  ;;  %v608_v28 = vsub.f32 1.5, %v607_v44  ;;  %v457_v29 = vpop.xlane.xlu2 %456  ;;  %v455_v37 = vpop.xlane.xlu1 %454  ;;  %v585_v4 = vmul.f32 %v4128_v53, %v4093_v45  ;;  %vm590_vm5 = vweird.f32 %v4093_v45 }
  0xf4   : > { %v2946_v9 = vpack.c.bf16 %v881_v7, %v880_v36  ;;  %v877_v58 = vmul.f32 %v3911_v11, %v845_v14  ;;  %v453_v60 = vpop.xlane.xlu0 %452  ;;  %v4136_v10 = vmax.f32 %v457_v29, 1e-16  ;;  %v4138_v38 = vpop.eup %3284  ;;  %v597_v5 = vmul.f32 0.5, %v596_v30 }
  0xf5   : > { %v2941_v42 = vpack.c.bf16 %v879_v16, %v878_v51  ;;  %v3287_v11 = vpop.eup %3286  ;;  %v609_v36 = vmul.f32 %v4083_v35, %v608_v28  ;;  %v586_v52 = vmul.f32 %v4128_v53, %v585_v4  ;;  %v635_v61 = vmul.f32 %v4138_v38, %v4105_v23 }
  0xf6   : > { %3093 = vst [vmem:[#allocation2 + $0x10] sm:$0xff] %v2946_v9   ;;  %v2936_v50 = vpack.c.bf16 %v877_v58, %v876_v57  ;;  %v598_v3 = vsub.f32 1.5, %v597_v5  ;;  %vm601_vm6 = vweird.f32 %v4117_v43  ;;  %vm640_vm7 = vweird.f32 %v4105_v23 }
  0xf7   : > { %3092 = vst [vmem:[#allocation2 + $0x8] sm:$0xff] %v2941_v42   ;;  %v625_v2 = vmul.f32 %v3287_v11, %v4111_v1  ;;  %v587_v6 = vmul.f32 0.5, %v586_v52  ;;  %v636_v15 = vmul.f32 %v4138_v38, %v635_v61  ;;  %vm630_vm8 = vweird.f32 %v4111_v1  ;;  %vm602_vm11 = vmor %vm600_vm3, %vm601_vm6 }
  0xf8   : > { %2937 = vst [vmem:[#allocation2] sm:$0xff] %v2936_v50   ;;  %3290 = vrsqrt.f32 %v4136_v10  ;;  %v599_v44 = vmul.f32 %v4117_v43, %v598_v3  ;;  %vm591_vm10 = vweird.f32 %v4128_v53  ;;  %v4163_v14 = vmax.f32 %v455_v37, 1e-16  ;;  %v3289_v57 = vpop.eup %3288 }
  0xf9   : > { %v626_v7 = vmul.f32 %v3287_v11, %v625_v2  ;;  %v613_v27 = vsel %vm4157_vm9, %v4083_v35, %v609_v36  ;;  %v588_v51 = vsub.f32 1.5, %v587_v6  ;;  %v637_v20 = vmul.f32 0.5, %v636_v15  ;;  %vm592_vm13 = vmor %vm590_vm5, %vm591_vm10 }
  0xfa   : > { %v4170_v16 = vmax.f32 %v453_v60, 1e-16  ;;  %v603_v9 = vsel %vm602_vm11, %v4117_v43, %v599_v44  ;;  %vm641_vm12 = vweird.f32 %v4138_v38  ;;  %3292 = vrsqrt.f32 %v4163_v14 }
  0xfb   : > { %v463_v28 = vpop.xlane.xlu2 %462  ;;  %v461_v29 = vpop.xlane.xlu1 %460  ;;  %v627_v37 = vmul.f32 0.5, %v626_v7  ;;  %v851_v30 = vmul.f32 20.0, %v603_v9  ;;  %v589_v35 = vmul.f32 %v4128_v53, %v588_v51  ;;  %v638_v59 = vsub.f32 1.5, %v637_v20  ;;  %vm642_vm0 = vmor %vm640_vm7, %vm641_vm12 }
  0xfc   : > { %v459_v58 = vpop.xlane.xlu0 %458  ;;  %v615_v42 = vmul.f32 %v3289_v57, %v4126_v46  ;;  %vm631_vm14 = vweird.f32 %v3287_v11  ;;  %vm620_vm15 = vweird.f32 %v4126_v46  ;;  %3294 = vrsqrt.f32 %v4170_v16 }
  0xfd   : > { %v628_v60 = vsub.f32 1.5, %v627_v37  ;;  %v852_v4 = vmul.f32 20.0, %v613_v27  ;;  %v593_v50 = vsel %vm592_vm13, %v4128_v53, %v589_v35  ;;  %v639_v5 = vmul.f32 %v4138_v38, %v638_v59  ;;  %vm632_vm1 = vmor %vm630_vm8, %vm631_vm14 }
  0xfe   : > { %v4183_v43 = vpop.eup %3290  ;;  %v616_v36 = vmul.f32 %v3289_v57, %v615_v42  ;;  %v883_v52 = vmul.f32 %v3923_v18, %v851_v30  ;;  %v850_v61 = vmul.f32 20.0, %v593_v50  ;;  %v4197_v6 = vmax.f32 %v463_v28, 1e-16 }
  0xff   : > { %v629_v45 = vmul.f32 %v3287_v11, %v628_v60  ;;  %v665_v3 = vmul.f32 %v4183_v43, %v4136_v10  ;;  %v643_v2 = vsel %vm642_vm0, %v4138_v38, %v639_v5  ;;  %v4199_v15 = vmax.f32 %v461_v29, 1e-16 }
 0x100   : > { %v617_v53 = vmul.f32 0.5, %v616_v36  ;;  %v4201_v18 = vpop.eup %3292  ;;  %v882_v31 = vmul.f32 %v3925_v19, %v850_v61  ;;  %v855_v23 = vmul.f32 20.0, %v643_v2  ;;  %vm621_vm2 = vweird.f32 %v3289_v57 }
 0x101   : > { %v633_v44 = vsel %vm632_vm1, %v3287_v11, %v629_v45  ;;  %v666_v7 = vmul.f32 %v4183_v43, %v665_v3  ;;  %v655_v1 = vmul.f32 %v4201_v18, %v4163_v14  ;;  %3296 = vrsqrt.f32 %v4197_v6  ;;  %vm622_vm3 = vmor %vm620_vm15, %vm621_vm2 }
 0x102   : > { %v854_v27 = vmul.f32 20.0, %v633_v44  ;;  %v618_v51 = vsub.f32 1.5, %v617_v53  ;;  %v3295_v28 = vpop.eup %3294  ;;  %v2951_v9 = vpack.c.bf16 %v883_v52, %v882_v31  ;;  %v887_v29 = vmul.f32 %v3934_v24, %v855_v23 }
 0x103   : > { %v469_v38 = vpop.xlane.xlu2 %468  ;;  %v467_v20 = vpop.xlane.xlu1 %466  ;;  %v667_v37 = vmul.f32 0.5, %v666_v7  ;;  %v656_v30 = vmul.f32 %v4201_v18, %v655_v1  ;;  %v645_v35 = vmul.f32 %v3295_v28, %v4170_v16  ;;  %vm670_vm4 = vweird.f32 %v4136_v10 }
 0x104   : > { %v886_v19 = vmul.f32 %v3936_v25, %v854_v27  ;;  %v619_v11 = vmul.f32 %v3289_v57, %v618_v51  ;;  %v465_v59 = vpop.xlane.xlu0 %464  ;;  %3094 = vst [vmem:[#allocation2 + $0x18] sm:$0xff] %v2951_v9   ;;  %3298 = vrsqrt.f32 %v4199_v15  ;;  %v884_v5 = vmul.f32 %v3921_v17, %v852_v4 }
 0x105   : > { %v668_v42 = vsub.f32 1.5, %v667_v37  ;;  %v657_v50 = vmul.f32 0.5, %v656_v30  ;;  %v646_v25 = vmul.f32 %v3295_v28, %v645_v35  ;;  %vm660_vm5 = vweird.f32 %v4163_v14 }
 0x106   : > { %v2961_v24 = vpack.c.bf16 %v887_v29, %v886_v19  ;;  %v623_v60 = vsel %vm622_vm3, %v3289_v57, %v619_v11  ;;  %v4219_v52 = vmax.f32 %v459_v58, 1e-16  ;;  %vm661_vm6 = vweird.f32 %v4201_v18 }
 0x107   : > { %v853_v36 = vmul.f32 20.0, %v623_v60  ;;  %v658_v61 = vsub.f32 1.5, %v657_v50  ;;  %v647_v46 = vmul.f32 0.5, %v646_v25  ;;  %v4222_v45 = vmax.f32 %v469_v38, 1e-16  ;;  %v4224_v3 = vpop.eup %3296  ;;  %vm662_vm9 = vmor %vm660_vm5, %vm661_vm6 }
 0x108   : > { %3096 = vst [vmem:[#allocation2 + $0x28] sm:$0xff] %v2961_v24   ;;  %v669_v2 = vmul.f32 %v4183_v43, %v668_v42  ;;  %vm671_vm7 = vweird.f32 %v4183_v43  ;;  %3300 = vrsqrt.f32 %v4219_v52  ;;  %vm651_vm8 = vweird.f32 %v3295_v28 }
 0x109   : > { %v885_v57 = vmul.f32 %v3938_v26, %v853_v36  ;;  %v659_v17 = vmul.f32 %v4201_v18, %v658_v61  ;;  %v648_v58 = vsub.f32 1.5, %v647_v46  ;;  %v695_v4 = vmul.f32 %v4224_v3, %v4197_v6  ;;  %vm4243_vm11 = vmor %vm670_vm4, %vm671_vm7 }
 0x10a   : > { %v4233_v23 = vpop.eup %3298  ;;  %vm650_vm10 = vweird.f32 %v4170_v16  ;;  %3302 = vrsqrt.f32 %v4222_v45  ;;  %vm700_vm12 = vweird.f32 %v4197_v6  ;;  %v673_v14 = vsel %vm4243_vm11, %v4183_v43, %v669_v2 }
 0x10b   : > { %v475_v53 = vpop.xlane.xlu2 %474  ;;  %v473_v31 = vpop.xlane.xlu1 %472  ;;  %v2956_v44 = vpack.c.bf16 %v885_v57, %v884_v5  ;;  %v663_v7 = vsel %vm662_vm9, %v4201_v18, %v659_v17  ;;  %v649_v27 = vmul.f32 %v3295_v28, %v648_v58  ;;  %v696_v51 = vmul.f32 %v4224_v3, %v695_v4  ;;  %vm652_vm13 = vmor %vm650_vm10, %vm651_vm8 }
 0x10c   : > { %v857_v16 = vmul.f32 20.0, %v663_v7  ;;  %v685_v10 = vmul.f32 %v4233_v23, %v4199_v15  ;;  %v4256_v1 = vmax.f32 %v467_v20, 1e-16  ;;  %v4258_v9 = vmax.f32 %v465_v59, 1e-16  ;;  %v471_v37 = vpop.xlane.xlu0 %470 }
 0x10d   : > { %3095 = vst [vmem:[#allocation2 + $0x20] sm:$0xff] %v2956_v44   ;;  %v653_v38 = vsel %vm652_vm13, %v3295_v28, %v649_v27  ;;  %v697_v18 = vmul.f32 0.5, %v696_v51  ;;  %v4260_v29 = vmax.f32 %v475_v53, 1e-16  ;;  %vm701_vm14 = vweird.f32 %v4224_v3 }
 0x10e   : > { %v3301_v19 = vpop.eup %3300  ;;  %v889_v11 = vmul.f32 %v3950_v33, %v857_v16  ;;  %v856_v30 = vmul.f32 20.0, %v653_v38  ;;  %v686_v43 = vmul.f32 %v4233_v23, %v685_v10  ;;  %3304 = vrsqrt.f32 %v4256_v1  ;;  %vm702_vm1 = vmor %vm700_vm12, %vm701_vm14 }
 0x10f   : > { %v698_v35 = vsub.f32 1.5, %v697_v18  ;;  %vm690_vm15 = vweird.f32 %v4199_v15  ;;  %v675_v20 = vmul.f32 %v3301_v19, %v4219_v52  ;;  %v858_v59 = vmul.f32 20.0, %v673_v14 }
 0x110   : > { %v4268_v28 = vpop.eup %3302  ;;  %v888_v42 = vmul.f32 %v3952_v34, %v856_v30  ;;  %v687_v24 = vmul.f32 0.5, %v686_v43  ;;  %3306 = vrsqrt.f32 %v4258_v9  ;;  %vm680_vm0 = vweird.f32 %v4219_v52 }
 0x111   : > { %v699_v33 = vmul.f32 %v4224_v3, %v698_v35  ;;  %v676_v60 = vmul.f32 %v3301_v19, %v675_v20  ;;  %v725_v50 = vmul.f32 %v4268_v28, %v4222_v45  ;;  %vm691_vm2 = vweird.f32 %v4233_v23 }
 0x112   : > { %v2966_v25 = vpack.c.bf16 %v889_v11, %v888_v42  ;;  %v688_v5 = vsub.f32 1.5, %v687_v24  ;;  %vm730_vm3 = vweird.f32 %v4222_v45  ;;  %3308 = vrsqrt.f32 %v4260_v29  ;;  %vm692_vm4 = vmor %vm690_vm15, %vm691_vm2 }
 0x113   : > { %v703_v34 = vsel %vm702_vm1, %v4224_v3, %v699_v33  ;;  %v677_v36 = vmul.f32 0.5, %v676_v60  ;;  %v726_v61 = vmul.f32 %v4268_v28, %v725_v50  ;;  %v4283_v46 = vmax.f32 %v473_v31, 1e-16  ;;  %v481_v57 = vpop.xlane.xlu2 %480  ;;  %v4285_v2 = vpop.xlane.xlu1 %478 }
 0x114   : > { %v3305_v17 = vpop.eup %3304  ;;  %v890_v6 = vmul.f32 %v3948_v32, %v858_v59  ;;  %3097 = vst [vmem:[#allocation2 + $0x30] sm:$0xff] %v2966_v25   ;;  %v861_v58 = vmul.f32 20.0, %v703_v34  ;;  %v689_v4 = vmul.f32 %v4233_v23, %v688_v5  ;;  %v4289_v53 = vmax.f32 %v471_v37, 1e-16  ;;  %v477_v10 = vpop.xlane.xlu0 %476 }
 0x115   : > { %v678_v3 = vsub.f32 1.5, %v677_v36  ;;  %vm681_vm5 = vweird.f32 %v3301_v19  ;;  %v727_v31 = vmul.f32 0.5, %v726_v61  ;;  %v715_v44 = vmul.f32 %v3305_v17, %v4256_v1 }
 0x116   : > { %v4296_v26 = vpop.eup %3306  ;;  %v893_v32 = vmul.f32 %v3961_v39, %v861_v58  ;;  %v693_v7 = vsel %vm692_vm4, %v4233_v23, %v689_v4  ;;  %3310 = vrsqrt.f32 %v4283_v46  ;;  %v4301_v27 = vmax.f32 %v481_v57, 1e-16  ;;  %vm682_vm6 = vmor %vm680_vm0, %vm681_vm5 }
 0x117   : > { %v860_v51 = vmul.f32 20.0, %v693_v7  ;;  %v679_v14 = vmul.f32 %v3301_v19, %v678_v3  ;;  %v728_v16 = vsub.f32 1.5, %v727_v31  ;;  %v716_v15 = vmul.f32 %v3305_v17, %v715_v44 }
 0x118   : > { %v4303_v38 = vpop.eup %3308  ;;  %vm720_vm7 = vweird.f32 %v4256_v1  ;;  %v705_v39 = vmul.f32 %v4296_v26, %v4258_v9  ;;  %vm710_vm8 = vweird.f32 %v4258_v9  ;;  %3312 = vrsqrt.f32 %v4289_v53 }
 0x119   : > { %v892_v23 = vmul.f32 %v3963_v40, %v860_v51  ;;  %v683_v18 = vsel %vm682_vm6, %v3301_v19, %v679_v14  ;;  %vm731_vm9 = vweird.f32 %v4268_v28  ;;  %v717_v37 = vmul.f32 0.5, %v716_v15 }
 0x11a   : > { %v859_v11 = vmul.f32 20.0, %v683_v18  ;;  %vm721_vm10 = vweird.f32 %v3305_v17  ;;  %v706_v52 = vmul.f32 %v4296_v26, %v705_v39  ;;  %v755_v30 = vmul.f32 %v4303_v38, %v4260_v29  ;;  %vm4326_vm12 = vmor %vm730_vm3, %vm731_vm9 }
 0x11b   : > { %v2976_v43 = vpack.c.bf16 %v893_v32, %v892_v23  ;;  %v729_v35 = vmul.f32 %v4268_v28, %v728_v16  ;;  %v718_v20 = vsub.f32 1.5, %v717_v37  ;;  %3314 = vrsqrt.f32 %v4301_v27  ;;  %vm722_vm15 = vmor %vm720_vm7, %vm721_vm10  ;;  %v487_v31 = vpop.xlane.xlu2 %486 }
 0x11c   : > { %v3311_v59 = vpop.eup %3310  ;;  %v891_v40 = vmul.f32 %v3965_v41, %v859_v11  ;;  %v707_v19 = vmul.f32 0.5, %v706_v52  ;;  %v756_v42 = vmul.f32 %v4303_v38, %v755_v30  ;;  %vm760_vm11 = vweird.f32 %v4260_v29  ;;  %v485_v41 = vpop.xlane.xlu1 %484 }
 0x11d   : > { %3099 = vst [vmem:[#allocation2 + $0x40] sm:$0xff] %v2976_v43   ;;  %v719_v33 = vmul.f32 %v3305_v17, %v718_v20  ;;  %vm711_vm13 = vweird.f32 %v4296_v26  ;;  %v745_v60 = vmul.f32 %v3311_v59, %v4283_v46  ;;  %vm750_vm14 = vweird.f32 %v4283_v46  ;;  %v483_v44 = vpop.xlane.xlu0 %482 }
 0x11e   : > { %v3313_v50 = vpop.eup %3312  ;;  %v2971_v25 = vpack.c.bf16 %v891_v40, %v890_v6  ;;  %v708_v5 = vsub.f32 1.5, %v707_v19  ;;  %v757_v45 = vmul.f32 0.5, %v756_v42  ;;  %vm761_vm0 = vweird.f32 %v4303_v38  ;;  %vm712_vm1 = vmor %vm710_vm8, %vm711_vm13 }
 0x11f   : > { %v733_v34 = vsel %vm4326_vm12, %v4268_v28, %v729_v35  ;;  %v723_v36 = vsel %vm722_vm15, %v3305_v17, %v719_v33  ;;  %v746_v61 = vmul.f32 %v3311_v59, %v745_v60  ;;  %v735_v57 = vmul.f32 %v3313_v50, %v4289_v53  ;;  %vm762_vm4 = vmor %vm760_vm11, %vm761_vm0 }
 0x120   : > { %3098 = vst [vmem:[#allocation2 + $0x38] sm:$0xff] %v2971_v25   ;;  %v863_v58 = vmul.f32 20.0, %v723_v36  ;;  %v709_v6 = vmul.f32 %v4296_v26, %v708_v5  ;;  %v758_v4 = vsub.f32 1.5, %v757_v45  ;;  %v4343_v1 = vmax.f32 %v4285_v2, 1e-16 }
 0x121   : > { %v4345_v3 = vpop.eup %3314  ;;  %v747_v28 = vmul.f32 0.5, %v746_v61  ;;  %vm751_vm2 = vweird.f32 %v3311_v59  ;;  %v736_v17 = vmul.f32 %v3313_v50, %v735_v57  ;;  %vm741_vm3 = vweird.f32 %v3313_v50 }
 0x122   : > { %v713_v32 = vsel %vm712_vm1, %v4296_v26, %v709_v6  ;;  %v759_v7 = vmul.f32 %v4303_v38, %v758_v4  ;;  %v785_v2 = vmul.f32 %v4345_v3, %v4301_v27  ;;  %v4355_v51 = vmax.f32 %v477_v10, 1e-16  ;;  %vm752_vm5 = vmor %vm750_vm14, %vm751_vm2 }
 0x123   : > { %v895_v14 = vmul.f32 %v3977_v48, %v863_v58  ;;  %v862_v16 = vmul.f32 20.0, %v713_v32  ;;  %v748_v9 = vsub.f32 1.5, %v747_v28  ;;  %v737_v15 = vmul.f32 0.5, %v736_v17 }
 0x124   : > { %v763_v39 = vsel %vm762_vm4, %v4303_v38, %v759_v7  ;;  %v786_v26 = vmul.f32 %v4345_v3, %v785_v2  ;;  %3316 = vrsqrt.f32 %v4343_v1  ;;  %v4365_v23 = vmax.f32 %v487_v31, 1e-16  ;;  %v491_v43 = vpop.xlane.xlu1 %490 }
 0x125   : > { %v894_v10 = vmul.f32 %v3979_v49, %v862_v16  ;;  %v867_v18 = vmul.f32 20.0, %v763_v39  ;;  %v749_v48 = vmul.f32 %v3311_v59, %v748_v9  ;;  %v738_v37 = vsub.f32 1.5, %v737_v15  ;;  %v489_v33 = vpop.xlane.xlu0 %488 }
 0x126   : > { %vm740_vm6 = vweird.f32 %v4289_v53  ;;  %v787_v29 = vmul.f32 0.5, %v786_v26  ;;  %3318 = vrsqrt.f32 %v4355_v51  ;;  %v864_v38 = vmul.f32 20.0, %v733_v34 }
 0x127   : > { %v2981_v11 = vpack.c.bf16 %v895_v14, %v894_v10  ;;  %v753_v52 = vsel %vm752_vm5, %v3311_v59, %v749_v48  ;;  %v739_v30 = vmul.f32 %v3313_v50, %v738_v37  ;;  %v899_v35 = vmul.f32 %v3988_v54, %v867_v18  ;;  %vm742_vm7 = vmor %vm740_vm6, %vm741_vm3 }
 0x128   : > { %v866_v49 = vmul.f32 20.0, %v753_v52  ;;  %3320 = vrsqrt.f32 %v4365_v23  ;;  %v4376_v20 = vmax.f32 %v485_v41, 1e-16  ;;  %v788_v53 = vsub.f32 1.5, %v787_v29 }
 0x129   : > { %3100 = vst [vmem:[#allocation2 + $0x48] sm:$0xff] %v2981_v11   ;;  %v743_v46 = vsel %vm742_vm7, %v3313_v50, %v739_v30  ;;  %v4378_v40 = vmax.f32 %v483_v44, 1e-16  ;;  %v4384_v54 = vmax.f32 %v491_v43, 1e-16  ;;  %vm790_vm8 = vweird.f32 %v4301_v27 }
 0x12a   : > { %v4380_v19 = vpop.eup %3316  ;;  %v898_v59 = vmul.f32 %v3990_v55, %v866_v49  ;;  %v865_v42 = vmul.f32 20.0, %v743_v46  ;;  %3322 = vrsqrt.f32 %v4376_v20  ;;  %v896_v41 = vmul.f32 %v3975_v47, %v864_v38 }
 0x12b   : > { %v775_v24 = vmul.f32 %v4380_v19, %v4343_v1  ;;  %3324 = vrsqrt.f32 %v4378_v40  ;;  %vm791_vm9 = vweird.f32 %v4345_v3  ;;  %vm780_vm10 = vweird.f32 %v4343_v1 }
 0x12c   : > { %v4390_v60 = vpop.eup %3318  ;;  %v2991_v50 = vpack.c.bf16 %v899_v35, %v898_v59  ;;  %v897_v55 = vmul.f32 %v3992_v56, %v865_v42  ;;  %vm972_vm11 = vcmask 7168   ;;  %v789_v36 = vmul.f32 %v4345_v3, %v788_v53  ;;  %vm4420_vm15 = vmor %vm790_vm8, %vm791_vm9 }
 0x12d   : > { %v776_v25 = vmul.f32 %v4380_v19, %v775_v24  ;;  %v765_v5 = vmul.f32 %v4390_v60, %v4355_v51  ;;  %3326 = vrsqrt.f32 %v4384_v54  ;;  %v4403_v47 = vmax.f32 %v489_v33, 1e-16 }
 0x12e   : > { %v4399_v45 = vpop.eup %3320  ;;  %3102 = vst [vmem:[#allocation2 + $0x58] sm:$0xff] %v2991_v50   ;;  %v2986_v34 = vpack.c.bf16 %v897_v55, %v896_v41  ;;  %vm770_vm12 = vweird.f32 %v4355_v51  ;;  %vm781_vm13 = vweird.f32 %v4380_v19  ;;  %vm820_vm14 = vweird.f32 %v4365_v23 }
 0x12f   : > { %v777_v56 = vmul.f32 0.5, %v776_v25  ;;  %v766_v61 = vmul.f32 %v4390_v60, %v765_v5  ;;  %v815_v57 = vmul.f32 %v4399_v45, %v4365_v23  ;;  %3328 = vrsqrt.f32 %v4403_v47  ;;  %vm782_vm2 = vmor %vm780_vm10, %vm781_vm13 }
 0x130   : > { %v4409_v58 = vpop.eup %3322  ;;  %3101 = vst [vmem:[#allocation2 + $0x50] sm:$0xff] %v2986_v34   ;;  %v3682_v32 = vmov 0.0   ;;  %v793_v7 = vsel %vm4420_vm15, %v4345_v3, %v789_v36  ;;  %vm771_vm0 = vweird.f32 %v4390_v60  ;;  %vm810_vm1 = vweird.f32 %v4376_v20 }
 0x131   : > { %v4414_v6 = vpop.eup %3324  ;;  %v778_v28 = vsub.f32 1.5, %v777_v56  ;;  %v767_v17 = vmul.f32 0.5, %v766_v61  ;;  %v816_v31 = vmul.f32 %v4399_v45, %v815_v57  ;;  %v805_v44 = vmul.f32 %v4409_v58, %v4376_v20  ;;  %973 = vst.msk [vmem:[#allocation3] sm:$0xff] %vm972_vm11, %v3682_v32  ;;  %vm772_vm6 = vmor %vm770_vm12, %vm771_vm0 }
 0x132   : > { %v795_v27 = vmul.f32 %v4414_v6, %v4378_v40  ;;  %974 = vst.msk [vmem:[#allocation3 + $0x8] sm:$0xff] %vm972_vm11, %v3682_v32  ;;  %vm821_vm3 = vweird.f32 %v4399_v45  ;;  %vm811_vm4 = vweird.f32 %v4409_v58  ;;  %vm800_vm5 = vweird.f32 %v4378_v40 }
 0x133   : > { %v779_v2 = vmul.f32 %v4380_v19, %v778_v28  ;;  %v768_v14 = vsub.f32 1.5, %v767_v17  ;;  %v817_v16 = vmul.f32 0.5, %v816_v31  ;;  %v806_v9 = vmul.f32 %v4409_v58, %v805_v44  ;;  %975 = vst.msk [vmem:[#allocation3 + $0x10] sm:$0xff] %vm972_vm11, %v3682_v32  ;;  %v4442_v3 = vpop.eup %3326  ;;  %vm822_vm8 = vmor %vm820_vm14, %vm821_vm3 }
 0x134   : > { %v796_v15 = vmul.f32 %v4414_v6, %v795_v27  ;;  %976 = vst.msk [vmem:[#allocation3 + $0x18] sm:$0xff] %vm972_vm11, %v3682_v32  ;;  %vm801_vm7 = vweird.f32 %v4414_v6  ;;  %v835_v29 = vmul.f32 %v4442_v3, %v4384_v54  ;;  %v870_v46 = vmul.f32 20.0, %v793_v7  ;;  %vm812_vm9 = vmor %vm810_vm1, %vm811_vm4 }
 0x135   : > { %v783_v39 = vsel %vm782_vm2, %v4380_v19, %v779_v2  ;;  %v769_v26 = vmul.f32 %v4390_v60, %v768_v14  ;;  %v818_v10 = vsub.f32 1.5, %v817_v16  ;;  %v807_v18 = vmul.f32 0.5, %v806_v9  ;;  %977 = vst.msk [vmem:[#allocation3 + $0x20] sm:$0xff] %vm972_vm11, %v3682_v32  ;;  %v4458_v1 = vpop.eup %3328  ;;  %vm802_vm10 = vmor %vm800_vm5, %vm801_vm7 }
 0x136   : > { %v869_v48 = vmul.f32 20.0, %v783_v39  ;;  %v797_v37 = vmul.f32 0.5, %v796_v15  ;;  %978 = vst.msk [vmem:[#allocation3 + $0x28] sm:$0xff] %vm972_vm11, %v3682_v32  ;;  %v825_v30 = vmul.f32 %v4458_v1, %v4403_v47  ;;  %v836_v49 = vmul.f32 %v4442_v3, %v835_v29 }
 0x137   : > { %v773_v38 = vsel %vm772_vm6, %v4390_v60, %v769_v26  ;;  %v819_v11 = vmul.f32 %v4399_v45, %v818_v10  ;;  %v808_v52 = vsub.f32 1.5, %v807_v18  ;;  %979 = vst.msk [vmem:[#allocation3 + $0x30] sm:$0xff] %vm972_vm11, %v3682_v32  ;;  %vm841_vm12 = vweird.f32 %v4442_v3 }
 0x138   : > { %v901_v51 = vmul.f32 %v4004_v63, %v869_v48  ;;  %v868_v43 = vmul.f32 20.0, %v773_v38  ;;  %v798_v35 = vsub.f32 1.5, %v797_v37  ;;  %980 = vst.msk [vmem:[#allocation3 + $0x38] sm:$0xff] %vm972_vm11, %v3682_v32  ;;  %v826_v59 = vmul.f32 %v4458_v1, %v825_v30 }
 0x139   : > { %v823_v53 = vsel %vm822_vm8, %v4399_v45, %v819_v11  ;;  %v809_v19 = vmul.f32 %v4409_v58, %v808_v52  ;;  %981 = vst.msk [vmem:[#allocation3 + $0x40] sm:$0xff] %vm972_vm11, %v3682_v32  ;;  %v837_v24 = vmul.f32 0.5, %v836_v49  ;;  %vm831_vm13 = vweird.f32 %v4458_v1 }
 0x13a   : > { %v900_v63 = vmul.f32 %v4006_v0, %v868_v43  ;;  %v873_v23 = vmul.f32 20.0, %v823_v53  ;;  %v799_v42 = vmul.f32 %v4414_v6, %v798_v35  ;;  %982 = vst.msk [vmem:[#allocation3 + $0x48] sm:$0xff] %vm972_vm11, %v3682_v32  ;;  %v827_v0 = vmul.f32 0.5, %v826_v59 }
 0x13b   : > { %v813_v33 = vsel %vm812_vm9, %v4409_v58, %v809_v19  ;;  %983 = vst.msk [vmem:[#allocation3 + $0x50] sm:$0xff] %vm972_vm11, %v3682_v32  ;;  %v838_v25 = vsub.f32 1.5, %v837_v24  ;;  %v902_v40 = vmul.f32 %v4002_v62, %v870_v46  ;;  %vm840_vm14 = vweird.f32 %v4384_v54 }
 0x13c   : > { %v2996_v20 = vpack.c.bf16 %v901_v51, %v900_v63  ;;  %v905_v60 = vmul.f32 %v4015_v8, %v873_v23  ;;  %v872_v41 = vmul.f32 20.0, %v813_v33  ;;  %v803_v50 = vsel %vm802_vm10, %v4414_v6, %v799_v42  ;;  %984 = vst.msk [vmem:[#allocation3 + $0x58] sm:$0xff] %vm972_vm11, %v3682_v32  ;;  %vm842_vm15 = vmor %vm840_vm14, %vm841_vm12 }
 0x13d   : > { %v871_v55 = vmul.f32 20.0, %v803_v50  ;;  %v828_v5 = vsub.f32 1.5, %v827_v0  ;;  %985 = vst.msk [vmem:[#allocation3 + $0x60] sm:$0xff] %vm972_vm11, %v3682_v32  ;;  %v839_v34 = vmul.f32 %v4442_v3, %v838_v25  ;;  %vm830_vm0 = vweird.f32 %v4403_v47 }
 0x13e   : > { %3103 = vst [vmem:[#allocation2 + $0x60] sm:$0xff] %v2996_v20   ;;  %v904_v45 = vmul.f32 %v4017_v12, %v872_v41  ;;  %vm832_vm1 = vmor %vm830_vm0, %vm831_vm13 }
 0x13f   : > { %v903_v8 = vmul.f32 %v4019_v13, %v871_v55  ;;  %v829_v36 = vmul.f32 %v4458_v1, %v828_v5  ;;  %986 = vst.msk [vmem:[#allocation3 + $0x68] sm:$0xff] %vm972_vm11, %v3682_v32  ;;  %v843_v13 = vsel %vm842_vm15, %v4442_v3, %v839_v34 }
 0x140   : > { %v3006_v62 = vpack.c.bf16 %v905_v60, %v904_v45  ;;  %987 = vst.msk [vmem:[#allocation3 + $0x70] sm:$0xff] %vm972_vm11, %v3682_v32  ;;  %v875_v56 = vmul.f32 20.0, %v843_v13 }
 0x141   : > { %v3001_v12 = vpack.c.bf16 %v903_v8, %v902_v40  ;;  %v833_v54 = vsel %vm832_vm1, %v4458_v1, %v829_v36  ;;  %988 = vst.msk [vmem:[#allocation3 + $0x78] sm:$0xff] %vm972_vm11, %v3682_v32 }
 0x142   : > { %3105 = vst [vmem:[#allocation2 + $0x70] sm:$0xff] %v3006_v62   ;;  %v874_v61 = vmul.f32 20.0, %v833_v54  ;;  %v907_v47 = vmul.f32 %v4028_v21, %v875_v56 }
 0x143   : > { %3104 = vst [vmem:[#allocation2 + $0x68] sm:$0xff] %v3001_v12  }
 0x144   : > { %v906_v57 = vmul.f32 %v4030_v22, %v874_v61  ;;  %989 = vst.msk [vmem:[#allocation3 + $0x80] sm:$0xff] %vm972_vm11, %v3682_v32 }
 0x145   : > { %990 = vst.msk [vmem:[#allocation3 + $0x88] sm:$0xff] %vm972_vm11, %v3682_v32 }
 0x146   : > { %v3011_v58 = vpack.c.bf16 %v907_v47, %v906_v57  ;;  %991 = vst.msk [vmem:[#allocation3 + $0x90] sm:$0xff] %vm972_vm11, %v3682_v32 }
 0x147   : > { %992 = vst.msk [vmem:[#allocation3 + $0x98] sm:$0xff] %vm972_vm11, %v3682_v32 }
 0x148   : > { %3106 = vst [vmem:[#allocation2 + $0x78] sm:$0xff] %v3011_v58  }
 0x149   : > { %993 = vst.msk [vmem:[#allocation3 + $0xa0] sm:$0xff] %vm972_vm11, %v3682_v32 }
 0x14a   : > { %994 = vst.msk [vmem:[#allocation3 + $0xa8] sm:$0xff] %vm972_vm11, %v3682_v32 }
 0x14b   : > { %995 = vst.msk [vmem:[#allocation3 + $0xb0] sm:$0xff] %vm972_vm11, %v3682_v32 }
 0x14c   : > { %996 = vst.msk [vmem:[#allocation3 + $0xb8] sm:$0xff] %vm972_vm11, %v3682_v32 }
 0x14d   : > { %997 = vst.msk [vmem:[#allocation3 + $0xc0] sm:$0xff] %vm972_vm11, %v3682_v32 }
 0x14e   : > { %998 = vst.msk [vmem:[#allocation3 + $0xc8] sm:$0xff] %vm972_vm11, %v3682_v32 }
 0x14f   : > { %999 = vst.msk [vmem:[#allocation3 + $0xd0] sm:$0xff] %vm972_vm11, %v3682_v32 }
 0x150   : > { %1000 = vst.msk [vmem:[#allocation3 + $0xd8] sm:$0xff] %vm972_vm11, %v3682_v32 }
 0x151   : > { %1001 = vst.msk [vmem:[#allocation3 + $0xe0] sm:$0xff] %vm972_vm11, %v3682_v32 }
 0x152   : > { %1002 = vst.msk [vmem:[#allocation3 + $0xe8] sm:$0xff] %vm972_vm11, %v3682_v32 }
 0x153   : > { %1003 = vst.msk [vmem:[#allocation3 + $0xf0] sm:$0xff] %vm972_vm11, %v3682_v32 }
 0x154   : > { %1004 = vst.msk [vmem:[#allocation3 + $0xf8] sm:$0xff] %vm972_vm11, %v3682_v32 }
 0x155   : > { %1005 = vst [vmem:[%s3889_s26] sm:$0x1] %v3682_v32 }
 0x156 PF: > { %v3113_v21 = vld [vmem:[%s3860_s27 + $0x38] sm:$0xff]   ;;  %v3112_v22 = vld [vmem:[%s3860_s27 + $0x30] sm:$0xff]   ;;  %v3111_v6 = vld [vmem:[%s3860_s27 + $0x28] sm:$0xff]   ;;  %v3683_v18 = vmov 0   ;;  %p2848_p4 = scmp.ne.s32.totalorder %s3660_s9, 1 }
 0x157   : > { %v4567_v4 = vunpack.c.l.bf16 %v3113_v21  ;;  %v4569_v28 = vunpack.c.l.bf16 %v3112_v22  ;;  %v4571_v17 = vunpack.c.l.bf16 %v3111_v6  ;;  %v4579_v7 = vunpack.c.h.bf16 %v3113_v21  ;;  %v3110_v3 = vld [vmem:[%s3860_s27 + $0x20] sm:$0xff]   ;;  %v3109_v15 = vld [vmem:[%s3860_s27 + $0x18] sm:$0xff]   ;;  %3331 = vset.pattern.permute.xlu1 %v3683_v18  ;;  %3332 = vset.pattern.permute.xlu2 %v3683_v18  ;;  %v3108_v29 = vld [vmem:[%s3860_s27 + $0x10] sm:$0xff]   ;;  %s3684_s19 = smov (!%p2848_p4), 1.0  }
 0x158   : > { %v4581_v27 = vunpack.c.h.bf16 %v3112_v22  ;;  %v4583_v2 = vunpack.c.h.bf16 %v3111_v6  ;;  %v4593_v39 = vunpack.c.h.bf16 %v3110_v3  ;;  %v4595_v26 = vunpack.c.l.bf16 %v3110_v3  ;;  %3330 = vset.pattern.permute.xlu0 %v3683_v18  ;;  %v3107_v35 = vld [vmem:[%s3860_s27 + $0x8] sm:$0xff]   ;;  %v3014_v49 = vld [vmem:[%s3860_s27] sm:$0xff]   ;;  %v4640_v0 = vld [vmem:[%s3874_s23 + $0x10] sm:$0xff]  ;;  %s2846_s27 = sshll.u32 %s3660_s9, 7 }
 0x159   : > { %v1085_v31 = vmul.f32 %v4567_v4, %v4567_v4  ;;  %v1083_v44 = vmul.f32 %v4569_v28, %v4569_v28  ;;  %v1081_v32 = vmul.f32 %v4571_v17, %v4571_v17  ;;  %v1086_v14 = vmul.f32 %v4579_v7, %v4579_v7  ;;  %v4637_v33 = vld [vmem:[%s3874_s23 + $0x8] sm:$0xff]  ;;  %5795 = vst [vmem:[#allocation25_spill] sm:$0xff] %v4640_v0  ;;  %v4645_v20 = vld [vmem:[%s3874_s23] sm:$0xff]  ;;  %v4652_v41 = vld [vmem:[%s3874_s23 + $0x18] sm:$0xff]  ;;  %s4979_s11 = sshra.s32 %s2846_s27, 3  ;;  %s5231_s22 = scalar_lea.vmem %s3874_s23, %s2846_s27 }
 0x15a   : > { %v1084_v16 = vmul.f32 %v4581_v27, %v4581_v27  ;;  %v1082_v9 = vmul.f32 %v4583_v2, %v4583_v2  ;;  %v4597_v10 = vunpack.c.l.bf16 %v3109_v15  ;;  %v1080_v1 = vmul.f32 %v4593_v39, %v4593_v39  ;;  %5794 = vst [vmem:[#allocation24_spill] sm:$0xff] %v4637_v33  ;;  %v4649_v60 = vld [vmem:[%s3874_s23 + $0x20] sm:$0xff]  ;;  %v4657_v50 = vld [vmem:[%s3874_s23 + $0x38] sm:$0xff]  ;;  %v4661_v55 = vld [vmem:[%s3874_s23 + $0x30] sm:$0xff]  ;;  %s2847_s17 = sshll.u32 %s4979_s11, 2 }
 0x15b   : > { %1115 = vadd.xlane.f32.xlu0 %v1085_v31  ;;  %1111 = vadd.xlane.f32.xlu1 %v1083_v44  ;;  %v1079_v48 = vmul.f32 %v4595_v26, %v4595_v26  ;;  %v4606_v38 = vunpack.c.h.bf16 %v3109_v15  ;;  %v4608_v11 = vunpack.c.l.bf16 %v3108_v29  ;;  %v4610_v52 = vunpack.c.h.bf16 %v3108_v29  ;;  %5796 = vst [vmem:[#allocation26_spill] sm:$0xff] %v4645_v20  ;;  %v4664_v25 = vld [vmem:[%s3874_s23 + $0x28] sm:$0xff]  ;;  %v4669_v5 = vld [vmem:[%s3874_s23 + $0x50] sm:$0xff]  ;;  %v4676_v45 = vld [vmem:[%s3874_s23 + $0x40] sm:$0xff]  ;;  %s5029_s1 = scalar_lea.vmem [#allocation2], %s2847_s17 }
 0x15c   : > { %1107 = vadd.xlane.f32.xlu2 %v1081_v32  ;;  %v1077_v37 = vmul.f32 %v4597_v10, %v4597_v10  ;;  %v4620_v46 = vunpack.c.h.bf16 %v3107_v35  ;;  %v4622_v53 = vunpack.c.l.bf16 %v3107_v35  ;;  %v4624_v19 = vunpack.c.l.bf16 %v3014_v49  ;;  %5797 = vst [vmem:[#allocation27_spill] sm:$0xff] %v4649_v60  ;;  %v4673_v40 = vld [vmem:[%s3874_s23 + $0x48] sm:$0xff]  ;;  %v4685_v34 = vld [vmem:[%s3874_s23 + $0x60] sm:$0xff]  ;;  %v4688_v36 = vld [vmem:[%s3874_s23 + $0x58] sm:$0xff] }
 0x15d   : > { %v1078_v30 = vmul.f32 %v4606_v38, %v4606_v38  ;;  %v1075_v51 = vmul.f32 %v4608_v11, %v4608_v11  ;;  %v1076_v43 = vmul.f32 %v4610_v52, %v4610_v52  ;;  %v4632_v42 = vunpack.c.h.bf16 %v3014_v49  ;;  %5798 = vst [vmem:[#allocation28_spill] sm:$0xff] %v4652_v41  ;;  %v4681_v8 = vld [vmem:[%s3874_s23 + $0x68] sm:$0xff]  ;;  %v4693_v62 = vld [vmem:[%s3874_s23 + $0x80] sm:$0xff]  ;;  %v4697_v12 = vld [vmem:[%s3874_s23 + $0x78] sm:$0xff] }
 0x15e   : > { %v1074_v59 = vmul.f32 %v4620_v46, %v4620_v46  ;;  %v1073_v63 = vmul.f32 %v4622_v53, %v4622_v53  ;;  %v1071_v23 = vmul.f32 %v4624_v19, %v4624_v19  ;;  %5799 = vst [vmem:[#allocation29_spill] sm:$0xff] %v4657_v50  ;;  %v4700_v13 = vld [vmem:[%s3874_s23 + $0x70] sm:$0xff]  ;;  %v4705_v54 = vld [vmem:[%s3874_s23 + $0x98] sm:$0xff]  ;;  %v4712_v61 = vld [vmem:[%s3874_s23 + $0x88] sm:$0xff] }
 0x15f   : > { %v1072_v24 = vmul.f32 %v4632_v42, %v4632_v42  ;;  %5800 = vst [vmem:[#allocation30_spill] sm:$0xff] %v4661_v55  ;;  %v4709_v56 = vld [vmem:[%s3874_s23 + $0x90] sm:$0xff]  ;;  %v4721_v57 = vld [vmem:[%s3874_s23 + $0xa8] sm:$0xff]  ;;  %v4724_v58 = vld [vmem:[%s3874_s23 + $0xa0] sm:$0xff] }
 0x160   : > { %5801 = vst [vmem:[#allocation31_spill] sm:$0xff] %v4664_v25  ;;  %v4717_v47 = vld [vmem:[%s3874_s23 + $0xb0] sm:$0xff]  ;;  %v4729_v21 = vld [vmem:[%s3874_s23 + $0xc8] sm:$0xff]  ;;  %v4749_v3 = vld [vmem:[%s3874_s23 + $0xe0] sm:$0xff] }
 0x161   : > { %5802 = vst [vmem:[#allocation32_spill] sm:$0xff] %v4669_v5  ;;  %v4767_v35 = vld [vmem:[%s3874_s23 + $0xd8] sm:$0xff]  ;;  %v4770_v49 = vld [vmem:[%s3874_s23 + $0xd0] sm:$0xff] }
 0x162   : > { %5803 = vst [vmem:[#allocation33_spill] sm:$0xff] %v4673_v40 }
 0x163   : > { %1117 = vadd.xlane.f32.xlu0 %v1086_v14  ;;  %1113 = vadd.xlane.f32.xlu1 %v1084_v16  ;;  %5804 = vst [vmem:[#allocation34_spill] sm:$0xff] %v4676_v45  ;;  %v4738_v14 = vld [vmem:[%s3874_s23 + $0xc0] sm:$0xff]  ;;  %v4741_v16 = vld [vmem:[%s3874_s23 + $0xb8] sm:$0xff] }
 0x164   : > { %1109 = vadd.xlane.f32.xlu2 %v1082_v9  ;;  %5805 = vst [vmem:[#allocation35_spill] sm:$0xff] %v4681_v8 }
 0x165   : > { %5806 = vst [vmem:[#allocation36_spill] sm:$0xff] %v4685_v34 }
 0x166   : > { %5807 = vst [vmem:[#allocation37_spill] sm:$0xff] %v4688_v36 }
 0x167   : > { %5808 = vst [vmem:[#allocation38_spill] sm:$0xff] %v4693_v62 }
 0x168   : > { %5809 = vst [vmem:[#allocation39_spill] sm:$0xff] %v4697_v12 }
 0x169   : > { %5810 = vst [vmem:[#allocation40_spill] sm:$0xff] %v4700_v13 }
 0x16a   : > { %5811 = vst [vmem:[#allocation41_spill] sm:$0xff] %v4705_v54 }
 0x16b   : > { %1105 = vadd.xlane.f32.xlu1 %v1080_v1  ;;  %1103 = vadd.xlane.f32.xlu0 %v1079_v48  ;;  %5812 = vst [vmem:[#allocation42_spill] sm:$0xff] %v4709_v56 }
 0x16c   : > { %1099 = vadd.xlane.f32.xlu2 %v1077_v37  ;;  %5813 = vst [vmem:[#allocation43_spill] sm:$0xff] %v4712_v61 }
 0x16d   : > { %5814 = vst [vmem:[#allocation44_spill] sm:$0xff] %v4717_v47 }
 0x16e   : > { %5815 = vst [vmem:[#allocation45_spill] sm:$0xff] %v4721_v57 }
 0x16f   : > { %5816 = vst [vmem:[#allocation46_spill] sm:$0xff] %v4724_v58 }
 0x170   : > { %5817 = vst [vmem:[#allocation47_spill] sm:$0xff] %v4729_v21 }
 0x171   : > { %5818 = vst [vmem:[#allocation48_spill] sm:$0xff] %v4738_v14 }
 0x172   : > { %5819 = vst [vmem:[#allocation49_spill] sm:$0xff] %v4741_v16 }
 0x173   : > { %1101 = vadd.xlane.f32.xlu0 %v1078_v30  ;;  %1095 = vadd.xlane.f32.xlu1 %v1075_v51  ;;  %5820 = vst [vmem:[#allocation50_spill] sm:$0xff] %v4749_v3 }
 0x174   : > { %1097 = vadd.xlane.f32.xlu2 %v1076_v43  ;;  %5821 = vst [vmem:[#allocation51_spill] sm:$0xff] %v4767_v35 }
 0x175   : > { %5822 = vst [vmem:[#allocation52_spill] sm:$0xff] %v4770_v49 }
 0x17b   : > { %1093 = vadd.xlane.f32.xlu1 %v1074_v59  ;;  %1091 = vadd.xlane.f32.xlu0 %v1073_v63 }
 0x17c   : > { %1087 = vadd.xlane.f32.xlu2 %v1071_v23 }
 0x183   : > { %1089 = vadd.xlane.f32.xlu0 %v1072_v24 }
 0x194   : > { %1835 = vperm.xlu1 %3331, %v4637_v33   ;;  %1840 = vperm.xlu2 %3332, %v4640_v0  }
 0x197   : > { %1830 = vperm.xlu0 %3330, %v4645_v20  }
 0x19c   : > { %1850 = vperm.xlu1 %3331, %v4649_v60   ;;  %1845 = vperm.xlu2 %3332, %v4652_v41  }
 0x19f   : > { %1865 = vperm.xlu0 %3330, %v4657_v50  }
 0x1a4   : > { %1860 = vperm.xlu1 %3331, %v4661_v55   ;;  %1855 = vperm.xlu2 %3332, %v4664_v25  }
 0x1a7   : > { %1880 = vperm.xlu0 %3330, %v4669_v5  }
 0x1ac   : > { %1875 = vperm.xlu1 %3331, %v4673_v40   ;;  %1870 = vperm.xlu2 %3332, %v4676_v45  }
 0x1af   : > { %1895 = vperm.xlu0 %3330, %v4681_v8  }
 0x1b4   : > { %1890 = vperm.xlu1 %3331, %v4685_v34   ;;  %1885 = vperm.xlu2 %3332, %v4688_v36  }
 0x1b7   : > { %1910 = vperm.xlu0 %3330, %v4693_v62  }
 0x1bc   : > { %1905 = vperm.xlu1 %3331, %v4697_v12   ;;  %1900 = vperm.xlu2 %3332, %v4700_v13  }
 0x1bf   : > { %1925 = vperm.xlu0 %3330, %v4705_v54  }
 0x1c4   : > { %1920 = vperm.xlu1 %3331, %v4709_v56   ;;  %1915 = vperm.xlu2 %3332, %v4712_v61  }
 0x1c7   : > { %1940 = vperm.xlu0 %3330, %v4717_v47  }
 0x1cc   : > { %1935 = vperm.xlu1 %3331, %v4721_v57   ;;  %1930 = vperm.xlu2 %3332, %v4724_v58  }
 0x1ce   : > { %v1116_v22 = vpop.xlane.xlu0 %1115  ;;  %v1112_v6 = vpop.xlane.xlu1 %1111 }
 0x1cf   : > { %v4731_v31 = vmax.f32 %v1116_v22, 1e-16  ;;  %v4733_v44 = vmax.f32 %v1112_v6, 1e-16  ;;  %v1108_v32 = vpop.xlane.xlu2 %1107  ;;  %1955 = vperm.xlu0 %3330, %v4729_v21  }
 0x1d0   : > { %v4744_v9 = vmax.f32 %v1108_v32, 1e-16 }
 0x1d1   : > { %3334 = vrsqrt.f32 %v4731_v31  ;;  %vm1281_vm2 = vweird.f32 %v4731_v31  ;;  %vm1261_vm6 = vweird.f32 %v4733_v44 }
 0x1d2   : > { %3336 = vrsqrt.f32 %v4733_v44  ;;  %vm1241_vm12 = vweird.f32 %v4744_v9 }
 0x1d3   : > { %3338 = vrsqrt.f32 %v4744_v9 }
 0x1d4   : > { %1950 = vperm.xlu1 %3331, %v4738_v14   ;;  %1945 = vperm.xlu2 %3332, %v4741_v16   ;;  %v4796_v14 = vld [vmem:[%s3874_s23 + $0xe8] sm:$0xff] }
 0x1d5   : > { %5824 = vst [vmem:[#allocation54_spill] sm:$0xff] %v4796_v14 }
 0x1d6   : > { %v1118_v15 = vpop.xlane.xlu0 %1117  ;;  %v1114_v18 = vpop.xlane.xlu1 %1113 }
 0x1d7   : > { %v4751_v1 = vpop.eup %3334  ;;  %v4753_v48 = vmax.f32 %v1118_v15, 1e-16  ;;  %v4755_v37 = vmax.f32 %v1114_v18, 1e-16  ;;  %v1110_v29 = vpop.xlane.xlu2 %1109  ;;  %1970 = vperm.xlu0 %3330, %v4749_v3  }
 0x1d8   : > { %v1276_v30 = vmul.f32 %v4751_v1, %v4731_v31  ;;  %v4761_v51 = vmax.f32 %v1110_v29, 1e-16  ;;  %v4763_v43 = vpop.eup %3336  ;;  %vm1282_vm11 = vweird.f32 %v4751_v1 }
 0x1d9   : > { %3340 = vrsqrt.f32 %v4753_v48  ;;  %v1256_v23 = vmul.f32 %v4763_v43, %v4733_v44  ;;  %v4779_v24 = vpop.eup %3338  ;;  %vm1291_vm3 = vweird.f32 %v4753_v48  ;;  %vm4819_vm5 = vmor %vm1281_vm2, %vm1282_vm11  ;;  %vm1271_vm8 = vweird.f32 %v4755_v37 }
 0x1da   : > { %v1277_v59 = vmul.f32 %v4751_v1, %v1276_v30  ;;  %3342 = vrsqrt.f32 %v4755_v37  ;;  %vm1262_vm10 = vweird.f32 %v4763_v43  ;;  %vm1242_vm14 = vweird.f32 %v4779_v24 }
 0x1db   : > { %3344 = vrsqrt.f32 %v4761_v51  ;;  %vm1251_vm15 = vweird.f32 %v4761_v51  ;;  %vm4886_vm0 = vmor %vm1261_vm6, %vm1262_vm10 }
 0x1dc   : > { %v1278_v63 = vmul.f32 0.5, %v1277_v59  ;;  %1965 = vperm.xlu1 %3331, %v4767_v35   ;;  %1960 = vperm.xlu2 %3332, %v4770_v49   ;;  %v1257_v59 = vmul.f32 %v4763_v43, %v1256_v23  ;;  %v4793_v49 = vld [vmem:[%s3874_s23 + $0xf0] sm:$0xff]  ;;  %v1236_v23 = vmul.f32 %v4779_v24, %v4744_v9  ;;  %vm4931_vm2 = vmor %vm1241_vm12, %vm1242_vm14 }
 0x1dd   : > { %5823 = vst [vmem:[#allocation53_spill] sm:$0xff] %v4793_v49 }
 0x1de   : > { %v1104_v22 = vpop.xlane.xlu0 %1103  ;;  %v1106_v6 = vpop.xlane.xlu1 %1105  ;;  %v1279_v30 = vsub.f32 1.5, %v1278_v63  ;;  %v1258_v58 = vmul.f32 0.5, %v1257_v59 }
 0x1df   : > { %v3341_v32 = vpop.eup %3340  ;;  %v4781_v15 = vmax.f32 %v1104_v22, 1e-16  ;;  %v1100_v18 = vpop.xlane.xlu2 %1099  ;;  %v4800_v63 = vmax.f32 %v1106_v6, 1e-16 }
 0x1e0   : > { %v4783_v29 = vpop.eup %3342  ;;  %v1286_v3 = vmul.f32 %v3341_v32, %v4753_v48  ;;  %v1280_v57 = vmul.f32 %v4751_v1, %v1279_v30  ;;  %v4811_v6 = vmax.f32 %v1100_v18, 1e-16  ;;  %vm1292_vm4 = vweird.f32 %v3341_v32 }
 0x1e1   : > { %v4787_v21 = vpop.eup %3344  ;;  %v1266_v35 = vmul.f32 %v4783_v29, %v4755_v37  ;;  %3346 = vrsqrt.f32 %v4781_v15  ;;  %vm1293_vm7 = vmor %vm1291_vm3, %vm1292_vm4  ;;  %vm1272_vm9 = vweird.f32 %v4783_v29  ;;  %vm1221_vm3 = vweird.f32 %v4781_v15 }
 0x1e2   : > { %v1287_v22 = vmul.f32 %v3341_v32, %v1286_v3  ;;  %v1246_v16 = vmul.f32 %v4787_v21, %v4761_v51  ;;  %3348 = vrsqrt.f32 %v4800_v63  ;;  %vm4867_vm13 = vmor %vm1271_vm8, %vm1272_vm9  ;;  %vm1252_vm1 = vweird.f32 %v4787_v21 }
 0x1e3   : > { %v1267_v47 = vmul.f32 %v4783_v29, %v1266_v35  ;;  %3350 = vrsqrt.f32 %v4811_v6  ;;  %vm4921_vm11 = vmor %vm1251_vm15, %vm1252_vm1  ;;  %vm1201_vm8 = vweird.f32 %v4811_v6 }
 0x1e4   : > { %v1288_v54 = vmul.f32 0.5, %v1287_v22  ;;  %1980 = vperm.xlu1 %3331, %v4793_v49   ;;  %1975 = vperm.xlu2 %3332, %v4796_v14   ;;  %v1247_v35 = vmul.f32 %v4787_v21, %v1246_v16  ;;  %v1284_v49 = vsel %vm4819_vm5, %v4751_v1, %v1280_v57  ;;  %v1259_v14 = vsub.f32 1.5, %v1258_v58 }
 0x1e5   : > { %v1268_v3 = vmul.f32 0.5, %v1267_v47  ;;  %v1237_v47 = vmul.f32 %v4779_v24, %v1236_v23  ;;  %v4840_v23 = vld [vmem:[%s3874_s23 + $0xf8] sm:$0xff]  ;;  %vm1231_vm5 = vweird.f32 %v4800_v63 }
 0x1e6   : > { %v1289_v56 = vsub.f32 1.5, %v1288_v54  ;;  %v1102_v30 = vpop.xlane.xlu0 %1101  ;;  %v1096_v59 = vpop.xlane.xlu1 %1095  ;;  %5827 = vst [vmem:[#allocation55_spill] sm:$0xff] %v4840_v23  ;;  %v1248_v58 = vmul.f32 0.5, %v1247_v35  ;;  %v1260_v12 = vmul.f32 %v4763_v43, %v1259_v14 }
 0x1e7   : > { %v4815_v22 = vpop.eup %3346  ;;  %v1269_v18 = vsub.f32 1.5, %v1268_v3  ;;  %v4825_v54 = vmax.f32 %v1102_v30, 1e-16  ;;  %v1098_v16 = vpop.xlane.xlu2 %1097  ;;  %v4843_v1 = vmax.f32 %v1096_v59, 1e-16  ;;  %v4846_v3 = vmul.f32 %v4567_v4, %v1284_v49 }
 0x1e8   : > { %v1290_v61 = vmul.f32 %v3341_v32, %v1289_v56  ;;  %v1216_v62 = vmul.f32 %v4815_v22, %v4781_v15  ;;  %v1238_v48 = vmul.f32 0.5, %v1237_v47  ;;  %v4852_v31 = vpop.eup %3348  ;;  %v1249_v35 = vsub.f32 1.5, %v1248_v58 }
 0x1e9   : > { %3352 = vrsqrt.f32 %v4825_v54  ;;  %v1270_v56 = vmul.f32 %v4783_v29, %v1269_v18  ;;  %v4860_v4 = vpop.eup %3350  ;;  %vm1222_vm4 = vweird.f32 %v4815_v22  ;;  %vm1232_vm6 = vweird.f32 %v4852_v31 }
 0x1ea   : > { %v1294_v57 = vsel %vm1293_vm7, %v3341_v32, %v1290_v61  ;;  %v1217_v61 = vmul.f32 %v4815_v22, %v1216_v62  ;;  %v4856_v32 = vmax.f32 %v1098_v16, 1e-16  ;;  %3354 = vrsqrt.f32 %v4843_v1  ;;  %vm4969_vm7 = vmor %vm1221_vm3, %vm1222_vm4 }
 0x1eb   : > { %v4850_v30 = vmul.f32 %v4579_v7, %v1294_v57  ;;  %v1226_v62 = vmul.f32 %v4852_v31, %v4800_v63  ;;  %v1274_v49 = vsel %vm4867_vm13, %v4783_v29, %v1270_v56  ;;  %v1239_v16 = vsub.f32 1.5, %v1238_v48  ;;  %vm4995_vm10 = vmor %vm1231_vm5, %vm1232_vm6 }
 0x1ec   : > { %1985 = vperm.xlu1 %3331, %v4840_v23   ;;  %v1196_v57 = vmul.f32 %v4860_v4, %v4811_v6  ;;  %v1264_v7 = vsel %vm4886_vm0, %v4763_v43, %v1260_v12  ;;  %v1218_v44 = vmul.f32 0.5, %v1217_v61  ;;  %3356 = vrsqrt.f32 %v4856_v32 }
 0x1ed   : > { %v1318_v14 = vpack.c.bf16 %v4850_v30, %v4846_v3  ;;  %v1227_v29 = vmul.f32 %v4852_v31, %v1226_v62  ;;  %v4901_v48 = vmul.f32 %v4581_v27, %v1274_v49  ;;  %v1250_v12 = vmul.f32 %v4787_v21, %v1249_v35 }
 0x1ee   : > { %v1092_v37 = vpop.xlane.xlu0 %1091  ;;  %v1094_v59 = vpop.xlane.xlu1 %1093  ;;  %v4914_v18 = vmul.f32 %v4569_v28, %v1264_v7  ;;  %v1240_v27 = vmul.f32 %v4779_v24, %v1239_v16  ;;  %v1197_v49 = vmul.f32 %v4860_v4, %v1196_v57  ;;  %v1219_v35 = vsub.f32 1.5, %v1218_v44 }
 0x1ef   : > { %v4880_v47 = vpop.eup %3352  ;;  %v4893_v56 = vmax.f32 %v1092_v37, 1e-16  ;;  %v1088_v58 = vpop.xlane.xlu2 %1087  ;;  %1447 = vmatpush.bf16.xpose.msra.mxu0 %v1318_v14  ;;  %3121 = vmatpush.bf16.xpose.msra.mxu1 %v1318_v14  ;;  %v4906_v37 = vmax.f32 %v1094_v59, 1e-16  ;;  %v1228_v43 = vmul.f32 0.5, %v1227_v29  ;;  %v1254_v9 = vsel %vm4921_vm11, %v4787_v21, %v1250_v12 }
 0x1f0   : > { %3122 = vmatpush.bf16.xpose.msra.mxu2 %v1318_v14  ;;  %3123 = vmatpush.bf16.xpose.msra.mxu3 %v1318_v14  ;;  %v4904_v62 = vmax.f32 %v1088_v58, 1e-16  ;;  %v4908_v23 = vpop.eup %3354  ;;  %v1206_v61 = vmul.f32 %v4880_v47, %v4825_v54  ;;  %v1317_v59 = vpack.c.bf16 %v4901_v48, %v4914_v18  ;;  %v1244_v44 = vsel %vm4931_vm2, %v4779_v24, %v1240_v27 }
 0x1f1   : > { %3358 = vrsqrt.f32 %v4893_v56  ;;  %v1176_v51 = vmul.f32 %v4908_v23, %v4843_v1  ;;  %v1229_v57 = vsub.f32 1.5, %v1228_v43  ;;  %v1198_v13 = vmul.f32 0.5, %v1197_v49 }
 0x1f2   : > { %3360 = vrsqrt.f32 %v4904_v62  ;;  %v4941_v16 = vpop.eup %3356  ;;  %v1207_v29 = vmul.f32 %v4880_v47, %v1206_v61  ;;  %v1220_v21 = vmul.f32 %v4815_v22, %v1219_v35  ;;  %v4963_v24 = vmul.f32 %v4583_v2, %v1254_v9 }
 0x1f3   : > { %3362 = vrsqrt.f32 %v4906_v37  ;;  %v1177_v12 = vmul.f32 %v4908_v23, %v1176_v51  ;;  %v1186_v27 = vmul.f32 %v4941_v16, %v4856_v32  ;;  %v4982_v2 = vmul.f32 %v4571_v17, %v1244_v44 }
 0x1f4   : > { %v1230_v49 = vmul.f32 %v4852_v31, %v1229_v57  ;;  %v1208_v15 = vmul.f32 0.5, %v1207_v29  ;;  %v1199_v51 = vsub.f32 1.5, %v1198_v13  ;;  %vm1202_vm9 = vweird.f32 %v4860_v4 }
 0x1f5   : > { %v1178_v9 = vmul.f32 0.5, %v1177_v12  ;;  %v1187_v29 = vmul.f32 %v4941_v16, %v1186_v27  ;;  %vm1141_vm12 = vweird.f32 %v4904_v62  ;;  %vm1211_vm14 = vweird.f32 %v4825_v54  ;;  %vm5023_vm0 = vmor %vm1201_vm8, %vm1202_vm9 }
 0x1f6   : > { %v1090_v58 = vpop.xlane.xlu0 %1089  ;;  %v1209_v44 = vsub.f32 1.5, %v1208_v15  ;;  %v1200_v12 = vmul.f32 %v4860_v4, %v1199_v51  ;;  %vm1181_vm15 = vweird.f32 %v4843_v1  ;;  %vm1212_vm1 = vweird.f32 %v4880_v47 }
 0x1f7   : > { %v4949_v7 = vpop.eup %3358  ;;  %v4954_v8 = vmax.f32 %v1090_v58, 1e-16  ;;  %1448 = vmatpush.bf16.xpose.msra.mxu0 %v1317_v59  ;;  %3124 = vmatpush.bf16.xpose.msra.mxu1 %v1317_v59  ;;  %v1316_v58 = vpack.c.bf16 %v4963_v24, %v4982_v2  ;;  %v1179_v27 = vsub.f32 1.5, %v1178_v9  ;;  %v1188_v51 = vmul.f32 0.5, %v1187_v29  ;;  %vm5059_vm3 = vmor %vm1211_vm14, %vm1212_vm1 }
 0x1f8   : > { %3125 = vmatpush.bf16.xpose.msra.mxu2 %v1317_v59  ;;  %3126 = vmatpush.bf16.xpose.msra.mxu3 %v1317_v59  ;;  %v4960_v43 = vpop.eup %3360  ;;  %v1156_v14 = vmul.f32 %v4949_v7, %v4893_v56  ;;  %v1224_v59 = vsel %vm4969_vm7, %v4815_v22, %v1220_v21  ;;  %v1234_v22 = vsel %vm4995_vm10, %v4852_v31, %v1230_v49  ;;  %v5032_v49 = vld [vmem:[%s5029_s1] sm:$0xff]   ;;  %vm1182_vm2 = vweird.f32 %v4908_v23 }
 0x1f9   : > { %v1136_v28 = vmul.f32 %v4960_v43, %v4904_v62  ;;  %v4987_v35 = vpop.eup %3362  ;;  %3364 = vrsqrt.f32 %v4954_v8  ;;  %vm1142_vm13 = vweird.f32 %v4960_v43  ;;  %v5035_v6 = vmul.f32 %v4595_v26, %v1224_v59  ;;  %vm5070_vm4 = vmor %vm1181_vm15, %vm1182_vm2 }
 0x1fa   : > { %v1166_v57 = vmul.f32 %v4987_v35, %v4906_v37  ;;  %v1157_v63 = vmul.f32 %v4949_v7, %v1156_v14  ;;  %vm5044_vm11 = vmor %vm1141_vm12, %vm1142_vm13  ;;  %v1210_v9 = vmul.f32 %v4880_v47, %v1209_v44  ;;  %v1189_v44 = vsub.f32 1.5, %v1188_v51 }
 0x1fb   : > { %v1137_v13 = vmul.f32 %v4960_v43, %v1136_v28  ;;  %v5038_v28 = vmul.f32 %v4593_v39, %v1234_v22  ;;  %v1204_v39 = vsel %vm5023_vm0, %v4860_v4, %v1200_v12  ;;  %v1180_v22 = vmul.f32 %v4908_v23, %v1179_v27  ;;  %v5092_v27 = vld [vmem:[%s5029_s1 + $0x10] sm:$0xff]  }
 0x1fc   : > { %v1167_v14 = vmul.f32 %v4987_v35, %v1166_v57  ;;  %v1158_v17 = vmul.f32 0.5, %v1157_v63  ;;  %v3047_v57 = vunpack.c.l.bf16 %v5032_v49  ;;  %vm1151_vm5 = vweird.f32 %v4954_v8 }
 0x1fd   : > { %v1138_v21 = vmul.f32 0.5, %v1137_v13  ;;  %vm1191_vm7 = vweird.f32 %v4856_v32  ;;  %vm1161_vm8 = vweird.f32 %v4893_v56  ;;  %vm1162_vm9 = vweird.f32 %v4949_v7 }
 0x1fe   : > { %v1168_v63 = vmul.f32 0.5, %v1167_v14  ;;  %v1159_v4 = vsub.f32 1.5, %v1158_v17  ;;  %vm1192_vm10 = vweird.f32 %v4941_v16  ;;  %v1301_v14 = vmul.f32 %v4597_v10, %v1204_v39  ;;  %vm5109_vm13 = vmor %vm1161_vm8, %vm1162_vm9  ;;  %v3118_v10 = vld [vmem:[%s5029_s1 + $0x28] sm:$0xff]  }
 0x1ff   : > { %1449 = vmatpush.bf16.xpose.msra.mxu0 %v1316_v58  ;;  %3127 = vmatpush.bf16.xpose.msra.mxu1 %v1316_v58  ;;  %v1139_v31 = vsub.f32 1.5, %v1138_v21  ;;  %v3365_v15 = vpop.eup %3364  ;;  %v1315_v21 = vpack.c.bf16 %v5038_v28, %v5035_v6  ;;  %vm1171_vm14 = vweird.f32 %v4906_v37  ;;  %vm1172_vm15 = vweird.f32 %v4987_v35  ;;  %vm5122_vm0 = vmor %vm1191_vm7, %vm1192_vm10 }
 0x200   : > { %3128 = vmatpush.bf16.xpose.msra.mxu2 %v1316_v58  ;;  %3129 = vmatpush.bf16.xpose.msra.mxu3 %v1316_v58  ;;  %v1146_v26 = vmul.f32 %v3365_v15, %v4954_v8  ;;  %vm1152_vm6 = vweird.f32 %v3365_v15  ;;  %v1160_v13 = vmul.f32 %v4949_v7, %v1159_v4  ;;  %v5116_v8 = vld [vmem:[%s5029_s1 + $0x38] sm:$0xff]   ;;  %v3048_v56 = vunpack.c.h.bf16 %v5032_v49  ;;  %vm5133_vm1 = vmor %vm1171_vm14, %vm1172_vm15  ;;  %v3114_v49 = vld [vmem:[%s5029_s1 + $0x8] sm:$0xff]  }
 0x201   : > { %v1140_v59 = vmul.f32 %v4960_v43, %v1139_v31  ;;  %v1184_v31 = vsel %vm5070_vm4, %v4908_v23, %v1180_v22  ;;  %vm5099_vm12 = vmor %vm1151_vm5, %vm1152_vm6  ;;  %v3076_v37 = vunpack.c.h.bf16 %v5116_v8  ;;  %v3116_v4 = vld [vmem:[%s5029_s1 + $0x18] sm:$0xff]   ;;  %v3067_v23 = vunpack.c.l.bf16 %v3118_v10 }
 0x202   : > { %v1147_v29 = vmul.f32 %v3365_v15, %v1146_v26  ;;  %v1299_v26 = vmul.f32 %v4608_v11, %v1184_v31  ;;  %v1164_v11 = vsel %vm5109_vm13, %v4949_v7, %v1160_v13  ;;  %vm2062_vm2 = vcmask 1040384  }
 0x203   : > { %v1144_v58 = vsel %vm5044_vm11, %v4960_v43, %v1140_v59  ;;  %v1214_v43 = vsel %vm5059_vm3, %v4880_v47, %v1210_v9  ;;  %v1169_v47 = vsub.f32 1.5, %v1168_v63  ;;  %v1190_v9 = vmul.f32 %v4941_v16, %v1189_v44 }
 0x204   : > { %v5077_v12 = vmul.f32 %v4624_v19, %v1144_v58  ;;  %v1148_v61 = vmul.f32 0.5, %v1147_v29  ;;  %v1302_v51 = vmul.f32 %v4606_v38, %v1214_v43  ;;  %v3055_v59 = vunpack.c.l.bf16 %v5092_v27 }
 0x205   : > { %v1170_v62 = vmul.f32 %v4987_v35, %v1169_v47  ;;  %v5143_v63 = vmul.f32 %v3076_v37, %v4850_v30  ;;  %v3051_v44 = vunpack.c.l.bf16 %v3114_v49  ;;  %v3059_v43 = vunpack.c.l.bf16 %v3116_v4  ;;  %v3117_v47 = vld [vmem:[%s5029_s1 + $0x20] sm:$0xff]  }
 0x206   : > { %v2127_v19 = vmul.f32 %v3047_v57, %v5077_v12  ;;  %v1149_v1 = vsub.f32 1.5, %v1148_v61  ;;  %v1314_v32 = vpack.c.bf16 %v1302_v51, %v1301_v14  ;;  %v2131_v22 = vmul.f32 %v3055_v59, %v1299_v26 }
 0x207   : > { %1450 = vmatpush.bf16.xpose.msra.mxu0 %v1315_v21  ;;  %3130 = vmatpush.bf16.xpose.msra.mxu1 %v1315_v21  ;;  %v1174_v7 = vsel %vm5133_vm1, %v4987_v35, %v1170_v62  ;;  %v3064_v31 = vunpack.c.h.bf16 %v3117_v47  ;;  %v3063_v59 = vunpack.c.l.bf16 %v3117_v47  ;;  %v2137_v37 = vmul.f32 %v3067_v23, %v4982_v2  ;;  %v2861_v2 = vld [vmem:[#allocation2 + $0x40] sm:$0xff]  ;;  %v2867_v47 = vld [vmem:[#allocation2 + $0x70] sm:$0xff]  ;;  %v2868_v23 = vld [vmem:[#allocation2 + $0x78] sm:$0xff] }
 0x208   : > { %3131 = vmatpush.bf16.xpose.msra.mxu2 %v1315_v21  ;;  %3132 = vmatpush.bf16.xpose.msra.mxu3 %v1315_v21  ;;  %v1150_v38 = vmul.f32 %v3365_v15, %v1149_v1  ;;  %v1298_v54 = vmul.f32 %v4620_v46, %v1174_v7  ;;  %v3052_v21 = vunpack.c.h.bf16 %v3114_v49  ;;  %v2133_v1 = vmul.f32 %v3059_v43, %v1301_v14  ;;  %v2866_v43 = vld [vmem:[#allocation2 + $0x68] sm:$0xff] }
 0x209   : > { %2143 = vadd.xlane.f32.xlu0 %v2127_v19  ;;  %v3056_v46 = vunpack.c.h.bf16 %v5092_v27  ;;  %v2136_v14 = vmul.f32 %v3064_v31, %v5038_v28  ;;  %v5168_v27 = vpop.permute.xlu0 %1830  ;;  %v2135_v28 = vmul.f32 %v3063_v59, %v5035_v6  ;;  %vm1795_vm11 = vcmask 7168  }
 0x20a   : > { %v1154_v39 = vsel %vm5099_vm12, %v3365_v15, %v1150_v38  ;;  %v1194_v15 = vsel %vm5122_vm0, %v4941_v16, %v1190_v9  ;;  %v5154_v16 = vpop.permute.xlu1 %1835  ;;  %v2130_v35 = vmul.f32 %v3052_v21, %v1298_v54  ;;  %v2862_v21 = vld [vmem:[#allocation2 + $0x48] sm:$0xff] }
 0x20b   : > { %v1296_v29 = vmul.f32 %v4632_v42, %v1154_v39  ;;  %v1297_v42 = vmul.f32 %v4622_v53, %v1164_v11  ;;  %v1300_v30 = vmul.f32 %v4610_v52, %v1194_v15  ;;  %v5157_v53 = vpop.permute.xlu2 %1840  ;;  %v3060_v52 = vunpack.c.h.bf16 %v3116_v4  ;;  %v2857_v11 = vld [vmem:[#allocation2 + $0x20] sm:$0xff] }
 0x20d   : > { %v2128_v58 = vmul.f32 %v3048_v56, %v1296_v29  ;;  %v2129_v61 = vmul.f32 %v3051_v44, %v1297_v42  ;;  %v1313_v19 = vpack.c.bf16 %v1300_v30, %v1299_v26  ;;  %v2134_v13 = vmul.f32 %v3060_v52, %v1302_v51  ;;  %v3119_v56 = vld [vmem:[%s5029_s1 + $0x30] sm:$0xff]  }
 0x20e   : > { %v1312_v9 = vpack.c.bf16 %v1298_v54, %v1297_v42  ;;  %v2132_v38 = vmul.f32 %v3056_v46, %v1300_v30  ;;  %v3071_v51 = vunpack.c.l.bf16 %v3119_v56  ;;  %v1311_v39 = vpack.c.bf16 %v1296_v29, %v5077_v12  ;;  %v2865_v12 = vld [vmem:[#allocation2 + $0x60] sm:$0xff]  ;;  %v2858_v54 = vld [vmem:[#allocation2 + $0x28] sm:$0xff]  ;;  %v2863_v52 = vld [vmem:[#allocation2 + $0x50] sm:$0xff] }
 0x20f   : > { %1451 = vmatpush.bf16.xpose.msra.mxu0 %v1314_v32  ;;  %3133 = vmatpush.bf16.xpose.msra.mxu1 %v1314_v32  ;;  %v3072_v49 = vunpack.c.h.bf16 %v3119_v56  ;;  %v3068_v29 = vunpack.c.h.bf16 %v3118_v10  ;;  %v3075_v42 = vunpack.c.l.bf16 %v5116_v8  ;;  %v2856_v10 = vld [vmem:[#allocation2 + $0x18] sm:$0xff] }
 0x210   : > { %3134 = vmatpush.bf16.xpose.msra.mxu2 %v1314_v32  ;;  %3135 = vmatpush.bf16.xpose.msra.mxu3 %v1314_v32  ;;  %v2139_v57 = vmul.f32 %v3071_v51, %v4914_v18  ;;  %v2853_v32 = vld [vmem:[#allocation2] sm:$0xff] }
 0x211   : > { %2145 = vadd.xlane.f32.xlu2 %v2128_v58  ;;  %2151 = vadd.xlane.f32.xlu0 %v2131_v22  ;;  %v5178_v58 = vpop.permute.xlu0 %1865  ;;  %v2140_v6 = vmul.f32 %v3072_v49, %v4901_v48  ;;  %v2138_v18 = vmul.f32 %v3068_v29, %v4963_v24  ;;  %v2141_v4 = vmul.f32 %v3075_v42, %v4846_v3  ;;  %v2854_v48 = vld [vmem:[#allocation2 + $0x8] sm:$0xff]  ;;  %v2855_v3 = vld [vmem:[#allocation2 + $0x10] sm:$0xff]  ;;  %v2115_v42 = vld [vmem:[%s5231_s22 + $0x20] sm:$0xff] }
 0x212   : > { %v5161_v17 = vpop.permute.xlu1 %1850 }
 0x213   : > { %v5166_v26 = vpop.permute.xlu2 %1845 }
 0x216   : > { %2147 = vadd.xlane.f32.xlu1 %v2129_v61 }
 0x217   : > { %1452 = vmatpush.bf16.xpose.msra.mxu0 %v1313_v19  ;;  %3136 = vmatpush.bf16.xpose.msra.mxu1 %v1313_v19 }
 0x218   : > { %3137 = vmatpush.bf16.xpose.msra.mxu2 %v1313_v19  ;;  %3138 = vmatpush.bf16.xpose.msra.mxu3 %v1313_v19 }
 0x219   : > { %2149 = vadd.xlane.f32.xlu2 %v2130_v35  ;;  %2155 = vadd.xlane.f32.xlu0 %v2133_v1  ;;  %v5187_v7 = vpop.permute.xlu0 %1880  ;;  %v2859_v35 = vld [vmem:[#allocation2 + $0x30] sm:$0xff] }
 0x21a   : > { %v5172_v62 = vpop.permute.xlu1 %1860 }
 0x21b   : > { %v5176_v15 = vpop.permute.xlu2 %1855 }
 0x21e   : > { %2157 = vadd.xlane.f32.xlu1 %v2134_v13 }
 0x21f   : > { %1453 = vmatpush.bf16.xpose.msra.mxu0 %v1312_v9  ;;  %3139 = vmatpush.bf16.xpose.msra.mxu1 %v1312_v9 }
 0x220   : > { %3140 = vmatpush.bf16.xpose.msra.mxu2 %v1312_v9  ;;  %3141 = vmatpush.bf16.xpose.msra.mxu3 %v1312_v9 }
 0x221   : > { %2153 = vadd.xlane.f32.xlu2 %v2132_v38  ;;  %2161 = vadd.xlane.f32.xlu0 %v2136_v14  ;;  %v5194_v8 = vpop.permute.xlu0 %1895  ;;  %v2860_v38 = vld [vmem:[#allocation2 + $0x38] sm:$0xff] }
 0x222   : > { %v5182_v22 = vpop.permute.xlu1 %1875  ;;  %v2864_v14 = vld [vmem:[#allocation2 + $0x58] sm:$0xff] }
 0x223   : > { %v5185_v44 = vpop.permute.xlu2 %1870 }
 0x226   : > { %2163 = vadd.xlane.f32.xlu1 %v2137_v37 }
 0x227   : > { %1454 = vmatpush.bf16.xpose.msra.mxu0 %v1311_v39  ;;  %3142 = vmatpush.bf16.xpose.msra.mxu1 %v1311_v39 }
 0x228   : > { %3143 = vmatpush.bf16.xpose.msra.mxu2 %v1311_v39  ;;  %3144 = vmatpush.bf16.xpose.msra.mxu3 %v1311_v39 }
 0x229   : > { %2159 = vadd.xlane.f32.xlu2 %v2135_v28  ;;  %2167 = vadd.xlane.f32.xlu0 %v2139_v57  ;;  %v5200_v1 = vpop.permute.xlu0 %1910 }
 0x22a   : > { %v5190_v30 = vpop.permute.xlu1 %1890 }
 0x22b   : > { %v5192_v24 = vpop.permute.xlu2 %1885 }
 0x22e   : > { %1455 = vmatmul.bf16.vlgmr.msra.gmra.mxu0 %v2853_v32  ;;  %1475 = vmatmul.bf16.vlgmr.msra.gmra.mxu1 %v2857_v11 }
 0x22f   : > { %1495 = vmatmul.bf16.vlgmr.msra.gmra.mxu2 %v2861_v2  ;;  %1515 = vmatmul.bf16.vlgmr.msra.gmra.mxu3 %v2865_v12  ;;  %v2111_v2 = vld [vmem:[%s5231_s22] sm:$0xff] }
 0x230   : > { %2169 = vadd.xlane.f32.xlu1 %v2140_v6 }
 0x231   : > { %2165 = vadd.xlane.f32.xlu2 %v2138_v18  ;;  %v5206_v13 = vpop.permute.xlu0 %1925  ;;  %v2112_v18 = vld [vmem:[%s5231_s22 + $0x8] sm:$0xff] }
 0x232   : > { %v5196_v61 = vpop.permute.xlu1 %1905 }
 0x233   : > { %v5198_v19 = vpop.permute.xlu2 %1900 }
 0x239   : > { %2171 = vadd.xlane.f32.xlu2 %v2141_v4  ;;  %v5212_v59 = vpop.permute.xlu0 %1940 }
 0x23a   : > { %v5202_v46 = vpop.permute.xlu1 %1920 }
 0x23b   : > { %v5204_v31 = vpop.permute.xlu2 %1915 }
 0x23e   : > { %1460 = vmatmul.bf16.gmra.mxu0 %v2854_v48  ;;  %1480 = vmatmul.bf16.gmra.mxu1 %v2858_v54 }
 0x23f   : > { %1500 = vmatmul.bf16.gmra.mxu2 %v2862_v21  ;;  %1520 = vmatmul.bf16.gmra.mxu3 %v2866_v43 }
 0x241   : > { %v5218_v39 = vpop.permute.xlu0 %1955 }
 0x242   : > { %v5208_v9 = vpop.permute.xlu1 %1935 }
 0x243   : > { %v5210_v56 = vpop.permute.xlu2 %1930 }
 0x249   : > { %v5224_v32 = vpop.permute.xlu0 %1970 }
 0x24a   : > { %v5214_v51 = vpop.permute.xlu1 %1950  ;;  %5857 = vst [vmem:[#allocation57_spill] sm:$0xff] %v5224_v32 }
 0x24b   : > { %v5216_v37 = vpop.permute.xlu2 %1945 }
 0x24e   : > { %1465 = vmatmul.bf16.gmra.mxu0 %v2855_v3  ;;  %1485 = vmatmul.bf16.gmra.mxu1 %v2859_v35  ;;  %v2113_v35 = vld [vmem:[%s5231_s22 + $0x10] sm:$0xff] }
 0x24f   : > { %1505 = vmatmul.bf16.gmra.mxu2 %v2863_v52  ;;  %1525 = vmatmul.bf16.gmra.mxu3 %v2867_v47 }
 0x252   : > { %v5220_v28 = vpop.permute.xlu1 %1965 }
 0x253   : > { %5856 = vst [vmem:[#allocation56_spill] sm:$0xff] %v5220_v28  ;;  %v5222_v57 = vpop.permute.xlu2 %1960 }
 0x25a   : > { %v5226_v11 = vpop.permute.xlu1 %1980 }
 0x25b   : > { %5858 = vst [vmem:[#allocation58_spill] sm:$0xff] %v5226_v11  ;;  %v5233_v49 = vpop.permute.xlu2 %1975 }
 0x25c   : > { %5859 = vst [vmem:[#allocation59_spill] sm:$0xff] %v5233_v49 }
 0x25e   : > { %1470 = vmatmul.bf16.gmra.mxu0 %v2856_v10  ;;  %1490 = vmatmul.bf16.gmra.mxu1 %v2860_v38  ;;  %v2114_v38 = vld [vmem:[%s5231_s22 + $0x18] sm:$0xff] }
 0x25f   : > { %1510 = vmatmul.bf16.gmra.mxu2 %v2864_v14  ;;  %1530 = vmatmul.bf16.gmra.mxu3 %v2868_v23  ;;  %v2117_v14 = vld [vmem:[%s5231_s22 + $0x30] sm:$0xff] }
 0x262   : > { %v5236_v6 = vpop.permute.xlu1 %1985 }
 0x263   : > { %5860 = vst [vmem:[#allocation60_spill] sm:$0xff] %v5236_v6 }
 0x27c   : > { %v2144_v12 = vpop.xlane.xlu0 %2143 }
 0x27d   : > { %v2175_v29 = vmul.f32 %v2144_v12, %v2111_v2 }
 0x27f   : > { %v2191_v54 = vsel %vm1795_vm11, %v2175_v29, 0.0 }
 0x284   : > { %v2146_v4 = vpop.xlane.xlu2 %2145  ;;  %v2152_v48 = vpop.xlane.xlu0 %2151 }
 0x285   : > { %v2176_v21 = vmul.f32 %v2146_v4, %v2112_v18  ;;  %v2179_v43 = vmul.f32 %v2152_v48, %v2115_v42  ;;  %v2118_v42 = vld [vmem:[%s5231_s22 + $0x38] sm:$0xff] }
 0x287   : > { %v2192_v3 = vsel %vm1795_vm11, %v2176_v21, 0.0  ;;  %v2198_v48 = vsel %vm1795_vm11, %v2179_v43, 0.0 }
 0x288   : > { %v2193_v52 = vadd.f32 %v2192_v3, %v2191_v54  ;;  %v2116_v3 = vld [vmem:[%s5231_s22 + $0x28] sm:$0xff] }
 0x289   : > { %v2148_v47 = vpop.xlane.xlu1 %2147 }
 0x28a   : > { %v2177_v10 = vmul.f32 %v2148_v47, %v2113_v35  ;;  %v2120_v47 = vld [vmem:[%s5231_s22 + $0x48] sm:$0xff] }
 0x28c   : > { %v2194_v23 = vsel %vm1795_vm11, %v2177_v10, 0.0  ;;  %v2150_v2 = vpop.xlane.xlu2 %2149  ;;  %v2156_v12 = vpop.xlane.xlu0 %2155 }
 0x28d   : > { %v2195_v34 = vadd.f32 %v2194_v23, %v2193_v52  ;;  %v2178_v36 = vmul.f32 %v2150_v2, %v2114_v38  ;;  %v2181_v29 = vmul.f32 %v2156_v12, %v2117_v14  ;;  %v2121_v38 = vld [vmem:[%s5231_s22 + $0x50] sm:$0xff]  ;;  %v2119_v2 = vld [vmem:[%s5231_s22 + $0x40] sm:$0xff] }
 0x28f   : > { %v2196_v18 = vsel %vm1795_vm11, %v2178_v36, 0.0 }
 0x290   : > { %v2197_v4 = vadd.f32 %v2196_v18, %v2195_v34  ;;  %v2202_v34 = vsel %vm1795_vm11, %v2181_v29, 0.0  ;;  %v2122_v29 = vld [vmem:[%s5231_s22 + $0x58] sm:$0xff] }
 0x291   : > { %v2158_v54 = vpop.xlane.xlu1 %2157 }
 0x292   : > { %v2182_v21 = vmul.f32 %v2158_v54, %v2118_v42  ;;  %v2199_v35 = vadd.f32 %v2198_v48, %v2197_v4 }
 0x294   : > { %v2154_v5 = vpop.xlane.xlu2 %2153  ;;  %v2162_v10 = vpop.xlane.xlu0 %2161  ;;  %v2204_v12 = vsel %vm1795_vm11, %v2182_v21, 0.0 }
 0x295   : > { %v2180_v40 = vmul.f32 %v2154_v5, %v2116_v3  ;;  %v2184_v45 = vmul.f32 %v2162_v10, %v2120_v47  ;;  %v2123_v3 = vld [vmem:[%s5231_s22 + $0x60] sm:$0xff] }
 0x297   : > { %v2200_v52 = vsel %vm1795_vm11, %v2180_v40, 0.0  ;;  %v2208_v40 = vsel %vm1795_vm11, %v2184_v45, 0.0  ;;  %v2125_v45 = vld [vmem:[%s5231_s22 + $0x70] sm:$0xff] }
 0x298   : > { %v2201_v14 = vadd.f32 %v2200_v52, %v2199_v35 }
 0x299   : > { %v2164_v36 = vpop.xlane.xlu1 %2163 }
 0x29a   : > { %v2203_v43 = vadd.f32 %v2202_v34, %v2201_v14  ;;  %v2185_v23 = vmul.f32 %v2164_v36, %v2121_v38 }
 0x29c   : > { %v2160_v18 = vpop.xlane.xlu2 %2159  ;;  %v2205_v42 = vadd.f32 %v2204_v12, %v2203_v43  ;;  %v2168_v35 = vpop.xlane.xlu0 %2167  ;;  %v2210_v47 = vsel %vm1795_vm11, %v2185_v23, 0.0  ;;  %v2124_v43 = vld [vmem:[%s5231_s22 + $0x68] sm:$0xff] }
 0x29d   : > { %v2183_v4 = vmul.f32 %v2160_v18, %v2119_v2  ;;  %v2187_v38 = vmul.f32 %v2168_v35, %v2123_v3 }
 0x29f   : > { %v2206_v5 = vsel %vm1795_vm11, %v2183_v4, 0.0  ;;  %v2214_v36 = vsel %vm1795_vm11, %v2187_v38, 0.0 }
 0x2a0   : > { %v2207_v48 = vadd.f32 %v2206_v5, %v2205_v42 }
 0x2a2   : > { %v2209_v54 = vadd.f32 %v2208_v40, %v2207_v48 }
 0x2a3   : > { %v2170_v2 = vpop.xlane.xlu1 %2169 }
 0x2a4   : > { %v2166_v10 = vpop.xlane.xlu2 %2165  ;;  %v2211_v52 = vadd.f32 %v2210_v47, %v2209_v54  ;;  %v2188_v4 = vmul.f32 %v2170_v2, %v2124_v43 }
 0x2a5   : > { %v2186_v21 = vmul.f32 %v2166_v10, %v2122_v29 }
 0x2a6   : > { %v2216_v35 = vsel %vm1795_vm11, %v2188_v4, 0.0 }
 0x2a7   : > { %v2212_v14 = vsel %vm1795_vm11, %v2186_v21, 0.0 }
 0x2a8   : > { %v2213_v34 = vadd.f32 %v2212_v14, %v2211_v52 }
 0x2aa   : > { %v2215_v12 = vadd.f32 %v2214_v36, %v2213_v34  ;;  %v5268_v36 = vld [vmem:[%s3880_s8] ss:$0 sm:$0xff] }
 0x2ab   : > { %v1456_v18 = vpop.f32.mrf.mxu0  ;;  %v1476_v42 = vpop.f32.mrf.mxu1 }
 0x2ac   : > { %v2172_v5 = vpop.xlane.xlu2 %2171  ;;  %v2814_v48 = vadd.f32 -20.0, %v1456_v18  ;;  %v2822_v23 = vadd.f32 -20.0, %v1476_v42  ;;  %v2217_v29 = vadd.f32 %v2216_v35, %v2215_v12 }
 0x2ad   : > { %v2189_v40 = vmul.f32 %v2172_v5, %v2125_v45 }
 0x2ae   : > { %v1568_v54 = vmul.f32 1.442695, %v2814_v48  ;;  %v1584_v3 = vmul.f32 1.442695, %v2822_v23 }
 0x2af   : > { %v2218_v47 = vsel %vm1795_vm11, %v2189_v40, 0.0 }
 0x2b0   : > { %3366 = vpow2.f32 %v1568_v54  ;;  %v5270_v18 = vadd.f32 %v2218_v47, %v2217_v29 }
 0x2b1   : > { %3368 = vpow2.f32 %v1584_v3 }
 0x2b2   : > { %v1496_v10 = vpop.f32.mrf.mxu2  ;;  %v1516_v52 = vpop.f32.mrf.mxu3  ;;  %5861 = vst [vmem:[#allocation61_spill] sm:$0xff] %v5270_v18 }
 0x2b3   : > { %v2830_v38 = vadd.f32 -20.0, %v1496_v10  ;;  %v2838_v21 = vadd.f32 -20.0, %v1516_v52  ;;  %v1458_v14 = vpop.f32.mrf.mxu0  ;;  %v1478_v34 = vpop.f32.mrf.mxu1 }
 0x2b4   : > { %v2815_v45 = vadd.f32 -20.0, %v1458_v14  ;;  %v2823_v4 = vadd.f32 -20.0, %v1478_v34 }
 0x2b5   : > { %v1600_v43 = vmul.f32 1.442695, %v2830_v38  ;;  %v1616_v2 = vmul.f32 1.442695, %v2838_v21 }
 0x2b6   : > { %v3367_v42 = vpop.eup %3366  ;;  %v1570_v23 = vmul.f32 1.442695, %v2815_v45  ;;  %v1586_v40 = vmul.f32 1.442695, %v2823_v4 }
 0x2b7   : > { %v3369_v5 = vpop.eup %3368  ;;  %3370 = vpow2.f32 %v1600_v43  ;;  %v5273_v12 = vmul.f32 %v3367_v42, %v5268_v36 }
 0x2b8   : > { %3372 = vpow2.f32 %v1616_v2  ;;  %v5276_v48 = vmul.f32 %v3369_v5, %v5268_v36 }
 0x2b9   : > { %1699 = vadd.xlane.f32.xlu1 %v5273_v12  ;;  %3374 = vpow2.f32 %v1570_v23 }
 0x2ba   : > { %v1498_v54 = vpop.f32.mrf.mxu2  ;;  %v1518_v3 = vpop.f32.mrf.mxu3  ;;  %1715 = vadd.xlane.f32.xlu0 %v5276_v48  ;;  %3376 = vpow2.f32 %v1586_v40 }
 0x2bb   : > { %v2831_v35 = vadd.f32 -20.0, %v1498_v54  ;;  %v1461_v29 = vpop.f32.mrf.mxu0  ;;  %v2839_v47 = vadd.f32 -20.0, %v1518_v3  ;;  %v1481_v14 = vpop.f32.mrf.mxu1 }
 0x2bc   : > { %v2816_v38 = vadd.f32 -20.0, %v1461_v29  ;;  %v2824_v3 = vadd.f32 -20.0, %v1481_v14 }
 0x2bd   : > { %v3371_v10 = vpop.eup %3370  ;;  %v1602_v52 = vmul.f32 1.442695, %v2831_v35  ;;  %v1618_v2 = vmul.f32 1.442695, %v2839_v47 }
 0x2be   : > { %v3373_v21 = vpop.eup %3372  ;;  %v5281_v34 = vmul.f32 %v3371_v10, %v5268_v36  ;;  %v1572_v45 = vmul.f32 1.442695, %v2816_v38 }
 0x2bf   : > { %3378 = vpow2.f32 %v1602_v52  ;;  %v5284_v43 = vmul.f32 %v3373_v21, %v5268_v36  ;;  %v3375_v5 = vpop.eup %3374 }
 0x2c0   : > { %1731 = vadd.xlane.f32.xlu2 %v5281_v34  ;;  %v3377_v40 = vpop.eup %3376  ;;  %3380 = vpow2.f32 %v1618_v2  ;;  %v5292_v38 = vmul.f32 %v3375_v5, %v5268_v36 }
 0x2c1   : > { %1747 = vadd.xlane.f32.xlu1 %v5284_v43  ;;  %3382 = vpow2.f32 %v1572_v45  ;;  %v5295_v21 = vmul.f32 %v3377_v40, %v5268_v36 }
 0x2c2   : > { %v1501_v42 = vpop.f32.mrf.mxu2  ;;  %v1521_v4 = vpop.f32.mrf.mxu3 }
 0x2c3   : > { %v2832_v23 = vadd.f32 -20.0, %v1501_v42  ;;  %v1463_v54 = vpop.f32.mrf.mxu0  ;;  %v2840_v10 = vadd.f32 -20.0, %v1521_v4  ;;  %v1588_v42 = vmul.f32 1.442695, %v2824_v3  ;;  %v1483_v50 = vpop.f32.mrf.mxu1 }
 0x2c4   : > { %v2817_v52 = vadd.f32 -20.0, %v1463_v54 }
 0x2c5   : > { %v3379_v35 = vpop.eup %3378  ;;  %v1604_v29 = vmul.f32 1.442695, %v2832_v23  ;;  %v1620_v14 = vmul.f32 1.442695, %v2840_v10 }
 0x2c6   : > { %v5289_v47 = vmul.f32 %v3379_v35, %v5268_v36  ;;  %v3381_v2 = vpop.eup %3380  ;;  %v1574_v45 = vmul.f32 1.442695, %v2817_v52  ;;  %v2825_v35 = vadd.f32 -20.0, %v1483_v50 }
 0x2c7   : > { %3384 = vpow2.f32 %v1604_v29  ;;  %v3383_v23 = vpop.eup %3382  ;;  %v5301_v3 = vmul.f32 %v3381_v2, %v5268_v36 }
 0x2c8   : > { %1733 = vadd.xlane.f32.xlu0 %v5289_v47  ;;  %1701 = vadd.xlane.f32.xlu2 %v5292_v38  ;;  %3386 = vpow2.f32 %v1588_v42  ;;  %v5304_v10 = vmul.f32 %v3383_v23, %v5268_v36  ;;  %v1590_v52 = vmul.f32 1.442695, %v2825_v35 }
 0x2c9   : > { %1717 = vadd.xlane.f32.xlu1 %v5295_v21  ;;  %3388 = vpow2.f32 %v1620_v14 }
 0x2ca   : > { %v1503_v4 = vpop.f32.mrf.mxu2  ;;  %v1523_v54 = vpop.f32.mrf.mxu3  ;;  %3390 = vpow2.f32 %v1574_v45 }
 0x2cb   : > { %v1466_v5 = vpop.f32.mrf.mxu0  ;;  %v2833_v40 = vadd.f32 -20.0, %v1503_v4  ;;  %v2841_v55 = vadd.f32 -20.0, %v1523_v54  ;;  %v1486_v2 = vpop.f32.mrf.mxu1  ;;  %3392 = vpow2.f32 %v1590_v52 }
 0x2cc   : > { %v2818_v23 = vadd.f32 -20.0, %v1466_v5  ;;  %v2826_v35 = vadd.f32 -20.0, %v1486_v2 }
 0x2cd   : > { %v3385_v29 = vpop.eup %3384  ;;  %v1606_v50 = vmul.f32 1.442695, %v2833_v40  ;;  %v1622_v14 = vmul.f32 1.442695, %v2841_v55 }
 0x2ce   : > { %v5307_v25 = vmul.f32 %v3385_v29, %v5268_v36  ;;  %v3387_v42 = vpop.eup %3386  ;;  %v1576_v33 = vmul.f32 1.442695, %v2818_v23 }
 0x2cf   : > { %v3389_v45 = vpop.eup %3388  ;;  %3394 = vpow2.f32 %v1606_v50  ;;  %v5316_v40 = vmul.f32 %v3387_v42, %v5268_v36  ;;  %v1592_v50 = vmul.f32 1.442695, %v2826_v35 }
 0x2d0   : > { %1703 = vadd.xlane.f32.xlu0 %v5304_v10  ;;  %1749 = vadd.xlane.f32.xlu2 %v5301_v3  ;;  %v3391_v60 = vpop.eup %3390  ;;  %3396 = vpow2.f32 %v1622_v14  ;;  %v5313_v41 = vmul.f32 %v3389_v45, %v5268_v36 }
 0x2d1   : > { %1735 = vadd.xlane.f32.xlu1 %v5307_v25  ;;  %v5319_v55 = vmul.f32 %v3391_v60, %v5268_v36  ;;  %v3393_v52 = vpop.eup %3392  ;;  %3398 = vpow2.f32 %v1576_v33 }
 0x2d2   : > { %v1506_v4 = vpop.f32.mrf.mxu2  ;;  %v1526_v0 = vpop.f32.mrf.mxu3  ;;  %v5325_v18 = vmul.f32 %v3393_v52, %v5268_v36 }
 0x2d3   : > { %v1468_v54 = vpop.f32.mrf.mxu0  ;;  %v2834_v29 = vadd.f32 -20.0, %v1506_v4  ;;  %v2842_v42 = vadd.f32 -20.0, %v1526_v0  ;;  %v1488_v20 = vpop.f32.mrf.mxu1 }
 0x2d4   : > { %v2819_v60 = vadd.f32 -20.0, %v1468_v54 }
 0x2d5   : > { %v1608_v5 = vmul.f32 1.442695, %v2834_v29  ;;  %v3395_v14 = vpop.eup %3394  ;;  %v1624_v11 = vmul.f32 1.442695, %v2842_v42 }
 0x2d6   : > { %v3397_v45 = vpop.eup %3396  ;;  %v5328_v29 = vmul.f32 %v3395_v14, %v5268_v36  ;;  %v1578_v33 = vmul.f32 1.442695, %v2819_v60 }
 0x2d7   : > { %3400 = vpow2.f32 %v1608_v5  ;;  %v5331_v35 = vmul.f32 %v3397_v45, %v5268_v36  ;;  %v3399_v54 = vpop.eup %3398 }
 0x2d8   : > { %1751 = vadd.xlane.f32.xlu0 %v5313_v41  ;;  %1719 = vadd.xlane.f32.xlu2 %v5316_v40  ;;  %3402 = vpow2.f32 %v1592_v50  ;;  %v2827_v50 = vadd.f32 -20.0, %v1488_v20  ;;  %v1639_v60 = vmul.f32 %v3399_v54, %v5268_v36  ;;  %v1988_v54 = vmul.f32 %v5168_v27, %v5273_v12 }
 0x2d9   : > { %1705 = vadd.xlane.f32.xlu1 %v5319_v55  ;;  %5862 = vst [vmem:[#allocation62_spill] sm:$0xff] %v5331_v35  ;;  %3404 = vpow2.f32 %v1624_v11  ;;  %v1989_v11 = vmul.f32 %v5154_v16, %v5292_v38  ;;  %v1991_v16 = vmul.f32 %v5166_v26, %v5319_v55 }
 0x2da   : > { %v1508_v2 = vpop.f32.mrf.mxu2  ;;  %v1528_v0 = vpop.f32.mrf.mxu3  ;;  %3406 = vpow2.f32 %v1578_v33  ;;  %v1594_v28 = vmul.f32 1.442695, %v2827_v50  ;;  %v1990_v50 = vmul.f32 %v5157_v53, %v5304_v10 }
 0x2db   : > { %v1471_v4 = vpop.f32.mrf.mxu0  ;;  %v2835_v23 = vadd.f32 -20.0, %v1508_v2  ;;  %v1491_v42 = vpop.f32.mrf.mxu1 }
 0x2dc   : > { %v2820_v6 = vadd.f32 -20.0, %v1471_v4  ;;  %v2843_v4 = vadd.f32 -20.0, %v1528_v0 }
 0x2dd   : > { %v1610_v5 = vmul.f32 1.442695, %v2835_v23  ;;  %v3401_v52 = vpop.eup %3400 }
 0x2de   : > { %v1580_v2 = vmul.f32 1.442695, %v2820_v6  ;;  %v3403_v49 = vpop.eup %3402  ;;  %v5337_v32 = vmul.f32 %v3401_v52, %v5268_v36  ;;  %v1626_v20 = vmul.f32 1.442695, %v2843_v4  ;;  %v2020_v4 = vadd.f32 %v1989_v11, %v1988_v54 }
 0x2df   : > { %3408 = vpow2.f32 %v1610_v5  ;;  %v5341_v23 = vmul.f32 %v3403_v49, %v5268_v36  ;;  %v3405_v0 = vpop.eup %3404 }
 0x2e0   : > { %1721 = vadd.xlane.f32.xlu0 %v5325_v18  ;;  %1737 = vadd.xlane.f32.xlu2 %v5328_v29  ;;  %3410 = vpow2.f32 %v1580_v2  ;;  %v3407_v5 = vpop.eup %3406  ;;  %v2828_v2 = vadd.f32 -20.0, %v1491_v42  ;;  %v5355_v27 = vmul.f32 %v3405_v0, %v5268_v36  ;;  %v2021_v12 = vadd.f32 %v2020_v4, %v1990_v50 }
 0x2e1   : > { %1753 = vadd.xlane.f32.xlu1 %v5331_v35  ;;  %3412 = vpow2.f32 %v1594_v28  ;;  %v1992_v42 = vmul.f32 %v5161_v17, %v1639_v60 }
 0x2e2   : > { %v1511_v6 = vpop.f32.mrf.mxu2  ;;  %v1531_v52 = vpop.f32.mrf.mxu3  ;;  %3414 = vpow2.f32 %v1626_v20  ;;  %v1596_v53 = vmul.f32 1.442695, %v2828_v2  ;;  %v2022_v11 = vadd.f32 %v2021_v12, %v1991_v16 }
 0x2e3   : > { %v1473_v14 = vpop.f32.mrf.mxu0  ;;  %v2836_v35 = vadd.f32 -20.0, %v1511_v6  ;;  %v2844_v38 = vadd.f32 -20.0, %v1531_v52  ;;  %v1493_v10 = vpop.f32.mrf.mxu1 }
 0x2e4   : > { %v2821_v45 = vadd.f32 -20.0, %v1473_v14  ;;  %v2829_v52 = vadd.f32 -20.0, %v1493_v10 }
 0x2e5   : > { %v3409_v49 = vpop.eup %3408  ;;  %v1612_v55 = vmul.f32 1.442695, %v2836_v35 }
 0x2e6   : > { %v1582_v33 = vmul.f32 1.442695, %v2821_v45  ;;  %v3411_v14 = vpop.eup %3410  ;;  %v1640_v45 = vmul.f32 %v3407_v5, %v5268_v36  ;;  %v5358_v28 = vmul.f32 %v3409_v49, %v5268_v36  ;;  %v2023_v49 = vadd.f32 %v2022_v11, %v1992_v42 }
 0x2e7   : > { %v1641_v20 = vmul.f32 %v3411_v14, %v5268_v36  ;;  %v3413_v26 = vpop.eup %3412  ;;  %v1598_v4 = vmul.f32 1.442695, %v2829_v52 }
 0x2e8   : > { %1739 = vadd.xlane.f32.xlu0 %v5337_v32  ;;  %1707 = vadd.xlane.f32.xlu2 %v1639_v60  ;;  %3416 = vpow2.f32 %v1582_v33  ;;  %v3415_v6 = vpop.eup %3414  ;;  %v1628_v33 = vmul.f32 1.442695, %v2844_v38  ;;  %v1993_v5 = vmul.f32 %v5176_v15, %v1640_v45  ;;  %v1648_v50 = vmul.f32 %v3413_v26, %v5268_v36 }
 0x2e9   : > { %1723 = vadd.xlane.f32.xlu1 %v5341_v23  ;;  %3418 = vpow2.f32 %v1596_v53  ;;  %v1994_v17 = vmul.f32 %v5172_v62, %v1641_v20  ;;  %v5368_v2 = vmul.f32 %v3415_v6, %v5268_v36  ;;  %v1997_v26 = vmul.f32 %v5182_v22, %v5295_v21 }
 0x2ea   : > { %v1513_v0 = vpop.f32.mrf.mxu2  ;;  %3420 = vpow2.f32 %v1612_v55  ;;  %v2024_v35 = vadd.f32 %v2023_v49, %v1993_v5  ;;  %v1533_v12 = vpop.f32.mrf.mxu3  ;;  %v2000_v5 = vmul.f32 %v5190_v30, %v5341_v23  ;;  %v2004_v30 = vmul.f32 %v5200_v1, %v5281_v34 }
 0x2eb   : > { %v2837_v60 = vadd.f32 -20.0, %v1513_v0  ;;  %3422 = vpow2.f32 %v1628_v33  ;;  %v2845_v6 = vadd.f32 -20.0, %v1533_v12  ;;  %v2008_v1 = vmul.f32 %v5210_v56, %v5337_v32  ;;  %v5865_v12 = vld [vmem:[#allocation57_spill] sm:$0xff] }
 0x2ec   : > { %v2025_v15 = vadd.f32 %v2024_v35, %v1994_v17  ;;  %3424 = vpow2.f32 %v1598_v4  ;;  %v2014_v56 = vmul.f32 %v5222_v57, %v5313_v41  ;;  %v1667_v41 = vld [vmem:[#allocation3] sm:$0xff] }
 0x2ed   : > { %v1614_v38 = vmul.f32 1.442695, %v2837_v60  ;;  %v1630_v21 = vmul.f32 1.442695, %v2845_v6 }
 0x2ee   : > { %v3417_v54 = vpop.eup %3416 }
 0x2ef   : > { %v1642_v14 = vmul.f32 %v3417_v54, %v5268_v36  ;;  %v3419_v62 = vpop.eup %3418  ;;  %3426 = vpow2.f32 %v1614_v38  ;;  %v2001_v54 = vmul.f32 %v5194_v8, %v1648_v50 }
 0x2f0   : > { %1709 = vadd.xlane.f32.xlu0 %v1640_v45  ;;  %1755 = vadd.xlane.f32.xlu2 %v5355_v27  ;;  %v1996_v45 = vmul.f32 %v5185_v44, %v5276_v48  ;;  %v3421_v10 = vpop.eup %3420  ;;  %v1999_v48 = vmul.f32 %v5192_v24, %v5325_v18  ;;  %3428 = vpow2.f32 %v1630_v21 }
 0x2f1   : > { %1741 = vadd.xlane.f32.xlu1 %v5358_v28  ;;  %v1995_v16 = vmul.f32 %v5178_v58, %v1642_v14  ;;  %v3423_v42 = vpop.eup %3422  ;;  %v1998_v58 = vmul.f32 %v5187_v7, %v5316_v40  ;;  %v1657_v11 = vmul.f32 %v3421_v10, %v5268_v36  ;;  %v5866_v10 = vld [vmem:[#allocation59_spill] sm:$0xff] }
 0x2f2   : > { %v1665_v44 = vmul.f32 %v3423_v42, %v5268_v36  ;;  %v3425_v22 = vpop.eup %3424  ;;  %v5867_v42 = vld [vmem:[#allocation58_spill] sm:$0xff] }
 0x2f3   : > { %v2026_v53 = vadd.f32 %v2025_v15, %v1995_v16  ;;  %v1650_v52 = vmul.f32 %v3425_v22, %v5268_v36  ;;  %v1683_v22 = vld [vmem:[#allocation3 + $0x80] sm:$0xff] }
 0x2f5   : > { %v2027_v55 = vadd.f32 %v2026_v53, %v1996_v45  ;;  %v3427_v40 = vpop.eup %3426  ;;  %v2003_v60 = vmul.f32 %v5196_v61, %v1650_v52  ;;  %v2007_v61 = vmul.f32 %v5206_v13, %v5328_v29  ;;  %v2012_v13 = vmul.f32 %v5214_v51, %v5284_v43 }
 0x2f6   : > { %v1658_v24 = vmul.f32 %v3427_v40, %v5268_v36  ;;  %v3429_v8 = vpop.eup %3428  ;;  %v2013_v29 = vmul.f32 %v5218_v39, %v5301_v3  ;;  %v2017_v51 = vmul.f32 %v5866_v10, %v5368_v2  ;;  %v5868_v3 = vld [vmem:[#allocation60_spill] sm:$0xff]  ;;  %v1694_v10 = vld [vmem:[#allocation3 + $0xd8] sm:$0xff] }
 0x2f7   : > { %v2028_v33 = vadd.f32 %v2027_v55, %v1997_v26  ;;  %v1666_v15 = vmul.f32 %v3429_v8, %v5268_v36  ;;  %v2018_v26 = vmul.f32 %v5867_v42, %v1665_v44 }
 0x2f8   : > { %1757 = vadd.xlane.f32.xlu0 %v5368_v2  ;;  %1725 = vadd.xlane.f32.xlu2 %v1648_v50  ;;  %v2005_v50 = vmul.f32 %v5204_v31, %v5289_v47  ;;  %v2009_v31 = vmul.f32 %v5208_v9, %v5358_v28  ;;  %v5863_v9 = vld [vmem:[#allocation62_spill] sm:$0xff]  ;;  %v5864_v28 = vld [vmem:[#allocation56_spill] sm:$0xff] }
 0x2f9   : > { %1711 = vadd.xlane.f32.xlu1 %v1641_v20  ;;  %v1649_v20 = vmul.f32 %v3419_v62, %v5268_v36  ;;  %v2029_v0 = vadd.f32 %v2028_v33, %v1998_v58  ;;  %v2011_v36 = vmul.f32 %v5216_v37, %v1658_v24  ;;  %v2015_v45 = vmul.f32 %v5864_v28, %v5863_v9  ;;  %v1675_v58 = vld [vmem:[#allocation3 + $0x40] sm:$0xff] }
 0x2fa   : > { %v2016_v37 = vmul.f32 %v5865_v12, %v5355_v27  ;;  %v2019_v55 = vmul.f32 %v5868_v3, %v1666_v15 }
 0x2fb   : > { %v2030_v7 = vadd.f32 %v2029_v0, %v1999_v48  ;;  %v2002_v17 = vmul.f32 %v5198_v19, %v1649_v20  ;;  %v2006_v19 = vmul.f32 %v5202_v46, %v5307_v25  ;;  %v2010_v25 = vmul.f32 %v5212_v59, %v1657_v11 }
 0x2fd   : > { %v2031_v49 = vadd.f32 %v2030_v7, %v2000_v5 }
 0x2ff   : > { %v2032_v18 = vadd.f32 %v2031_v49, %v2001_v54 }
 0x300   : > { %1727 = vadd.xlane.f32.xlu0 %v1649_v20  ;;  %1743 = vadd.xlane.f32.xlu2 %v1657_v11 }
 0x301   : > { %1759 = vadd.xlane.f32.xlu1 %v1665_v44  ;;  %v2033_v35 = vadd.f32 %v2032_v18, %v2002_v17  ;;  %v1691_v44 = vld [vmem:[#allocation3 + $0xc0] sm:$0xff]  ;;  %v1668_v18 = vld [vmem:[#allocation3 + $0x8] sm:$0xff] }
 0x303   : > { %v2034_v23 = vadd.f32 %v2033_v35, %v2003_v60  ;;  %v1676_v60 = vld [vmem:[#allocation3 + $0x48] sm:$0xff] }
 0x305   : > { %v2035_v4 = vadd.f32 %v2034_v23, %v2004_v30 }
 0x307   : > { %v2036_v16 = vadd.f32 %v2035_v4, %v2005_v50 }
 0x308   : > { %1745 = vadd.xlane.f32.xlu0 %v1658_v24  ;;  %1713 = vadd.xlane.f32.xlu2 %v1642_v14  ;;  %v1684_v24 = vld [vmem:[#allocation3 + $0x88] sm:$0xff] }
 0x309   : > { %1729 = vadd.xlane.f32.xlu1 %v1650_v52  ;;  %v2037_v14 = vadd.f32 %v2036_v16, %v2006_v19  ;;  %v1669_v16 = vld [vmem:[#allocation3 + $0x10] sm:$0xff] }
 0x30b   : > { %v2038_v34 = vadd.f32 %v2037_v14, %v2007_v61  ;;  %v1692_v61 = vld [vmem:[#allocation3 + $0xc8] sm:$0xff]  ;;  %v1006_v14 = vld [vmem:[%s3880_s8] sm:$0x1] }
 0x30d   : > { %v2039_v47 = vadd.f32 %v2038_v34, %v2008_v1  ;;  %v1685_v1 = vld [vmem:[#allocation3 + $0x90] sm:$0xff] }
 0x30f   : > { %v2040_v46 = vadd.f32 %v2039_v47, %v2009_v31 }
 0x310   : > { %2173 = vadd.xlane.f32.xlu0 %v5143_v63  ;;  %1761 = vadd.xlane.f32.xlu2 %v1666_v15 }
 0x311   : > { %v2041_v38 = vadd.f32 %v2040_v46, %v2010_v25 }
 0x313   : > { %v2042_v63 = vadd.f32 %v2041_v38, %v2011_v36 }
 0x315   : > { %v2043_v62 = vadd.f32 %v2042_v63, %v2012_v13 }
 0x317   : > { %v2044_v32 = vadd.f32 %v2043_v62, %v2013_v29  ;;  %v1693_v29 = vld [vmem:[#allocation3 + $0xd0] sm:$0xff] }
 0x318   : > { %v1677_v62 = vld [vmem:[#allocation3 + $0x50] sm:$0xff] }
 0x319   : > { %v2045_v59 = vadd.f32 %v2044_v32, %v2014_v56  ;;  %v1670_v56 = vld [vmem:[#allocation3 + $0x18] sm:$0xff] }
 0x31b   : > { %v2046_v53 = vadd.f32 %v2045_v59, %v2015_v45 }
 0x31d   : > { %v2047_v43 = vadd.f32 %v2046_v53, %v2016_v37  ;;  %v1678_v37 = vld [vmem:[#allocation3 + $0x58] sm:$0xff] }
 0x31e   : > { %v1686_v53 = vld [vmem:[#allocation3 + $0x98] sm:$0xff] }
 0x31f   : > { %v2048_v39 = vadd.f32 %v2047_v43, %v2017_v51 }
 0x321   : > { %v2049_v6 = vadd.f32 %v2048_v39, %v2018_v26 }
 0x323   : > { %v2050_v57 = vadd.f32 %v2049_v6, %v2019_v55  ;;  %v1687_v55 = vld [vmem:[#allocation3 + $0xa0] sm:$0xff] }
 0x324   : > { %v1671_v6 = vld [vmem:[#allocation3 + $0x20] sm:$0xff] }
 0x325   : > { %v2051_v11 = vrot.slane %v2050_v57, 4 }
 0x327   : > { %v2052_v27 = vadd.f32 %v2051_v11, %v2050_v57 }
 0x329   : > { %v2053_v2 = vrot.slane %v2052_v27, 2 }
 0x32b   : > { %v2054_v21 = vadd.f32 %v2053_v2, %v2052_v27  ;;  %v1695_v27 = vld [vmem:[#allocation3 + $0xe0] sm:$0xff]  ;;  %v1688_v2 = vld [vmem:[#allocation3 + $0xa8] sm:$0xff] }
 0x32c   : > { %v1700_v20 = vpop.xlane.xlu1 %1699 }
 0x32d   : > { %v1763_v33 = vadd.f32 %v1700_v20, %v1667_v41  ;;  %v1716_v48 = vpop.xlane.xlu0 %1715  ;;  %v2055_v54 = vrot.slane %v2054_v21, 1  ;;  %v1679_v41 = vld [vmem:[#allocation3 + $0x60] sm:$0xff] }
 0x32e   : > { %v1771_v0 = vadd.f32 %v1716_v48, %v1675_v58 }
 0x32f   : > { %1796 = vst.msk [vmem:[#allocation3] sm:$0xff] %vm1795_vm11, %v1763_v33  ;;  %v2056_v49 = vadd.f32 %v2055_v54, %v2054_v21  ;;  %v1696_v54 = vld [vmem:[#allocation3 + $0xe8] sm:$0xff] }
 0x330   : > { %1804 = vst.msk [vmem:[#allocation3 + $0x40] sm:$0xff] %vm1795_vm11, %v1771_v0  ;;  %v1672_v0 = vld [vmem:[#allocation3 + $0x28] sm:$0xff] }
 0x331   : > { %v2057_v17 = vadd.f32 1e-30, %v2056_v49  ;;  %v1673_v49 = vld [vmem:[#allocation3 + $0x30] sm:$0xff] }
 0x333   : > { %v1732_v5 = vpop.xlane.xlu2 %1731  ;;  %3430 = vlog2.f32 %v2057_v17 }
 0x334   : > { %v1779_v7 = vadd.f32 %v1732_v5, %v1683_v22  ;;  %v1748_v40 = vpop.xlane.xlu1 %1747 }
 0x335   : > { %v1787_v52 = vadd.f32 %v1748_v40, %v1691_v44 }
 0x336   : > { %1812 = vst.msk [vmem:[#allocation3 + $0x80] sm:$0xff] %vm1795_vm11, %v1779_v7 }
 0x337   : > { %1820 = vst.msk [vmem:[#allocation3 + $0xc0] sm:$0xff] %vm1795_vm11, %v1787_v52  ;;  %v1680_v52 = vld [vmem:[#allocation3 + $0x68] sm:$0xff] }
 0x339   : > { %v3431_v19 = vpop.eup %3430 }
 0x33a   : > { %v2059_v15 = vmul.f32 0.6931472, %v3431_v19 }
 0x33b   : > { %v1734_v35 = vpop.xlane.xlu0 %1733  ;;  %v1702_v30 = vpop.xlane.xlu2 %1701 }
 0x33c   : > { %v1780_v23 = vadd.f32 %v1734_v35, %v1684_v24  ;;  %v1764_v8 = vadd.f32 %v1702_v30, %v1668_v18  ;;  %v1718_v50 = vpop.xlane.xlu1 %1717  ;;  %v2060_v34 = vadd.f32 20.0, %v2059_v15 }
 0x33d   : > { %v1772_v4 = vadd.f32 %v1718_v50, %v1676_v60  ;;  %v1697_v50 = vld [vmem:[#allocation3 + $0xf0] sm:$0xff] }
 0x33e   : > { %1813 = vst.msk [vmem:[#allocation3 + $0x88] sm:$0xff] %vm1795_vm11, %v1780_v23  ;;  %v2061_v38 = vmul.f32 %v2060_v34, %v1006_v14  ;;  %v1681_v23 = vld [vmem:[#allocation3 + $0x70] sm:$0xff]  ;;  %v1674_v34 = vld [vmem:[#allocation3 + $0x38] sm:$0xff] }
 0x33f   : > { %1797 = vst.msk [vmem:[#allocation3 + $0x8] sm:$0xff] %vm1795_vm11, %v1764_v8  ;;  %v1689_v8 = vld [vmem:[#allocation3 + $0xb0] sm:$0xff] }
 0x340   : > { %1805 = vst.msk [vmem:[#allocation3 + $0x48] sm:$0xff] %vm1795_vm11, %v1772_v4  ;;  %v2063_v63 = vsel %vm2062_vm2, %v2061_v38, 0.0 }
 0x341   : > { %2064 = vadd.xlane.f32.xlu1 %v2063_v63  ;;  %v2126_v63 = vld [vmem:[%s5231_s22 + $0x78] sm:$0xff] }
 0x343   : > { %v1704_v31 = vpop.xlane.xlu0 %1703  ;;  %v1750_v47 = vpop.xlane.xlu2 %1749 }
 0x344   : > { %v1765_v25 = vadd.f32 %v1704_v31, %v1669_v16  ;;  %v1788_v46 = vadd.f32 %v1750_v47, %v1692_v61  ;;  %v1736_v36 = vpop.xlane.xlu1 %1735  ;;  %v1682_v31 = vld [vmem:[#allocation3 + $0x78] sm:$0xff] }
 0x345   : > { %v1781_v13 = vadd.f32 %v1736_v36, %v1685_v1  ;;  %v1690_v1 = vld [vmem:[#allocation3 + $0xb8] sm:$0xff] }
 0x346   : > { %1798 = vst.msk [vmem:[#allocation3 + $0x10] sm:$0xff] %vm1795_vm11, %v1765_v25 }
 0x347   : > { %1821 = vst.msk [vmem:[#allocation3 + $0xc8] sm:$0xff] %vm1795_vm11, %v1788_v46 }
 0x348   : > { %1814 = vst.msk [vmem:[#allocation3 + $0x90] sm:$0xff] %vm1795_vm11, %v1781_v13 }
 0x34b   : > { %v1752_v32 = vpop.xlane.xlu0 %1751  ;;  %v1720_v9 = vpop.xlane.xlu2 %1719 }
 0x34c   : > { %v1789_v28 = vadd.f32 %v1752_v32, %v1693_v29  ;;  %v1773_v45 = vadd.f32 %v1720_v9, %v1677_v62  ;;  %v1706_v59 = vpop.xlane.xlu1 %1705  ;;  %v5869_v32 = vld [vmem:[#allocation61_spill] sm:$0xff] }
 0x34d   : > { %v1766_v12 = vadd.f32 %v1706_v59, %v1670_v56 }
 0x34e   : > { %1822 = vst.msk [vmem:[#allocation3 + $0xd0] sm:$0xff] %vm1795_vm11, %v1789_v28  ;;  %v1698_v28 = vld [vmem:[#allocation3 + $0xf8] sm:$0xff] }
 0x34f   : > { %1806 = vst.msk [vmem:[#allocation3 + $0x50] sm:$0xff] %vm1795_vm11, %v1773_v45 }
 0x350   : > { %1799 = vst.msk [vmem:[#allocation3 + $0x18] sm:$0xff] %vm1795_vm11, %v1766_v12 }
 0x353   : > { %v1722_v51 = vpop.xlane.xlu0 %1721  ;;  %v1738_v43 = vpop.xlane.xlu2 %1737 }
 0x354   : > { %v1774_v42 = vadd.f32 %v1722_v51, %v1678_v37  ;;  %v1782_v26 = vadd.f32 %v1738_v43, %v1686_v53  ;;  %v1754_v39 = vpop.xlane.xlu1 %1753 }
 0x355   : > { %v1790_v3 = vadd.f32 %v1754_v39, %v1694_v10 }
 0x356   : > { %1807 = vst.msk [vmem:[#allocation3 + $0x58] sm:$0xff] %vm1795_vm11, %v1774_v42 }
 0x357   : > { %1815 = vst.msk [vmem:[#allocation3 + $0x98] sm:$0xff] %vm1795_vm11, %v1782_v26 }
 0x358   : > { %1823 = vst.msk [vmem:[#allocation3 + $0xd8] sm:$0xff] %vm1795_vm11, %v1790_v3 }
 0x35b   : > { %v1740_v57 = vpop.xlane.xlu0 %1739  ;;  %v1708_v58 = vpop.xlane.xlu2 %1707 }
 0x35c   : > { %v1783_v20 = vadd.f32 %v1740_v57, %v1687_v55  ;;  %v1767_v11 = vadd.f32 %v1708_v58, %v1671_v6  ;;  %v1724_v33 = vpop.xlane.xlu1 %1723  ;;  %v2231_v58 = vld [vmem:[%s3889_s26] sm:$0x1] }
 0x35d   : > { %v1775_v48 = vadd.f32 %v1724_v33, %v1679_v41 }
 0x35e   : > { %1816 = vst.msk [vmem:[#allocation3 + $0xa0] sm:$0xff] %vm1795_vm11, %v1783_v20 }
 0x35f   : > { %1800 = vst.msk [vmem:[#allocation3 + $0x20] sm:$0xff] %vm1795_vm11, %v1767_v11 }
 0x360   : > { %1808 = vst.msk [vmem:[#allocation3 + $0x60] sm:$0xff] %vm1795_vm11, %v1775_v48 }
 0x363   : > { %v1710_v22 = vpop.xlane.xlu0 %1709  ;;  %v1756_v44 = vpop.xlane.xlu2 %1755 }
 0x364   : > { %v1768_v21 = vadd.f32 %v1710_v22, %v1672_v0  ;;  %v1791_v5 = vadd.f32 %v1756_v44, %v1695_v27  ;;  %v1742_v7 = vpop.xlane.xlu1 %1741 }
 0x365   : > { %v1784_v40 = vadd.f32 %v1742_v7, %v1688_v2 }
 0x366   : > { %1801 = vst.msk [vmem:[#allocation3 + $0x28] sm:$0xff] %vm1795_vm11, %v1768_v21 }
 0x367   : > { %1824 = vst.msk [vmem:[#allocation3 + $0xe0] sm:$0xff] %vm1795_vm11, %v1791_v5 }
 0x368   : > { %1817 = vst.msk [vmem:[#allocation3 + $0xa8] sm:$0xff] %vm1795_vm11, %v1784_v40 }
 0x36b   : > { %v1758_v17 = vpop.xlane.xlu0 %1757  ;;  %v1726_v24 = vpop.xlane.xlu2 %1725 }
 0x36c   : > { %v1792_v18 = vadd.f32 %v1758_v17, %v1696_v54  ;;  %v1776_v60 = vadd.f32 %v1726_v24, %v1680_v52  ;;  %v1712_v35 = vpop.xlane.xlu1 %1711 }
 0x36d   : > { %v1769_v30 = vadd.f32 %v1712_v35, %v1673_v49 }
 0x36e   : > { %1825 = vst.msk [vmem:[#allocation3 + $0xe8] sm:$0xff] %vm1795_vm11, %v1792_v18 }
 0x36f   : > { %1809 = vst.msk [vmem:[#allocation3 + $0x68] sm:$0xff] %vm1795_vm11, %v1776_v60 }
 0x370   : > { %1802 = vst.msk [vmem:[#allocation3 + $0x30] sm:$0xff] %vm1795_vm11, %v1769_v30 }
 0x373   : > { %v1728_v4 = vpop.xlane.xlu0 %1727  ;;  %v1744_v19 = vpop.xlane.xlu2 %1743 }
 0x374   : > { %v1777_v15 = vadd.f32 %v1728_v4, %v1681_v23  ;;  %v1785_v16 = vadd.f32 %v1744_v19, %v1689_v8  ;;  %v1760_v61 = vpop.xlane.xlu1 %1759 }
 0x375   : > { %v1793_v14 = vadd.f32 %v1760_v61, %v1697_v50 }
 0x376   : > { %1810 = vst.msk [vmem:[#allocation3 + $0x70] sm:$0xff] %vm1795_vm11, %v1777_v15 }
 0x377   : > { %1818 = vst.msk [vmem:[#allocation3 + $0xb0] sm:$0xff] %vm1795_vm11, %v1785_v16 }
 0x378   : > { %1826 = vst.msk [vmem:[#allocation3 + $0xf0] sm:$0xff] %vm1795_vm11, %v1793_v14 }
 0x37b   : > { %v1746_v47 = vpop.xlane.xlu0 %1745  ;;  %v1714_v25 = vpop.xlane.xlu2 %1713 }
 0x37c   : > { %v1786_v46 = vadd.f32 %v1746_v47, %v1690_v1  ;;  %v1730_v36 = vpop.xlane.xlu1 %1729  ;;  %v1770_v38 = vadd.f32 %v1714_v25, %v1674_v34 }
 0x37d   : > { %v1778_v13 = vadd.f32 %v1730_v36, %v1682_v31 }
 0x37e   : > { %1819 = vst.msk [vmem:[#allocation3 + $0xb8] sm:$0xff] %vm1795_vm11, %v1786_v46 }
 0x37f   : > { %1811 = vst.msk [vmem:[#allocation3 + $0x78] sm:$0xff] %vm1795_vm11, %v1778_v13 }
 0x380   : > { %1803 = vst.msk [vmem:[#allocation3 + $0x38] sm:$0xff] %vm1795_vm11, %v1770_v38 }
 0x383   : > { %v2174_v29 = vpop.xlane.xlu0 %2173  ;;  %v1762_v45 = vpop.xlane.xlu2 %1761 }
 0x384   : > { %v2190_v62 = vmul.f32 %v2174_v29, %v2126_v63  ;;  %v1794_v59 = vadd.f32 %v1762_v45, %v1698_v28 }
 0x386   : > { %v2220_v56 = vsel %vm1795_vm11, %v2190_v62, 0.0  ;;  %1827 = vst.msk [vmem:[#allocation3 + $0xf8] sm:$0xff] %vm1795_vm11, %v1794_v59 }
 0x387   : > { %v2221_v9 = vadd.f32 %v2220_v56, %v5869_v32 }
 0x389   : > { %2222 = vadd.xlane.f32.xlu2 %v2221_v9 }
 0x3b4   : > { %v2065_v12 = vpop.xlane.xlu1 %2064 }
 0x3b5   : > { %v2066_v37 = vrot.slane %v2065_v12, 4 }
 0x3b7   : > { %v2067_v53 = vadd.f32 %v2066_v37, %v2065_v12 }
 0x3b9   : > { %v2068_v10 = vrot.slane %v2067_v53, 2 }
 0x3bb   : > { %v2069_v51 = vadd.f32 %v2068_v10, %v2067_v53 }
 0x3bd   : > { %v2070_v43 = vrot.slane %v2069_v51, 1 }
 0x3bf   : > { %v2071_v42 = vadd.f32 %v2070_v43, %v2069_v51 }
 0x3c1   : > { %3145 = vpush %v2071_v42 }
 0x3f2   : > { %s3146_s23 = spop %3145 }
 0x3fc   : > { %v2223_v26 = vpop.xlane.xlu2 %2222 }
 0x3fd   : > { %v2224_v39 = vrot.slane %v2223_v26, 4 }
 0x3ff   : > { %v2225_v3 = vadd.f32 %v2224_v39, %v2223_v26 }
 0x401   : > { %v2226_v55 = vrot.slane %v2225_v3, 2 }
 0x403   : > { %v2227_v6 = vadd.f32 %v2226_v55, %v2225_v3 }
 0x405   : > { %v2228_v41 = vrot.slane %v2227_v6, 1 }
 0x407   : > { %v2229_v57 = vadd.f32 %v2228_v41, %v2227_v6 }
 0x409   : > { %3147 = vpush %v2229_v57 }
 0x43a   : > { %s3148_s20 = spop %3147 }
 0x43b   : > { %s2232_s16 = smul.f32 2.0, %s3148_s20 }
 0x43d   : > { %s2233_s15 = ssub.f32 %s3146_s23, %s2232_s16 }
 0x43e   : > { %2240 = sbr.rel (%p2848_p4) target bundleno = 1383 (0x567), region = 48 }
 0x43f   : > { %v2234_v20 = vstv %s2233_s15 }
 0x440   : > { %v2235_v11 = vadd.f32 %v2234_v20, %v2231_v58 }
 0x442   : > { %2236 = vst [vmem:[%s3889_s26] sm:$0x1] %v2235_v11 }
 0x443   : > { %v2241_v33 = vld [vmem:[#allocation3] sm:$0xff]  ;;  %v2242_v48 = vld [vmem:[#allocation3 + $0x8] sm:$0xff]  ;;  %v2243_v0 = vld [vmem:[#allocation3 + $0x10] sm:$0xff] }
 0x444   : > { %v2273_v27 = vadd.f32 1e-30, %v2241_v33  ;;  %v2244_v2 = vld [vmem:[#allocation3 + $0x18] sm:$0xff]  ;;  %v2274_v22 = vadd.f32 1e-30, %v2242_v48  ;;  %v2245_v21 = vld [vmem:[#allocation3 + $0x20] sm:$0xff] }
 0x445   : > { %v2275_v44 = vadd.f32 1e-30, %v2243_v0  ;;  %v2276_v5 = vadd.f32 1e-30, %v2244_v2  ;;  %v2246_v7 = vld [vmem:[#allocation3 + $0x28] sm:$0xff]  ;;  %v2247_v40 = vld [vmem:[#allocation3 + $0x30] sm:$0xff] }
 0x446   : > { %3432 = vlog2.f32 %v2273_v27  ;;  %v2277_v54 = vadd.f32 1e-30, %v2245_v21  ;;  %v2248_v52 = vld [vmem:[#allocation3 + $0x38] sm:$0xff]  ;;  %v2278_v49 = vadd.f32 1e-30, %v2246_v7  ;;  %v2249_v18 = vld [vmem:[#allocation3 + $0x40] sm:$0xff] }
 0x447   : > { %3434 = vlog2.f32 %v2274_v22  ;;  %v2279_v17 = vadd.f32 1e-30, %v2247_v40  ;;  %v2250_v35 = vld [vmem:[#allocation3 + $0x48] sm:$0xff]  ;;  %v2280_v30 = vadd.f32 1e-30, %v2248_v52  ;;  %v2251_v8 = vld [vmem:[#allocation3 + $0x50] sm:$0xff] }
 0x448   : > { %3436 = vlog2.f32 %v2275_v44  ;;  %v2252_v50 = vld [vmem:[#allocation3 + $0x58] sm:$0xff]  ;;  %v2253_v4 = vld [vmem:[#allocation3 + $0x60] sm:$0xff]  ;;  %v2254_v19 = vld [vmem:[#allocation3 + $0x68] sm:$0xff]  ;;  %v2281_v16 = vadd.f32 1e-30, %v2249_v18 }
 0x449   : > { %3438 = vlog2.f32 %v2276_v5  ;;  %v2255_v15 = vld [vmem:[#allocation3 + $0x70] sm:$0xff]  ;;  %v2256_v14 = vld [vmem:[#allocation3 + $0x78] sm:$0xff]  ;;  %v2257_v1 = vld [vmem:[#allocation3 + $0x80] sm:$0xff]  ;;  %v2282_v31 = vadd.f32 1e-30, %v2250_v35 }
 0x44a   : > { %3440 = vlog2.f32 %v2277_v54  ;;  %v2258_v34 = vld [vmem:[#allocation3 + $0x88] sm:$0xff]  ;;  %v2259_v47 = vld [vmem:[#allocation3 + $0x90] sm:$0xff]  ;;  %v2260_v25 = vld [vmem:[#allocation3 + $0x98] sm:$0xff]  ;;  %v2283_v62 = vadd.f32 1e-30, %v2251_v8 }
 0x44b   : > { %3442 = vlog2.f32 %v2278_v49  ;;  %v2261_v46 = vld [vmem:[#allocation3 + $0xa0] sm:$0xff]  ;;  %v2262_v29 = vld [vmem:[#allocation3 + $0xa8] sm:$0xff]  ;;  %v2284_v56 = vadd.f32 1e-30, %v2252_v50  ;;  %v2285_v32 = vadd.f32 1e-30, %v2253_v4 }
 0x44c   : > { %v3433_v24 = vpop.eup %3432  ;;  %3444 = vlog2.f32 %v2279_v17  ;;  %v2263_v9 = vld [vmem:[#allocation3 + $0xb0] sm:$0xff]  ;;  %v2264_v28 = vld [vmem:[#allocation3 + $0xb8] sm:$0xff]  ;;  %v2286_v45 = vadd.f32 1e-30, %v2254_v19  ;;  %v2287_v59 = vadd.f32 1e-30, %v2255_v15 }
 0x44d   : > { %v3435_v60 = vpop.eup %3434  ;;  %v2306_v36 = vmul.f32 0.6931472, %v3433_v24  ;;  %3446 = vlog2.f32 %v2280_v30  ;;  %v2288_v53 = vadd.f32 1e-30, %v2256_v14  ;;  %v2289_v10 = vadd.f32 1e-30, %v2257_v1 }
 0x44e   : > { %v3437_v23 = vpop.eup %3436  ;;  %v2308_v38 = vmul.f32 0.6931472, %v3435_v60  ;;  %3448 = vlog2.f32 %v2281_v16  ;;  %v5460_v51 = vadd.f32 1e-30, %v2258_v34  ;;  %v2265_v42 = vld [vmem:[#allocation3 + $0xc0] sm:$0xff]  ;;  %v2266_v26 = vld [vmem:[#allocation3 + $0xc8] sm:$0xff] }
 0x44f   : > { %v3439_v61 = vpop.eup %3438  ;;  %v2310_v13 = vmul.f32 0.6931472, %v3437_v23  ;;  %3450 = vlog2.f32 %v2282_v31  ;;  %v2369_v3 = vadd.f32 20.0, %v2306_v36  ;;  %v2267_v41 = vld [vmem:[#allocation3 + $0xd0] sm:$0xff]  ;;  %v5462_v57 = vadd.f32 1e-30, %v2259_v47 }
 0x450   : > { %v3441_v63 = vpop.eup %3440  ;;  %v2312_v12 = vmul.f32 0.6931472, %v3439_v61  ;;  %v2370_v55 = vadd.f32 20.0, %v2308_v38  ;;  %v5464_v58 = vadd.f32 1e-30, %v2260_v25  ;;  %v2268_v33 = vld [vmem:[#allocation3 + $0xd8] sm:$0xff]  ;;  %3452 = vlog2.f32 %v2283_v62 }
 0x451   : > { %v3443_v37 = vpop.eup %3442  ;;  %v2314_v39 = vmul.f32 0.6931472, %v3441_v63  ;;  %v2371_v6 = vadd.f32 20.0, %v2310_v13  ;;  %v5466_v20 = vadd.f32 1e-30, %v2261_v46  ;;  %3454 = vlog2.f32 %v2284_v56  ;;  %v2269_v5 = vld [vmem:[#allocation3 + $0xe0] sm:$0xff] }
 0x452   : > { %v3445_v43 = vpop.eup %3444  ;;  %v5468_v48 = vadd.f32 1e-30, %v2262_v29  ;;  %v2316_v0 = vmul.f32 0.6931472, %v3443_v37  ;;  %v2372_v27 = vadd.f32 20.0, %v2312_v12  ;;  %v5870_v40 = vld [vmem:[#allocation26_spill] sm:$0xff]  ;;  %3456 = vlog2.f32 %v2285_v32 }
 0x453   : > { %v3447_v11 = vpop.eup %3446  ;;  %v5470_v2 = vadd.f32 1e-30, %v2263_v9  ;;  %v5472_v22 = vadd.f32 1e-30, %v2264_v28  ;;  %v2318_v44 = vmul.f32 0.6931472, %v3445_v43  ;;  %v2401_v54 = vmul.f32 %v2369_v3, %v5870_v40 }
 0x454   : > { %v3449_v21 = vpop.eup %3448  ;;  %v2373_v7 = vadd.f32 20.0, %v2314_v39  ;;  %v5871_v52 = vld [vmem:[#allocation24_spill] sm:$0xff]  ;;  %v5872_v17 = vld [vmem:[#allocation25_spill] sm:$0xff]  ;;  %v5477_v60 = vadd.f32 1e-30, %v2265_v42  ;;  %v2374_v50 = vadd.f32 20.0, %v2316_v0  ;;  %3458 = vlog2.f32 %v2286_v45 }
 0x455   : > { %v2402_v49 = vmul.f32 %v2370_v55, %v5871_v52  ;;  %v2403_v24 = vmul.f32 %v2371_v6, %v5872_v17  ;;  %v3451_v18 = vpop.eup %3450  ;;  %v5479_v35 = vadd.f32 1e-30, %v2266_v26  ;;  %v2320_v30 = vmul.f32 0.6931472, %v3447_v11  ;;  %v5873_v4 = vld [vmem:[#allocation28_spill] sm:$0xff]  ;;  %v2271_v34 = vld [vmem:[#allocation3 + $0xf0] sm:$0xff] }
 0x456   : > { %v5481_v23 = vadd.f32 1e-30, %v2267_v41  ;;  %v5483_v8 = vadd.f32 1e-30, %v2268_v33  ;;  %v2404_v19 = vmul.f32 %v2372_v27, %v5873_v4  ;;  %v2270_v15 = vld [vmem:[#allocation3 + $0xe8] sm:$0xff]  ;;  %v2375_v14 = vadd.f32 20.0, %v2318_v44  ;;  %v3453_v1 = vpop.eup %3452 }
 0x457   : > { %v5486_v16 = vadd.f32 1e-30, %v2269_v5  ;;  %v2322_v61 = vmul.f32 0.6931472, %v3449_v21  ;;  %v2272_v31 = vld [vmem:[#allocation3 + $0xf8] sm:$0xff]  ;;  %v2433_v46 = vsel %vm1795_vm11, %v2401_v54, 0.0  ;;  %v3455_v13 = vpop.eup %3454  ;;  %3460 = vlog2.f32 %v2287_v59 }
 0x458   : > { %v5874_v47 = vld [vmem:[#allocation27_spill] sm:$0xff]  ;;  %v2434_v36 = vsel %vm1795_vm11, %v2402_v49, 0.0  ;;  %v2436_v38 = vsel %vm1795_vm11, %v2403_v24, 0.0  ;;  %v2324_v63 = vmul.f32 0.6931472, %v3451_v18  ;;  %v2376_v29 = vadd.f32 20.0, %v2320_v30  ;;  %v3457_v45 = vpop.eup %3456 }
 0x459   : > { %v2405_v25 = vmul.f32 %v2373_v7, %v5874_v47  ;;  %v2435_v62 = vadd.f32 %v2434_v36, %v2433_v46  ;;  %v5492_v56 = vadd.f32 1e-30, %v2270_v15  ;;  %3462 = vlog2.f32 %v2288_v53  ;;  %v5875_v32 = vld [vmem:[#allocation31_spill] sm:$0xff]  ;;  %v5876_v39 = vld [vmem:[#allocation30_spill] sm:$0xff]  ;;  %v5877_v41 = vld [vmem:[#allocation29_spill] sm:$0xff] }
 0x45a   : > { %v2406_v9 = vmul.f32 %v2374_v50, %v5875_v32  ;;  %v2438_v28 = vsel %vm1795_vm11, %v2404_v19, 0.0  ;;  %v5496_v12 = vadd.f32 1e-30, %v2271_v34  ;;  %v5498_v37 = vadd.f32 1e-30, %v2272_v31  ;;  %v3459_v55 = vpop.eup %3458  ;;  %v5878_v18 = vld [vmem:[#allocation34_spill] sm:$0xff] }
 0x45b   : > { %3464 = vlog2.f32 %v2289_v10  ;;  %v2437_v43 = vadd.f32 %v2436_v38, %v2435_v62  ;;  %v2326_v42 = vmul.f32 0.6931472, %v3453_v1  ;;  %v2377_v26 = vadd.f32 20.0, %v2322_v61  ;;  %v5880_v36 = vld [vmem:[#allocation32_spill] sm:$0xff] }
 0x45c   : > { %v2407_v59 = vmul.f32 %v2375_v14, %v5876_v39  ;;  %v2440_v3 = vsel %vm1795_vm11, %v2405_v25, 0.0  ;;  %v2328_v6 = vmul.f32 0.6931472, %v3455_v13  ;;  %v2378_v53 = vadd.f32 20.0, %v2324_v63  ;;  %v5879_v14 = vld [vmem:[#allocation33_spill] sm:$0xff] }
 0x45d   : > { %v2408_v11 = vmul.f32 %v2376_v29, %v5877_v41  ;;  %v2439_v33 = vadd.f32 %v2438_v28, %v2437_v43  ;;  %v2442_v0 = vsel %vm1795_vm11, %v2406_v9, 0.0  ;;  %v2505_v27 = vsel %vm1795_vm11, %v5870_v40, 0.0  ;;  %v3461_v21 = vpop.eup %3460  ;;  %v5881_v28 = vld [vmem:[#allocation37_spill] sm:$0xff] }
 0x45e   : > { %v2506_v10 = vsel %vm1795_vm11, %v5871_v52, 0.0  ;;  %v2508_v44 = vsel %vm1795_vm11, %v5872_v17, 0.0  ;;  %v2330_v5 = vmul.f32 0.6931472, %v3457_v45  ;;  %3466 = vlog2.f32 %v5460_v51 }
 0x45f   : > { %v2441_v7 = vadd.f32 %v2440_v3, %v2439_v33  ;;  %v2507_v54 = vadd.f32 %v2506_v10, %v2505_v27  ;;  %v3463_v49 = vpop.eup %3462  ;;  %v2379_v24 = vadd.f32 20.0, %v2326_v42  ;;  %v2409_v30 = vmul.f32 %v2377_v26, %v5878_v18  ;;  %v5883_v10 = vld [vmem:[#allocation35_spill] sm:$0xff] }
 0x460   : > { %v2444_v50 = vsel %vm1795_vm11, %v2407_v59, 0.0  ;;  %v2510_v40 = vsel %vm1795_vm11, %v5873_v4, 0.0  ;;  %v2332_v52 = vmul.f32 0.6931472, %v3459_v55  ;;  %3468 = vlog2.f32 %v5462_v57  ;;  %v5882_v55 = vld [vmem:[#allocation36_spill] sm:$0xff] }
 0x461   : > { %v3465_v19 = vpop.eup %3464  ;;  %v2443_v17 = vadd.f32 %v2442_v0, %v2441_v7  ;;  %v2509_v15 = vadd.f32 %v2508_v44, %v2507_v54  ;;  %v2380_v61 = vadd.f32 20.0, %v2328_v6  ;;  %v2410_v51 = vmul.f32 %v2378_v53, %v5879_v14 }
 0x462   : > { %v2446_v1 = vsel %vm1795_vm11, %v2408_v11, 0.0  ;;  %v2512_v34 = vsel %vm1795_vm11, %v5874_v47, 0.0  ;;  %v2334_v31 = vmul.f32 0.6931472, %v3461_v21  ;;  %3470 = vlog2.f32 %v5464_v58 }
 0x463   : > { %v2445_v25 = vadd.f32 %v2444_v50, %v2443_v17  ;;  %v2511_v46 = vadd.f32 %v2510_v40, %v2509_v15  ;;  %v2381_v4 = vadd.f32 20.0, %v2330_v5  ;;  %v2411_v38 = vmul.f32 %v2379_v24, %v5880_v36  ;;  %v5884_v24 = vld [vmem:[#allocation40_spill] sm:$0xff]  ;;  %v5885_v15 = vld [vmem:[#allocation39_spill] sm:$0xff] }
 0x464   : > { %v2448_v57 = vsel %vm1795_vm11, %v2409_v30, 0.0  ;;  %v2514_v13 = vsel %vm1795_vm11, %v5875_v32, 0.0  ;;  %v3467_v63 = vpop.eup %3466  ;;  %v2336_v29 = vmul.f32 0.6931472, %v3463_v49  ;;  %3472 = vlog2.f32 %v5466_v20 }
 0x465   : > { %v2447_v62 = vadd.f32 %v2446_v1, %v2445_v25  ;;  %v2513_v9 = vadd.f32 %v2512_v34, %v2511_v46  ;;  %v2382_v47 = vadd.f32 20.0, %v2332_v52  ;;  %v2412_v45 = vmul.f32 %v2380_v61, %v5881_v28  ;;  %v5886_v46 = vld [vmem:[#allocation38_spill] sm:$0xff] }
 0x466   : > { %v2450_v58 = vsel %vm1795_vm11, %v2410_v51, 0.0  ;;  %v2516_v43 = vsel %vm1795_vm11, %v5876_v39, 0.0  ;;  %v3469_v42 = vpop.eup %3468  ;;  %v2338_v26 = vmul.f32 0.6931472, %v3465_v19  ;;  %3474 = vlog2.f32 %v5468_v48 }
 0x467   : > { %v2449_v59 = vadd.f32 %v2448_v57, %v2447_v62  ;;  %v2515_v32 = vadd.f32 %v2514_v13, %v2513_v9  ;;  %v2383_v3 = vadd.f32 20.0, %v2334_v31  ;;  %v2413_v6 = vmul.f32 %v2381_v4, %v5882_v55  ;;  %v5887_v62 = vld [vmem:[#allocation43_spill] sm:$0xff] }
 0x468   : > { %v2452_v20 = vsel %vm1795_vm11, %v2411_v38, 0.0  ;;  %v2518_v53 = vsel %vm1795_vm11, %v5877_v41, 0.0  ;;  %v3471_v11 = vpop.eup %3470  ;;  %v2340_v33 = vmul.f32 0.6931472, %v3467_v63  ;;  %3476 = vlog2.f32 %v5470_v2 }
 0x469   : > { %v2451_v0 = vadd.f32 %v2450_v58, %v2449_v59  ;;  %v2517_v39 = vadd.f32 %v2516_v43, %v2515_v32  ;;  %v2384_v27 = vadd.f32 20.0, %v2336_v29  ;;  %v2414_v44 = vmul.f32 %v2382_v47, %v5883_v10 }
 0x46a   : > { %v2454_v48 = vsel %vm1795_vm11, %v2412_v45, 0.0  ;;  %v2520_v21 = vsel %vm1795_vm11, %v5878_v18, 0.0  ;;  %v3473_v5 = vpop.eup %3472  ;;  %v2342_v7 = vmul.f32 0.6931472, %v3469_v42  ;;  %3478 = vlog2.f32 %v5472_v22 }
 0x46b   : > { %v2453_v54 = vadd.f32 %v2452_v20, %v2451_v0  ;;  %v2519_v41 = vadd.f32 %v2518_v53, %v2517_v39  ;;  %v2385_v49 = vadd.f32 20.0, %v2338_v26  ;;  %v2415_v30 = vmul.f32 %v2383_v3, %v5884_v24  ;;  %v5888_v26 = vld [vmem:[#allocation42_spill] sm:$0xff] }
 0x46c   : > { %v2456_v2 = vsel %vm1795_vm11, %v2413_v6, 0.0  ;;  %v2522_v50 = vsel %vm1795_vm11, %v5879_v14, 0.0  ;;  %v3475_v40 = vpop.eup %3474  ;;  %v2344_v19 = vmul.f32 0.6931472, %v3471_v11  ;;  %3480 = vlog2.f32 %v5477_v60  ;;  %v5889_v11 = vld [vmem:[#allocation41_spill] sm:$0xff] }
 0x46d   : > { %v2455_v52 = vadd.f32 %v2454_v48, %v2453_v54  ;;  %v2521_v18 = vadd.f32 %v2520_v21, %v2519_v41  ;;  %v2386_v17 = vadd.f32 20.0, %v2340_v33  ;;  %v2416_v61 = vmul.f32 %v2384_v27, %v5885_v15  ;;  %v5890_v21 = vld [vmem:[#allocation46_spill] sm:$0xff] }
 0x46e   : > { %v2458_v22 = vsel %vm1795_vm11, %v2414_v44, 0.0  ;;  %v2524_v51 = vsel %vm1795_vm11, %v5880_v36, 0.0  ;;  %v3477_v1 = vpop.eup %3476  ;;  %v2346_v34 = vmul.f32 0.6931472, %v3473_v5  ;;  %3482 = vlog2.f32 %v5479_v35 }
 0x46f   : > { %v2457_v31 = vadd.f32 %v2456_v2, %v2455_v52  ;;  %v2523_v14 = vadd.f32 %v2522_v50, %v2521_v18  ;;  %v2387_v25 = vadd.f32 20.0, %v2342_v7  ;;  %v2417_v4 = vmul.f32 %v2385_v49, %v5886_v46  ;;  %v5891_v2 = vld [vmem:[#allocation45_spill] sm:$0xff] }
 0x470   : > { %v2460_v60 = vsel %vm1795_vm11, %v2415_v30, 0.0  ;;  %v2526_v38 = vsel %vm1795_vm11, %v5881_v28, 0.0  ;;  %v3479_v57 = vpop.eup %3478  ;;  %v2348_v13 = vmul.f32 0.6931472, %v3475_v40  ;;  %3484 = vlog2.f32 %v5481_v23 }
 0x471   : > { %v2459_v63 = vadd.f32 %v2458_v22, %v2457_v31  ;;  %v2525_v36 = vadd.f32 %v2524_v51, %v2523_v14  ;;  %v2388_v29 = vadd.f32 20.0, %v2344_v19  ;;  %v2418_v9 = vmul.f32 %v2386_v17, %v5887_v62 }
 0x472   : > { %v2462_v35 = vsel %vm1795_vm11, %v2416_v61, 0.0  ;;  %v2528_v47 = vsel %vm1795_vm11, %v5882_v55, 0.0  ;;  %v3481_v45 = vpop.eup %3480  ;;  %v2350_v58 = vmul.f32 0.6931472, %v3477_v1  ;;  %3486 = vlog2.f32 %v5483_v8  ;;  %v5892_v61 = vld [vmem:[#allocation44_spill] sm:$0xff] }
 0x473   : > { %v2461_v43 = vadd.f32 %v2460_v60, %v2459_v63  ;;  %v2527_v28 = vadd.f32 %v2526_v38, %v2525_v36  ;;  %v2389_v42 = vadd.f32 20.0, %v2346_v34  ;;  %v2419_v59 = vmul.f32 %v2387_v25, %v5888_v26 }
 0x474   : > { %v2464_v23 = vsel %vm1795_vm11, %v2417_v4, 0.0  ;;  %v2530_v32 = vsel %vm1795_vm11, %v5883_v10, 0.0  ;;  %v3483_v3 = vpop.eup %3482  ;;  %v2352_v6 = vmul.f32 0.6931472, %v3479_v57  ;;  %3488 = vlog2.f32 %v5486_v16 }
 0x475   : > { %v2463_v20 = vadd.f32 %v2462_v35, %v2461_v43  ;;  %v2529_v55 = vadd.f32 %v2528_v47, %v2527_v28  ;;  %v2390_v53 = vadd.f32 20.0, %v2348_v13  ;;  %v2420_v33 = vmul.f32 %v2388_v29, %v5889_v11  ;;  %v5894_v29 = vld [vmem:[#allocation48_spill] sm:$0xff] }
 0x476   : > { %v2466_v8 = vsel %vm1795_vm11, %v2418_v9, 0.0  ;;  %v2532_v0 = vsel %vm1795_vm11, %v5884_v24, 0.0  ;;  %v3485_v39 = vpop.eup %3484  ;;  %v2354_v27 = vmul.f32 0.6931472, %v3481_v45  ;;  %3490 = vlog2.f32 %v5492_v56 }
 0x477   : > { %v2465_v44 = vadd.f32 %v2464_v23, %v2463_v20  ;;  %v2531_v10 = vadd.f32 %v2530_v32, %v2529_v55  ;;  %v2391_v48 = vadd.f32 20.0, %v2350_v58  ;;  %v2421_v5 = vmul.f32 %v2389_v42, %v5890_v21  ;;  %v5895_v42 = vld [vmem:[#allocation47_spill] sm:$0xff]  ;;  %v5896_v55 = vld [vmem:[#allocation52_spill] sm:$0xff] }
 0x478   : > { %v2468_v16 = vsel %vm1795_vm11, %v2419_v59, 0.0  ;;  %v2534_v7 = vsel %vm1795_vm11, %v5885_v15, 0.0  ;;  %v3487_v54 = vpop.eup %3486  ;;  %v2356_v41 = vmul.f32 0.6931472, %v3483_v3  ;;  %3492 = vlog2.f32 %v5496_v12 }
 0x479   : > { %v2467_v49 = vadd.f32 %v2466_v8, %v2465_v44  ;;  %v2533_v24 = vadd.f32 %v2532_v0, %v2531_v10  ;;  %v2392_v30 = vadd.f32 20.0, %v2352_v6  ;;  %v2422_v50 = vmul.f32 %v2390_v53, %v5891_v2  ;;  %v5897_v44 = vld [vmem:[#allocation51_spill] sm:$0xff] }
 0x47a   : > { %v2470_v56 = vsel %vm1795_vm11, %v2420_v33, 0.0  ;;  %v2536_v40 = vsel %vm1795_vm11, %v5886_v46, 0.0  ;;  %v3489_v19 = vpop.eup %3488  ;;  %v2358_v52 = vmul.f32 0.6931472, %v3485_v39  ;;  %3494 = vlog2.f32 %v5498_v37  ;;  %v5893_v46 = vld [vmem:[#allocation49_spill] sm:$0xff] }
 0x47b   : > { %v2469_v18 = vadd.f32 %v2468_v16, %v2467_v49  ;;  %v2535_v17 = vadd.f32 %v2534_v7, %v2533_v24  ;;  %v2393_v15 = vadd.f32 20.0, %v2354_v27  ;;  %v2423_v22 = vmul.f32 %v2391_v48, %v5892_v61 }
 0x47c   : > { %v2472_v12 = vsel %vm1795_vm11, %v2421_v5, 0.0  ;;  %v2538_v51 = vsel %vm1795_vm11, %v5887_v62, 0.0  ;;  %v3491_v1 = vpop.eup %3490  ;;  %v2360_v34 = vmul.f32 0.6931472, %v3487_v54  ;;  %v2394_v25 = vadd.f32 20.0, %v2356_v41  ;;  %v5898_v54 = vld [vmem:[#allocation50_spill] sm:$0xff] }
 0x47d   : > { %v2471_v31 = vadd.f32 %v2470_v56, %v2469_v18  ;;  %v2537_v14 = vadd.f32 %v2536_v40, %v2535_v17  ;;  %v2424_v4 = vmul.f32 %v2392_v30, %v5893_v46  ;;  %v2474_v60 = vsel %vm1795_vm11, %v2422_v50, 0.0  ;;  %v5899_v56 = vld [vmem:[#allocation54_spill] sm:$0xff] }
 0x47e   : > { %v2540_v37 = vsel %vm1795_vm11, %v5888_v26, 0.0  ;;  %v3493_v38 = vpop.eup %3492  ;;  %v2362_v57 = vmul.f32 0.6931472, %v3489_v19  ;;  %v2395_v36 = vadd.f32 20.0, %v2358_v52  ;;  %v2425_v9 = vmul.f32 %v2393_v15, %v5894_v29  ;;  %v5900_v15 = vld [vmem:[#allocation53_spill] sm:$0xff] }
 0x47f   : > { %v2473_v13 = vadd.f32 %v2472_v12, %v2471_v31  ;;  %v2539_v63 = vadd.f32 %v2538_v51, %v2537_v14  ;;  %v2476_v62 = vsel %vm1795_vm11, %v2423_v22, 0.0  ;;  %v2542_v35 = vsel %vm1795_vm11, %v5889_v11, 0.0 }
 0x480   : > { %v3495_v47 = vpop.eup %3494  ;;  %v2364_v45 = vmul.f32 0.6931472, %v3491_v1  ;;  %v2396_v28 = vadd.f32 20.0, %v2360_v34  ;;  %v2426_v59 = vmul.f32 %v2394_v25, %v5895_v42  ;;  %v2478_v26 = vsel %vm1795_vm11, %v2424_v4, 0.0  ;;  %v5901_v34 = vld [vmem:[#allocation55_spill] sm:$0xff] }
 0x481   : > { %v2475_v58 = vadd.f32 %v2474_v60, %v2473_v13  ;;  %v2541_v43 = vadd.f32 %v2540_v37, %v2539_v63  ;;  %v2544_v23 = vsel %vm1795_vm11, %v5890_v21, 0.0  ;;  %v2366_v32 = vmul.f32 0.6931472, %v3493_v38 }
 0x482   : > { %v2397_v20 = vadd.f32 20.0, %v2362_v57  ;;  %v2427_v53 = vmul.f32 %v2395_v36, %v5896_v55  ;;  %v2480_v11 = vsel %vm1795_vm11, %v2425_v9, 0.0  ;;  %v2546_v33 = vsel %vm1795_vm11, %v5891_v2, 0.0 }
 0x483   : > { %v2477_v3 = vadd.f32 %v2476_v62, %v2475_v58  ;;  %v2543_v6 = vadd.f32 %v2542_v35, %v2541_v43  ;;  %v2368_v8 = vmul.f32 0.6931472, %v3495_v47  ;;  %v2398_v27 = vadd.f32 20.0, %v2364_v45 }
 0x484   : > { %v2428_v10 = vmul.f32 %v2396_v28, %v5897_v44  ;;  %v2482_v48 = vsel %vm1795_vm11, %v2426_v59, 0.0  ;;  %v2548_v21 = vsel %vm1795_vm11, %v5892_v61, 0.0  ;;  %v2399_v7 = vadd.f32 20.0, %v2366_v32 }
 0x485   : > { %v2479_v0 = vadd.f32 %v2478_v26, %v2477_v3  ;;  %v2545_v39 = vadd.f32 %v2544_v23, %v2543_v6  ;;  %v2429_v41 = vmul.f32 %v2397_v20, %v5898_v54  ;;  %v2484_v49 = vsel %vm1795_vm11, %v2427_v53, 0.0 }
 0x486   : > { %v2550_v24 = vsel %vm1795_vm11, %v5893_v46, 0.0  ;;  %v2400_v50 = vadd.f32 20.0, %v2368_v8  ;;  %v2430_v40 = vmul.f32 %v2398_v27, %v5899_v56  ;;  %v2486_v19 = vsel %vm1795_vm11, %v2428_v10, 0.0 }
 0x487   : > { %v2481_v5 = vadd.f32 %v2480_v11, %v2479_v0  ;;  %v2547_v16 = vadd.f32 %v2546_v33, %v2545_v39  ;;  %v2552_v52 = vsel %vm1795_vm11, %v5894_v29, 0.0  ;;  %v2431_v61 = vmul.f32 %v2399_v7, %v5900_v15 }
 0x488   : > { %v2488_v22 = vsel %vm1795_vm11, %v2429_v41, 0.0  ;;  %v2554_v12 = vsel %vm1795_vm11, %v5895_v42, 0.0  ;;  %v2432_v31 = vmul.f32 %v2400_v50, %v5901_v34  ;;  %v2490_v14 = vsel %vm1795_vm11, %v2430_v40, 0.0 }
 0x489   : > { %v2483_v30 = vadd.f32 %v2482_v48, %v2481_v5  ;;  %v2549_v2 = vadd.f32 %v2548_v21, %v2547_v16  ;;  %v2556_v25 = vsel %vm1795_vm11, %v5896_v55, 0.0  ;;  %v2492_v60 = vsel %vm1795_vm11, %v2431_v61, 0.0  ;;  %v2578_v16 = vld [vmem:[%s3889_s26] sm:$0x1] }
 0x48a   : > { %v2558_v37 = vsel %vm1795_vm11, %v5897_v44, 0.0  ;;  %v2494_v13 = vsel %vm1795_vm11, %v2432_v31, 0.0  ;;  %v2560_v63 = vsel %vm1795_vm11, %v5898_v54, 0.0  ;;  %v2562_v9 = vsel %vm1795_vm11, %v5899_v56, 0.0 }
 0x48b   : > { %v2485_v18 = vadd.f32 %v2484_v49, %v2483_v30  ;;  %v2551_v17 = vadd.f32 %v2550_v24, %v2549_v2  ;;  %v2564_v47 = vsel %vm1795_vm11, %v5900_v15, 0.0  ;;  %v2566_v58 = vsel %vm1795_vm11, %v5901_v34, 0.0 }
 0x48d   : > { %v2487_v51 = vadd.f32 %v2486_v19, %v2485_v18  ;;  %v2553_v1 = vadd.f32 %v2552_v52, %v2551_v17 }
 0x48f   : > { %v2489_v46 = vadd.f32 %v2488_v22, %v2487_v51  ;;  %v2555_v4 = vadd.f32 %v2554_v12, %v2553_v1 }
 0x491   : > { %v2491_v38 = vadd.f32 %v2490_v14, %v2489_v46  ;;  %v2557_v57 = vadd.f32 %v2556_v25, %v2555_v4 }
 0x493   : > { %v2493_v36 = vadd.f32 %v2492_v60, %v2491_v38  ;;  %v2559_v29 = vadd.f32 %v2558_v37, %v2557_v57 }
 0x495   : > { %v2495_v62 = vadd.f32 %v2494_v13, %v2493_v36  ;;  %v2561_v35 = vadd.f32 %v2560_v63, %v2559_v29 }
 0x497   : > { %2496 = vadd.xlane.f32.xlu0 %v2495_v62  ;;  %v2563_v45 = vadd.f32 %v2562_v9, %v2561_v35 }
 0x499   : > { %v2565_v43 = vadd.f32 %v2564_v47, %v2563_v45 }
 0x49b   : > { %v2567_v28 = vadd.f32 %v2566_v58, %v2565_v43 }
 0x49f   : > { %2568 = vadd.xlane.f32.xlu0 %v2567_v28 }
 0x50a   : > { %v2497_v42 = vpop.xlane.xlu0 %2496 }
 0x50b   : > { %v2498_v59 = vrot.slane %v2497_v42, 4 }
 0x50d   : > { %v2499_v26 = vadd.f32 %v2498_v59, %v2497_v42 }
 0x50f   : > { %v2500_v23 = vrot.slane %v2499_v26, 2 }
 0x511   : > { %v2501_v32 = vadd.f32 %v2500_v23, %v2499_v26 }
 0x512   : > { %v2569_v3 = vpop.xlane.xlu0 %2568 }
 0x513   : > { %v2570_v6 = vrot.slane %v2569_v3, 4  ;;  %v2502_v20 = vrot.slane %v2501_v32, 1 }
 0x515   : > { %v2571_v55 = vadd.f32 %v2570_v6, %v2569_v3  ;;  %v2503_v53 = vadd.f32 %v2502_v20, %v2501_v32 }
 0x517   : > { %v2572_v11 = vrot.slane %v2571_v55, 2  ;;  %3149 = vpush %v2503_v53 }
 0x519   : > { %v2573_v33 = vadd.f32 %v2572_v11, %v2571_v55 }
 0x51b   : > { %v2574_v8 = vrot.slane %v2573_v33, 1 }
 0x51d   : > { %v2575_v0 = vadd.f32 %v2574_v8, %v2573_v33 }
 0x51f   : > { %3151 = vpush %v2575_v0 }
 0x548   : > { %s3150_s9 = spop %3149 }
 0x549   : > { %v2579_v7 = vstv %s3150_s9 }
 0x54a   : > { %v2580_v49 = vadd.f32 %v2579_v7, %v2578_v16 }
 0x550   : > { %s3152_s21 = spop %3151 }
 0x551   : > { %s2577_s8 = smax.f32 %s3684_s19, %s3152_s21 }
 0x552   : > { %v2581_v39 = vstv %s2577_s8 }
 0x553   : > { %3496 = vrcp.f32 %v2581_v39  ;;  %v2593_v48 = vand.u32 2147483648, %v2581_v39  ;;  %v2591_v5 = vand.u32 2147483647, %v2581_v39  ;;  %vm2587_vm4 = vweird.f32 %v2581_v39 }
 0x555   : > { %v2594_v41 = vor.u32 1.1754944e-38, %v2593_v48  ;;  %vm2592_vm6 = vcmp.eq.f32.partialorder %v2591_v5, 8.507059e+37 }
 0x559   : > { %v3497_v27 = vpop.eup %3496 }
 0x55a   : > { %v2583_v44 = vmul.f32 %v3497_v27, %v2581_v39  ;;  %vm2588_vm3 = vweird.f32 %v3497_v27 }
 0x55b   : > { %vm2589_vm5 = vmor %vm2587_vm4, %vm2588_vm3 }
 0x55c   : > { %v2584_v10 = vsub.f32 1.0, %v2583_v44 }
 0x55e   : > { %v2585_v21 = vmul.f32 %v3497_v27, %v2584_v10 }
 0x560   : > { %v2586_v54 = vadd.f32 %v3497_v27, %v2585_v21 }
 0x562   : > { %v2590_v24 = vsel %vm2589_vm5, %v3497_v27, %v2586_v54 }
 0x563   : > { %v2595_v30 = vsel %vm2592_vm6, %v2594_v41, %v2590_v24 }
 0x564   : > { %v2596_v2 = vmul.f32 %v2595_v30, %v2580_v49 }
 0x566   : > { %2597 = vst [vmem:[%s3889_s26] sm:$0x1] %v2596_v2 }
 0x567 PF: > { %s2607_s14 = scalar_lea.hbm %s5694_s6, %s3664_s10  ;;  %s2609_s18 = sshll.u32 %s3889_s26, 4  ;;  %s2610_s18 = int_to_ptr.vmem [resolvable:$true] %s2609_s18 }
 0x568   : > { %s2611_s27 = sshll.u32 %s2607_s14, 4  ;;  %s2599_s11 = scalar_lea.sflag [#allocation9], %s305_s30  ;;  %s2612_s27 = int_to_ptr.hbm [resolvable:$true] %s2611_s27 }
 0x569   : > { %s3566_s17 = sshra.s32 %s2612_s27, 4  ;;  %s3572_s20 = scalar_lea.hbm %s5694_s6, 3  ;;  %s3567_s17 = int_to_ptr.hbm [resolvable:$true] %s3566_s17 }
 0x56a   : > { %s3568_s1 = scalar_lea.hbm %s3567_s17, 1  ;;  %p3573_p0 = scmp.lt.s32.totalorder %s3567_s17, %s5694_s6 }
 0x56b   : > { %p3569_p9 = scmp.ne.s32.totalorder %s3567_s17, %s3568_s1  ;;  %p3574_p2 = scmp.lt.s32.totalorder %s3572_s20, %s3568_s1 }
 0x56d   : > { %p3570_p10 = pnand %p3569_p9, %p3810_p11  ;;  %p3575_p3 = por %p3574_p2, %p3573_p0 }
 0x56f   : > { %p3571_p12 = pneg %p3570_p10 }
 0x571   : > { %p3576_p7 = pnand %p3575_p3, %p3571_p12 }
 0x573   : > { %3579 = shalt.err (!%p3576_p7)
}
 0x574   : > { %3157 = dma.vmem_to_hbm [thread:$0]  (%p3810_p11), %s2610_s18, 16, %s2612_s27, %s2599_s11  }
 0x575 PF: > { %p3170_p5 = scmp.ge.s32.totalorder %s3676_s13, 2  ;;  %s2623_s10 = sand.u32 1, %s3636_s29  }
 0x576   : > { %s2624_s30 = scalar_lea.sflag [#allocation9], %s2623_s10 }
 0x577   : > { %p3166_p8 = pnand %p3170_p5, %p3815_p13 }
 0x579   : > { %p3167_p6 = pneg %p3166_p8 }
 0x57b   : > { %3631 = dma.done.wait (%p3167_p6), %s2624_s30, 16  }
 0x57c   : > { %3633 = vsyncadd (%p3167_p6), %s2624_s30, 4294967280  ;;  %s35_s13 = sadd.s32 1, %s3676_s13   ;;  %s5902_s26 = sld [smem:[#allocation16_spill]] }
 0x57d   : > { %p32_p1 = scmp.ge.s32.totalorder %s35_s13, 8   ;;  %s5903_s30 = sld [smem:[#allocation22_spill]] }
 0x57e   : > { %s5904_s25 = sld [smem:[#allocation17_spill]]  ;;  %s5910_s29 = smov %s3640_s0 }
 0x57f   : > { %s5905_s8 = sld [smem:[#allocation23_spill]]  ;;  %s5912_s1 = smov %s3652_s7 }
 0x580   : > { %s5906_s9 = sld [smem:[#allocation18_spill]]  ;;  %34 = sbr.rel (!%p32_p1) target bundleno = 16 (0x10), region = 100 }
 0x581   : > { %s5907_s10 = sld [smem:[#allocation19_spill]] }
 0x582   : > { %s5908_s11 = sld [smem:[#allocation20_spill]]  ;;  %s5911_s0 = smov %s5902_s26 }
 0x583   : > { %s5909_s12 = sld [smem:[#allocation21_spill]] }
 0x584   : > { %s5913_s7 = smov %s5904_s25 }
 0x585   :  { %2629 = vsyncpa [#allocation8], 1 }
 0x586   :  { %2631 = vsyncpa [#allocation8 + $0x1], 1 }
 0x587   :  { %2632 = vsyncpa [#allocation9], 1 }
 0x588   :  { %2634 = vsyncpa [#allocation9 + $0x1], 1 }

</bundles_post_ra>
